<compile_context>
chip_gen: v7x
topology: tpu7x:2x2x1
jax: 0.10.0
libtpu: 0.0.40
codegen_flags: <defaults>
</compile_context>

<pallas_src>
import numpy as np
import jax
import jax.numpy as jnp
from jax.experimental import pallas as pl
from jax.experimental.pallas import tpu as pltpu

_VMEM = pl.BlockSpec(memory_space=pltpu.MemorySpace.VMEM)


# ---------------------------------------------------------------------------
# Fused forward kernel factory (all operands tiny -> whole arrays in VMEM).
# ---------------------------------------------------------------------------
def make_fused_kernel(cfg, M):
    F = cfg["n_features"]
    n_gcn = cfg["gnn_forward_layer_num"]
    gh = list(cfg["gnns_forward_hidden"])
    pdims = [F] + gh                      # per-patch input dims
    P = n_gcn + 1                         # number of patch tokens
    P1 = P + 1                            # + cls token
    D = cfg["tsf_dim"]
    ph = cfg["project_hidden"]
    depth = cfg["tsf_depth"]
    heads = cfg["tsf_heads"]
    hd = cfg["tsf_head_dim"]
    mlp = cfg["tsf_mlp_hidden"]
    n_fc = cfg["linear_layer_num"]
    lh = list(cfg["linears_hidden"])
    n_cls = cfg["n_classes"]
    pool_mean = cfg["vit_pool"] == "mean"
    eps = 1e-5

    # ---- bias-slab row layout (must match pack_args) ----
    BROWS = 7 + heads
    row_gcn = 0
    row_b1 = n_gcn
    row_blk0 = n_gcn + 1
    row_lnf = row_blk0 + depth * BROWS
    row_fc = row_lnf + 2
    row_fco = row_fc + n_fc

    def mm(a, b):
        return jnp.dot(a, b, preferred_element_type=jnp.float32)

    def kernel(*refs):
        it = iter(refs)
        x = next(it)[...]                       # (N, F)
        adj = next(it)[...]                     # (N, N) normalized adjacency
        sel = next(it)[...]                     # (M, N) one-hot mask gather
        gcn_w = [next(it)[...] for _ in range(n_gcn)]
        w1bd = next(it)[...]                    # (sum d_p, P*ph) block-diag proj-1
        w2bd = next(it)[...]                    # (P*ph, P*D)    block-diag proj-2
        attn_bias = next(it)[...]               # (R, R) additive mask (same-node)
        tok_base = next(it)[...]                # (R, D) cls + pos + proj b2 folded
        wq = next(it)[...]                      # (depth*heads, D, hd), pre-scaled
        wk = next(it)[...]                      # (depth*heads, D, hd)
        wvo = next(it)[...]                     # (depth*heads, D, D) = wv @ wo
        wm1 = next(it)[...]                     # (depth, D, mlp)
        wm2 = next(it)[...]                     # (depth, mlp, D)
        fc_w = [next(it)[...] for _ in range(n_fc)]
        fco_w = next(it)[...]                   # (lh[-1], n_cls)
        bias = next(it)[...]                    # (rows, 128) packed bias slab
        out_ref = next(it)

        def brow(r, w):
            return bias[r:r + 1, 0:w]

        def layernorm(v, g, b):
            mu = jnp.mean(v, axis=-1, keepdims=True)
            var = jnp.mean((v - mu) ** 2, axis=-1, keepdims=True)
            return (v - mu) * jax.lax.rsqrt(var + eps) * g + b

        # ---- GCN stack + mask gather (one-hot matmul keeps arbitrary masks;
        #      for a regular mask a strided sublane read would also work) ----
        h = x
        hm = [mm(sel, x)]                       # h.insert(0, x[mask])
        for i in range(n_gcn):
            h = jnp.maximum(mm(adj, mm(h, gcn_w[i])) + brow(row_gcn + i, gh[i]), 0.0)
            hm.append(mm(sel, h))

        # ---- batched per-patch projections (block-diagonal 2-level GEMM) ----
        # TODO(synk): exact LongTermLayerAttention projection structure not in the
        # provided source; implemented as Linear(d_p, ph)+ReLU then Linear(ph, D).
        t1 = None
        off = 0
        for p in range(P):
            c = mm(hm[p], w1bd[off:off + pdims[p], :])   # sublane-aligned row slice
            t1 = c if t1 is None else t1 + c
            off += pdims[p]
        t1 = jnp.maximum(t1 + brow(row_b1, P * ph), 0.0)  # (M, P*ph)
        t2 = mm(t1, w2bd)                                  # (M, P*D): col block p = token_p

        # position-major token layout: row p*M + m ; row block 0 = cls (in base)
        tok = tok_base + jnp.concatenate(
            [jnp.zeros((M, D), jnp.float32)]
            + [t2[:, p * D:(p + 1) * D] for p in range(P)], axis=0)   # (R, D)

        # ---- transformer encoder blocks (pre-norm ViT) ----
        for d in range(depth):
            r0 = row_blk0 + d * BROWS
            xn = layernorm(tok, brow(r0, D), brow(r0 + 1, D))
            acc = None
            for hh in range(heads):
                idx = d * heads + hh
                # wq/bq pre-scaled by 1/sqrt(hd); k bias dropped (adds a per-row
                # constant to the scores, which cancels exactly in softmax).
                qh = mm(xn, wq[idx]) + brow(r0 + 2 + hh, hd)     # (R, hd)
                kh = mm(xn, wk[idx])                              # (R, hd)
                s = jax.lax.dot_general(qh, kh, (((1,), (1,)), ((), ())),
                                        preferred_element_type=jnp.float32)
                s = s + attn_bias                                 # isolate mask nodes
                e = jnp.exp(s - jnp.max(s, axis=-1, keepdims=True))
                pr = e * pl.reciprocal(jnp.sum(e, axis=-1, keepdims=True),
                                       approx=True)
                c = mm(pr, mm(xn, wvo[idx]))                      # (R, D)
                acc = c if acc is None else acc + c               # MRB-friendly accum
            # attn output bias = sum_h bv_h@wo_h + bo, folded offline (rows of pr
            # sum to ~1), added once.
            tok = tok + acc + brow(r0 + 2 + heads, D)
            xn2 = layernorm(tok, brow(r0 + 3 + heads, D), brow(r0 + 4 + heads, D))
            # TODO(synk): PyTorch nn.GELU default is exact erf; tanh approx used.
            m1 = jax.nn.gelu(mm(xn2, wm1[d]) + brow(r0 + 5 + heads, mlp),
                             approximate=True)
            tok = tok + mm(m1, wm2[d]) + brow(r0 + 6 + heads, D)

        # ---- pool ('cls' = static sublane slice / 'mean') + final LN + FC head ----
        if pool_mean:
            pooled = tok[0:M, :]
            for p in range(1, P1):
                pooled = pooled + tok[p * M:(p + 1) * M, :]
            pooled = pooled * (1.0 / P1)
        else:
            pooled = tok[0:M, :]
        hcur = layernorm(pooled, brow(row_lnf, D), brow(row_lnf + 1, D))
        for i in range(n_fc):
            hcur = jnp.maximum(mm(hcur, fc_w[i]) + brow(row_fc + i, lh[i]), 0.0)
        out_ref[...] = mm(hcur, fco_w) + brow(row_fco, n_cls)

    return kernel


# ---------------------------------------------------------------------------
# Static constants precomputed ONCE (outside the per-forward hot path)
# ---------------------------------------------------------------------------
def build_constants(N, edge_index, mask_idx, cfg):
    # norm_adj(edgeIndex2CooAdj(...)): symmetric normalization with self-loops.
    # TODO(synk): if the graph already carries self-loops the diagonal becomes 2
    # before normalization; verify against the reference norm_adj.
    adj = jnp.zeros((N, N), jnp.float32).at[edge_index[0], edge_index[1]].set(1.0)
    adj = jnp.maximum(adj, adj.T)
    adj = adj + jnp.eye(N, dtype=jnp.float32)
    deg = jnp.sum(adj, axis=1)
    d_inv_sqrt = jnp.where(deg > 0, 1.0 / jnp.sqrt(deg), 0.0)
    adj = adj * d_inv_sqrt[:, None] * d_inv_sqrt[None, :]

    mask_np = np.asarray(mask_idx)
    M = int(mask_np.shape[0])
    P = cfg["gnn_forward_layer_num"] + 1
    P1 = P + 1
    R = M * P1

    sel = np.zeros((M, N), np.float32)
    sel[np.arange(M), mask_np] = 1.0

    # position-major token layout: row = p*M + m  -> same mask node iff row%M equal
    node = np.arange(R) % M
    attn_bias = np.where(node[:, None] == node[None, :], 0.0, -1e30).astype(np.float32)

    return dict(adj=adj, sel=jnp.asarray(sel), attn_bias=jnp.asarray(attn_bias),
                M=M, P=P, P1=P1, R=R)


# ---------------------------------------------------------------------------
# Deterministic parameter initialization (PyTorch-Linear-style uniform init)
# ---------------------------------------------------------------------------
def _init_linear(key, din, dout, bias=True):
    kw, kb = jax.random.split(key)
    lim = 1.0 / float(np.sqrt(din))
    w = jax.random.uniform(kw, (din, dout), jnp.float32, -lim, lim)
    if bias:
        b = jax.random.uniform(kb, (dout,), jnp.float32, -lim, lim)
    else:
        b = jnp.zeros((dout,), jnp.float32)
    return w, b


def init_params(key, cfg):
    keys = iter(jax.random.split(key, 128))
    params = {}

    gcn_dims = [cfg["n_features"]] + list(cfg["gnns_forward_hidden"])
    params["gcn"] = [
        _init_linear(next(keys), gcn_dims[i], gcn_dims[i + 1], cfg["bias"])
        for i in range(cfg["gnn_forward_layer_num"])
    ]

    patches_dim = [cfg["n_features"]] + list(cfg["gnns_forward_hidden"])
    params["proj"] = []
    for d in patches_dim:
        w1, b1 = _init_linear(next(keys), d, cfg["project_hidden"], cfg["bias"])
        w2, b2 = _init_linear(next(keys), cfg["project_hidden"], cfg["tsf_dim"], cfg["bias"])
        params["proj"].append((w1, b1, w2, b2))

    D = cfg["tsf_dim"]
    inner = cfg["tsf_heads"] * cfg["tsf_head_dim"]
    num_patches = cfg["gnn_forward_layer_num"] + 1
    params["cls"] = jax.random.normal(next(keys), (1, 1, D), jnp.float32) * 0.02
    params["pos"] = jax.random.normal(next(keys), (1, num_patches + 1, D), jnp.float32) * 0.02

    params["tsf"] = []
    for _ in range(cfg["tsf_depth"]):
        blk = {}
        blk["ln1_g"] = jnp.ones((D,), jnp.float32)
        blk["ln1_b"] = jnp.zeros((D,), jnp.float32)
        blk["wqkv"], blk["bqkv"] = _init_linear(next(keys), D, 3 * inner, cfg["bias"])
        blk["wo"], blk["bo"] = _init_linear(next(keys), inner, D, cfg["bias"])
        blk["ln2_g"] = jnp.ones((D,), jnp.float32)
        blk["ln2_b"] = jnp.zeros((D,), jnp.float32)
        blk["w1"], blk["b1"] = _init_linear(next(keys), D, cfg["tsf_mlp_hidden"], cfg["bias"])
        blk["w2"], blk["b2"] = _init_linear(next(keys), cfg["tsf_mlp_hidden"], D, cfg["bias"])
        params["tsf"].append(blk)

    params["ln_f_g"] = jnp.ones((D,), jnp.float32)
    params["ln_f_b"] = jnp.zeros((D,), jnp.float32)

    fc_dims = [D] + list(cfg["linears_hidden"])
    params["fc_hidden"] = [
        _init_linear(next(keys), fc_dims[i], fc_dims[i + 1], cfg["bias"])
        for i in range(cfg["linear_layer_num"])
    ]
    params["fc_out"] = _init_linear(next(keys), fc_dims[-1], cfg["n_classes"], cfg["bias"])
    return params


# ---------------------------------------------------------------------------
# Offline packing / folding of params + constants into ~18 kernel operands
# ---------------------------------------------------------------------------
def pack_args(x, params, consts, cfg):
    F = cfg["n_features"]
    n_gcn = cfg["gnn_forward_layer_num"]
    gh = list(cfg["gnns_forward_hidden"])
    pdims = [F] + gh
    d_tot = sum(pdims)
    M, P, P1, R = consts["M"], consts["P"], consts["P1"], consts["R"]
    D = cfg["tsf_dim"]
    ph = cfg["project_hidden"]
    depth = cfg["tsf_depth"]
    heads = cfg["tsf_heads"]
    hd = cfg["tsf_head_dim"]
    inner = heads * hd
    mlp = cfg["tsf_mlp_hidden"]
    n_fc = cfg["linear_layer_num"]
    lh = list(cfg["linears_hidden"])
    n_cls = cfg["n_classes"]
    scale = 1.0 / float(np.sqrt(hd))

    # --- block-diagonal projection weights + concatenated proj-1 bias ---
    W1 = np.zeros((d_tot, P * ph), np.float32)
    W2 = np.zeros((P * ph, P * D), np.float32)
    b1cat = np.zeros((P * ph,), np.float32)
    off = 0
    for p in range(P):
        w1, b1, w2, _ = [np.asarray(a, np.float32) for a in params["proj"][p]]
        W1[off:off + pdims[p], p * ph:(p + 1) * ph] = w1
        W2[p * ph:(p + 1) * ph, p * D:(p + 1) * D] = w2
        b1cat[p * ph:(p + 1) * ph] = b1
        off += pdims[p]

    # --- token base: pos (position-major) + cls rows + proj-2 biases ---
    pos = np.array(np.asarray(params["pos"]).reshape(P1, D), np.float32)
    tok_base = np.repeat(pos, M, axis=0)                 # row p*M+m -> pos[p]
    tok_base[0:M, :] += np.asarray(params["cls"]).reshape(D)
    for p in range(P):
        b2 = np.asarray(params["proj"][p][3], np.float32)
        tok_base[(1 + p) * M:(2 + p) * M, :] += b2

    # --- per-head attention weights (pre-split, scale & output proj folded) ---
    wq_l, wk_l, wvo_l = [], [], []
    for blk in params["tsf"]:
        wqkv = np.asarray(blk["wqkv"], np.float32)
        wo = np.asarray(blk["wo"], np.float32)
        for h in range(heads):
            lo = h * hd
            wq_l.append(wqkv[:, lo:lo + hd] * scale)
            wk_l.append(wqkv[:, inner + lo:inner + lo + hd])
            wvo_l.append(wqkv[:, 2 * inner + lo:2 * inner + lo + hd] @ wo[lo:lo + hd, :])
    wq = np.stack(wq_l).astype(np.float32)               # (depth*heads, D, hd)
    wk = np.stack(wk_l).astype(np.float32)
    wvo = np.stack(wvo_l).astype(np.float32)             # (depth*heads, D, D)
    wm1 = np.stack([np.asarray(b["w1"], np.float32) for b in params["tsf"]])
    wm2 = np.stack([np.asarray(b["w2"], np.float32) for b in params["tsf"]])

    # --- packed bias / LN slab (one lane-dense operand) ---
    BROWS = 7 + heads
    rows = n_gcn + 1 + depth * BROWS + 2 + n_fc + 1
    rows_pad = ((rows + 7) // 8) * 8
    max_w = max([D, mlp, P * ph, hd, n_cls] + gh + lh)
    width = ((max_w + 127) // 128) * 128
    slab = np.zeros((rows_pad, width), np.float32)
    r = 0
    for i in range(n_gcn):
        b = np.asarray(params["gcn"][i][1], np.float32)
        slab[r, :gh[i]] = b
        r += 1
    slab[r, :P * ph] = b1cat
    r += 1
    for blk in params["tsf"]:
        bqkv = np.asarray(blk["bqkv"], np.float32)
        wo = np.asarray(blk["wo"], np.float32)
        bo = np.asarray(blk["bo"], np.float32)
        slab[r, :D] = np.asarray(blk["ln1_g"], np.float32)
        slab[r + 1, :D] = np.asarray(blk["ln1_b"], np.float32)
        for h in range(heads):
            slab[r + 2 + h, :hd] = bqkv[h * hd:(h + 1) * hd] * scale
        # k bias dropped (cancels in softmax); v bias folded through wo + bo.
        slab[r + 2 + heads, :D] = bqkv[2 * inner:3 * inner] @ wo + bo
        slab[r + 3 + heads, :D] = np.asarray(blk["ln2_g"], np.float32)
        slab[r + 4 + heads, :D] = np.asarray(blk["ln2_b"], np.float32)
        slab[r + 5 + heads, :mlp] = np.asarray(blk["b1"], np.float32)
        slab[r + 6 + heads, :D] = np.asarray(blk["b2"], np.float32)
        r += BROWS
    slab[r, :D] = np.asarray(params["ln_f_g"], np.float32)
    slab[r + 1, :D] = np.asarray(params["ln_f_b"], np.float32)
    r += 2
    for i in range(n_fc):
        slab[r, :lh[i]] = np.asarray(params["fc_hidden"][i][1], np.float32)
        r += 1
    slab[r, :n_cls] = np.asarray(params["fc_out"][1], np.float32)

    args = [x, consts["adj"], consts["sel"]]
    args += [params["gcn"][i][0] for i in range(n_gcn)]
    args += [jnp.asarray(W1), jnp.asarray(W2), consts["attn_bias"],
             jnp.asarray(tok_base), jnp.asarray(wq), jnp.asarray(wk),
             jnp.asarray(wvo), jnp.asarray(wm1), jnp.asarray(wm2)]
    args += [params["fc_hidden"][i][0] for i in range(n_fc)]
    args += [params["fc_out"][0], jnp.asarray(slab)]
    return args


def gcnltlafc_forward(kernel, args, M, n_classes):
    return pl.pallas_call(
        kernel,
        out_shape=jax.ShapeDtypeStruct((M, n_classes), jnp.float32),
        in_specs=[_VMEM] * len(args),
        out_specs=_VMEM,
    )(*args)


# ---------------------------------------------------------------------------
if __name__ == "__main__":
    cfg = dict(
        gnn_forward_layer_num=2,
        linear_layer_num=2,
        n_features=8,
        n_classes=3,
        gnns_forward_hidden=[16, 16],
        linears_hidden=[32, 16],
        project_hidden=16,
        gnn_do_bn=False,
        linear_do_bn=False,
        gnn_dropout=0.0,
        linear_dropout=0.0,
        tsf_dim=32,
        tsf_mlp_hidden=64,
        tsf_depth=2,
        tsf_heads=4,
        tsf_head_dim=8,
        tsf_dropout=0.0,
        vit_emb_dropout=0.0,
        vit_pool="cls",
        bias=True,
    )

    key = jax.random.PRNGKey(0)
    k_param, k_x, k_e = jax.random.split(key, 3)

    N = 16                                   # number of graph nodes
    x = jax.random.normal(k_x, (N, cfg["n_features"]), jnp.float32)
    edge_index = jax.random.randint(k_e, (2, 40), 0, N, dtype=jnp.int32)

    # boolean node mask -> static index set (dynamic shapes not allowed in JAX)
    mask_np = np.zeros((N,), dtype=bool)
    mask_np[::2] = True                      # select 8 of 16 nodes
    mask_idx = np.nonzero(mask_np)[0].astype(np.int32)

    params = init_params(k_param, cfg)

    # Precomputed once: normalized adjacency + gather/mask constants, folded and
    # packed kernel operands, and the fused kernel itself.
    consts = build_constants(N, edge_index, mask_idx, cfg)
    args = pack_args(x, params, consts, cfg)
    kernel = make_fused_kernel(cfg, consts["M"])

    logits = gcnltlafc_forward(kernel, args, consts["M"], cfg["n_classes"])
    jax.block_until_ready(logits)
    assert logits.shape == (int(mask_np.sum()), cfg["n_classes"])
    print("KERNEL_OK")
</pallas_src>

<mosaic_0001>
module attributes {stable_mosaic.version = 11 : i64} {
  func.func @kernel(%arg0: memref<16x8xf32, #tpu.memory_space<vmem>>, %arg1: memref<16x16xf32, #tpu.memory_space<vmem>>, %arg2: memref<8x16xf32, #tpu.memory_space<vmem>>, %arg3: memref<8x16xf32, #tpu.memory_space<vmem>>, %arg4: memref<16x16xf32, #tpu.memory_space<vmem>>, %arg5: memref<40x48xf32, #tpu.memory_space<vmem>>, %arg6: memref<48x96xf32, #tpu.memory_space<vmem>>, %arg7: memref<32x32xf32, #tpu.memory_space<vmem>>, %arg8: memref<32x32xf32, #tpu.memory_space<vmem>>, %arg9: memref<8x32x8xf32, #tpu.memory_space<vmem>>, %arg10: memref<8x32x8xf32, #tpu.memory_space<vmem>>, %arg11: memref<8x32x32xf32, #tpu.memory_space<vmem>>, %arg12: memref<2x32x64xf32, #tpu.memory_space<vmem>>, %arg13: memref<2x64x32xf32, #tpu.memory_space<vmem>>, %arg14: memref<32x32xf32, #tpu.memory_space<vmem>>, %arg15: memref<32x16xf32, #tpu.memory_space<vmem>>, %arg16: memref<16x3xf32, #tpu.memory_space<vmem>>, %arg17: memref<32x128xf32, #tpu.memory_space<vmem>>, %arg18: memref<8x3xf32, #tpu.memory_space<vmem>>) attributes {dimension_semantics = [], scalar_prefetch = 0 : i64, scratch_operands = 0 : i64, tpu.core_type = #tpu.core_type<tc>} {
    %c0 = arith.constant 0 : index
    %c0_0 = arith.constant 0 : index
    %0 = vector.load %arg0[%c0, %c0_0] : memref<16x8xf32, #tpu.memory_space<vmem>>, vector<16x8xf32>
    %c0_1 = arith.constant 0 : index
    %c0_2 = arith.constant 0 : index
    %1 = vector.load %arg1[%c0_1, %c0_2] : memref<16x16xf32, #tpu.memory_space<vmem>>, vector<16x16xf32>
    %c0_3 = arith.constant 0 : index
    %c0_4 = arith.constant 0 : index
    %2 = vector.load %arg2[%c0_3, %c0_4] : memref<8x16xf32, #tpu.memory_space<vmem>>, vector<8x16xf32>
    %c0_5 = arith.constant 0 : index
    %c0_6 = arith.constant 0 : index
    %3 = vector.load %arg3[%c0_5, %c0_6] : memref<8x16xf32, #tpu.memory_space<vmem>>, vector<8x16xf32>
    %c0_7 = arith.constant 0 : index
    %c0_8 = arith.constant 0 : index
    %4 = vector.load %arg4[%c0_7, %c0_8] : memref<16x16xf32, #tpu.memory_space<vmem>>, vector<16x16xf32>
    %c0_9 = arith.constant 0 : index
    %c0_10 = arith.constant 0 : index
    %5 = vector.load %arg5[%c0_9, %c0_10] : memref<40x48xf32, #tpu.memory_space<vmem>>, vector<40x48xf32>
    %c0_11 = arith.constant 0 : index
    %c0_12 = arith.constant 0 : index
    %6 = vector.load %arg6[%c0_11, %c0_12] : memref<48x96xf32, #tpu.memory_space<vmem>>, vector<48x96xf32>
    %c0_13 = arith.constant 0 : index
    %c0_14 = arith.constant 0 : index
    %7 = vector.load %arg7[%c0_13, %c0_14] : memref<32x32xf32, #tpu.memory_space<vmem>>, vector<32x32xf32>
    %c0_15 = arith.constant 0 : index
    %c0_16 = arith.constant 0 : index
    %8 = vector.load %arg8[%c0_15, %c0_16] : memref<32x32xf32, #tpu.memory_space<vmem>>, vector<32x32xf32>
    %c0_17 = arith.constant 0 : index
    %c0_18 = arith.constant 0 : index
    %c0_19 = arith.constant 0 : index
    %9 = vector.load %arg9[%c0_17, %c0_18, %c0_19] : memref<8x32x8xf32, #tpu.memory_space<vmem>>, vector<8x32x8xf32>
    %c0_20 = arith.constant 0 : index
    %c0_21 = arith.constant 0 : index
    %c0_22 = arith.constant 0 : index
    %10 = vector.load %arg10[%c0_20, %c0_21, %c0_22] : memref<8x32x8xf32, #tpu.memory_space<vmem>>, vector<8x32x8xf32>
    %c0_23 = arith.constant 0 : index
    %c0_24 = arith.constant 0 : index
    %c0_25 = arith.constant 0 : index
    %11 = vector.load %arg11[%c0_23, %c0_24, %c0_25] : memref<8x32x32xf32, #tpu.memory_space<vmem>>, vector<8x32x32xf32>
    %c0_26 = arith.constant 0 : index
    %c0_27 = arith.constant 0 : index
    %c0_28 = arith.constant 0 : index
    %12 = vector.load %arg12[%c0_26, %c0_27, %c0_28] : memref<2x32x64xf32, #tpu.memory_space<vmem>>, vector<2x32x64xf32>
    %c0_29 = arith.constant 0 : index
    %c0_30 = arith.constant 0 : index
    %c0_31 = arith.constant 0 : index
    %13 = vector.load %arg13[%c0_29, %c0_30, %c0_31] : memref<2x64x32xf32, #tpu.memory_space<vmem>>, vector<2x64x32xf32>
    %c0_32 = arith.constant 0 : index
    %c0_33 = arith.constant 0 : index
    %14 = vector.load %arg14[%c0_32, %c0_33] : memref<32x32xf32, #tpu.memory_space<vmem>>, vector<32x32xf32>
    %c0_34 = arith.constant 0 : index
    %c0_35 = arith.constant 0 : index
    %15 = vector.load %arg15[%c0_34, %c0_35] : memref<32x16xf32, #tpu.memory_space<vmem>>, vector<32x16xf32>
    %c0_36 = arith.constant 0 : index
    %c0_37 = arith.constant 0 : index
    %16 = vector.load %arg16[%c0_36, %c0_37] : memref<16x3xf32, #tpu.memory_space<vmem>>, vector<16x3xf32>
    %c0_38 = arith.constant 0 : index
    %c0_39 = arith.constant 0 : index
    %17 = vector.load %arg17[%c0_38, %c0_39] : memref<32x128xf32, #tpu.memory_space<vmem>>, vector<32x128xf32>
    %cst = arith.constant dense<0.000000e+00> : vector<8x8xf32>
    %18 = tpu.matmul %2, %0, %cst {dimension_numbers = #tpu.dot_dimension_numbers<[1], [0], [0], [1], [0, 0, 1, 1], [], []>} : vector<8x16xf32>, vector<16x8xf32>, vector<8x8xf32> -> vector<8x8xf32>
    %cst_40 = arith.constant dense<0.000000e+00> : vector<16x16xf32>
    %19 = tpu.matmul %0, %3, %cst_40 {dimension_numbers = #tpu.dot_dimension_numbers<[1], [0], [0], [1], [0, 0, 1, 1], [], []>} : vector<16x8xf32>, vector<8x16xf32>, vector<16x16xf32> -> vector<16x16xf32>
    %cst_41 = arith.constant dense<0.000000e+00> : vector<16x16xf32>
    %20 = tpu.matmul %1, %19, %cst_41 {dimension_numbers = #tpu.dot_dimension_numbers<[1], [0], [0], [1], [0, 0, 1, 1], [], []>} : vector<16x16xf32>, vector<16x16xf32>, vector<16x16xf32> -> vector<16x16xf32>
    %21 = vector.extract_strided_slice %17 {offsets = [0, 0], sizes = [1, 16], strides = [1, 1]} : vector<32x128xf32> to vector<1x16xf32>
    %22 = vector.broadcast %21 : vector<1x16xf32> to vector<16x16xf32>
    %23 = arith.addf %20, %22 : vector<16x16xf32>
    %cst_42 = arith.constant 0.000000e+00 : f32
    %24 = vector.broadcast %cst_42 : f32 to vector<16x16xf32>
    %25 = arith.maximumf %23, %24 : vector<16x16xf32>
    %cst_43 = arith.constant dense<0.000000e+00> : vector<8x16xf32>
    %26 = tpu.matmul %2, %25, %cst_43 {dimension_numbers = #tpu.dot_dimension_numbers<[1], [0], [0], [1], [0, 0, 1, 1], [], []>} : vector<8x16xf32>, vector<16x16xf32>, vector<8x16xf32> -> vector<8x16xf32>
    %cst_44 = arith.constant dense<0.000000e+00> : vector<16x16xf32>
    %27 = tpu.matmul %25, %4, %cst_44 {dimension_numbers = #tpu.dot_dimension_numbers<[1], [0], [0], [1], [0, 0, 1, 1], [], []>} : vector<16x16xf32>, vector<16x16xf32>, vector<16x16xf32> -> vector<16x16xf32>
    %cst_45 = arith.constant dense<0.000000e+00> : vector<16x16xf32>
    %28 = tpu.matmul %1, %27, %cst_45 {dimension_numbers = #tpu.dot_dimension_numbers<[1], [0], [0], [1], [0, 0, 1, 1], [], []>} : vector<16x16xf32>, vector<16x16xf32>, vector<16x16xf32> -> vector<16x16xf32>
    %29 = vector.extract_strided_slice %17 {offsets = [1, 0], sizes = [1, 16], strides = [1, 1]} : vector<32x128xf32> to vector<1x16xf32>
    %30 = vector.broadcast %29 : vector<1x16xf32> to vector<16x16xf32>
    %31 = arith.addf %28, %30 : vector<16x16xf32>
    %cst_46 = arith.constant 0.000000e+00 : f32
    %32 = vector.broadcast %cst_46 : f32 to vector<16x16xf32>
    %33 = arith.maximumf %31, %32 : vector<16x16xf32>
    %cst_47 = arith.constant dense<0.000000e+00> : vector<8x16xf32>
    %34 = tpu.matmul %2, %33, %cst_47 {dimension_numbers = #tpu.dot_dimension_numbers<[1], [0], [0], [1], [0, 0, 1, 1], [], []>} : vector<8x16xf32>, vector<16x16xf32>, vector<8x16xf32> -> vector<8x16xf32>
    %35 = vector.extract_strided_slice %5 {offsets = [0, 0], sizes = [8, 48], strides = [1, 1]} : vector<40x48xf32> to vector<8x48xf32>
    %cst_48 = arith.constant dense<0.000000e+00> : vector<8x48xf32>
    %36 = tpu.matmul %18, %35, %cst_48 {dimension_numbers = #tpu.dot_dimension_numbers<[1], [0], [0], [1], [0, 0, 1, 1], [], []>} : vector<8x8xf32>, vector<8x48xf32>, vector<8x48xf32> -> vector<8x48xf32>
    %37 = vector.extract_strided_slice %5 {offsets = [8, 0], sizes = [16, 48], strides = [1, 1]} : vector<40x48xf32> to vector<16x48xf32>
    %cst_49 = arith.constant dense<0.000000e+00> : vector<8x48xf32>
    %38 = tpu.matmul %26, %37, %cst_49 {dimension_numbers = #tpu.dot_dimension_numbers<[1], [0], [0], [1], [0, 0, 1, 1], [], []>} : vector<8x16xf32>, vector<16x48xf32>, vector<8x48xf32> -> vector<8x48xf32>
    %39 = arith.addf %36, %38 : vector<8x48xf32>
    %40 = vector.extract_strided_slice %5 {offsets = [24, 0], sizes = [16, 48], strides = [1, 1]} : vector<40x48xf32> to vector<16x48xf32>
    %cst_50 = arith.constant dense<0.000000e+00> : vector<8x48xf32>
    %41 = tpu.matmul %34, %40, %cst_50 {dimension_numbers = #tpu.dot_dimension_numbers<[1], [0], [0], [1], [0, 0, 1, 1], [], []>} : vector<8x16xf32>, vector<16x48xf32>, vector<8x48xf32> -> vector<8x48xf32>
    %42 = arith.addf %39, %41 : vector<8x48xf32>
    %43 = vector.extract_strided_slice %17 {offsets = [2, 0], sizes = [1, 48], strides = [1, 1]} : vector<32x128xf32> to vector<1x48xf32>
    %44 = vector.broadcast %43 : vector<1x48xf32> to vector<8x48xf32>
    %45 = arith.addf %42, %44 : vector<8x48xf32>
    %cst_51 = arith.constant 0.000000e+00 : f32
    %46 = vector.broadcast %cst_51 : f32 to vector<8x48xf32>
    %47 = arith.maximumf %45, %46 : vector<8x48xf32>
    %cst_52 = arith.constant dense<0.000000e+00> : vector<8x96xf32>
    %48 = tpu.matmul %47, %6, %cst_52 {dimension_numbers = #tpu.dot_dimension_numbers<[1], [0], [0], [1], [0, 0, 1, 1], [], []>} : vector<8x48xf32>, vector<48x96xf32>, vector<8x96xf32> -> vector<8x96xf32>
    %cst_53 = arith.constant 0.000000e+00 : f32
    %49 = vector.broadcast %cst_53 : f32 to vector<8x32xf32>
    %50 = vector.extract_strided_slice %48 {offsets = [0, 0], sizes = [8, 32], strides = [1, 1]} : vector<8x96xf32> to vector<8x32xf32>
    %51 = vector.extract_strided_slice %48 {offsets = [0, 32], sizes = [8, 32], strides = [1, 1]} : vector<8x96xf32> to vector<8x32xf32>
    %52 = vector.extract_strided_slice %48 {offsets = [0, 64], sizes = [8, 32], strides = [1, 1]} : vector<8x96xf32> to vector<8x32xf32>
    %53 = tpu.concatenate %49, %50, %51, %52 in 0 : vector<8x32xf32>, vector<8x32xf32>, vector<8x32xf32>, vector<8x32xf32> -> vector<32x32xf32>
    %54 = arith.addf %8, %53 : vector<32x32xf32>
    %55 = vector.extract_strided_slice %17 {offsets = [3, 0], sizes = [1, 32], strides = [1, 1]} : vector<32x128xf32> to vector<1x32xf32>
    %56 = vector.extract_strided_slice %17 {offsets = [4, 0], sizes = [1, 32], strides = [1, 1]} : vector<32x128xf32> to vector<1x32xf32>
    %cst_54 = arith.constant dense<0.000000e+00> : vector<32xf32>
    %57 = vector.multi_reduction <add>, %54, %cst_54 [1] : vector<32x32xf32> to vector<32xf32>
    %58 = vector.shape_cast %57 : vector<32xf32> to vector<32x1xf32>
    %cst_55 = arith.constant 3.200000e+01 : f32
    %59 = vector.broadcast %cst_55 : f32 to vector<32x1xf32>
    %60 = arith.divf %58, %59 : vector<32x1xf32>
    %61 = vector.broadcast %60 : vector<32x1xf32> to vector<32x32xf32>
    %62 = arith.subf %54, %61 : vector<32x32xf32>
    %63 = arith.mulf %62, %62 : vector<32x32xf32>
    %cst_56 = arith.constant dense<0.000000e+00> : vector<32xf32>
    %64 = vector.multi_reduction <add>, %63, %cst_56 [1] : vector<32x32xf32> to vector<32xf32>
    %65 = vector.shape_cast %64 : vector<32xf32> to vector<32x1xf32>
    %cst_57 = arith.constant 3.200000e+01 : f32
    %66 = vector.broadcast %cst_57 : f32 to vector<32x1xf32>
    %67 = arith.divf %65, %66 : vector<32x1xf32>
    %68 = vector.broadcast %60 : vector<32x1xf32> to vector<32x32xf32>
    %69 = arith.subf %54, %68 : vector<32x32xf32>
    %cst_58 = arith.constant 9.99999974E-6 : f32
    %70 = vector.broadcast %cst_58 : f32 to vector<32x1xf32>
    %71 = arith.addf %67, %70 : vector<32x1xf32>
    %72 = math.rsqrt %71 : vector<32x1xf32>
    %73 = vector.broadcast %72 : vector<32x1xf32> to vector<32x32xf32>
    %74 = arith.mulf %69, %73 : vector<32x32xf32>
    %75 = vector.broadcast %55 : vector<1x32xf32> to vector<32x32xf32>
    %76 = arith.mulf %74, %75 : vector<32x32xf32>
    %77 = vector.broadcast %56 : vector<1x32xf32> to vector<32x32xf32>
    %78 = arith.addf %76, %77 : vector<32x32xf32>
    %79 = vector.extract_strided_slice %9 {offsets = [0, 0, 0], sizes = [1, 32, 8], strides = [1, 1, 1]} : vector<8x32x8xf32> to vector<1x32x8xf32>
    %80 = vector.shape_cast %79 : vector<1x32x8xf32> to vector<32x8xf32>
    %cst_59 = arith.constant dense<0.000000e+00> : vector<32x8xf32>
    %81 = tpu.matmul %78, %80, %cst_59 {dimension_numbers = #tpu.dot_dimension_numbers<[1], [0], [0], [1], [0, 0, 1, 1], [], []>} : vector<32x32xf32>, vector<32x8xf32>, vector<32x8xf32> -> vector<32x8xf32>
    %82 = vector.extract_strided_slice %17 {offsets = [5, 0], sizes = [1, 8], strides = [1, 1]} : vector<32x128xf32> to vector<1x8xf32>
    %83 = vector.broadcast %82 : vector<1x8xf32> to vector<32x8xf32>
    %84 = arith.addf %81, %83 : vector<32x8xf32>
    %85 = vector.extract_strided_slice %10 {offsets = [0, 0, 0], sizes = [1, 32, 8], strides = [1, 1, 1]} : vector<8x32x8xf32> to vector<1x32x8xf32>
    %86 = vector.shape_cast %85 : vector<1x32x8xf32> to vector<32x8xf32>
    %cst_60 = arith.constant dense<0.000000e+00> : vector<32x8xf32>
    %87 = tpu.matmul %78, %86, %cst_60 {dimension_numbers = #tpu.dot_dimension_numbers<[1], [0], [0], [1], [0, 0, 1, 1], [], []>} : vector<32x32xf32>, vector<32x8xf32>, vector<32x8xf32> -> vector<32x8xf32>
    %cst_61 = arith.constant dense<0.000000e+00> : vector<32x32xf32>
    %88 = tpu.matmul %84, %87, %cst_61 {dimension_numbers = #tpu.dot_dimension_numbers<[1], [1], [0], [0], [0, 0, 1, 0], [], []>} : vector<32x8xf32>, vector<32x8xf32>, vector<32x32xf32> -> vector<32x32xf32>
    %89 = arith.addf %88, %7 : vector<32x32xf32>
    %cst_62 = arith.constant dense<0xFF800000> : vector<32xf32>
    %90 = vector.multi_reduction <maximumf>, %89, %cst_62 [1] : vector<32x32xf32> to vector<32xf32>
    %91 = vector.shape_cast %90 : vector<32xf32> to vector<32x1xf32>
    %92 = vector.broadcast %91 : vector<32x1xf32> to vector<32x32xf32>
    %93 = arith.subf %89, %92 : vector<32x32xf32>
    %94 = math.exp %93 : vector<32x32xf32>
    %cst_63 = arith.constant dense<0.000000e+00> : vector<32xf32>
    %95 = vector.multi_reduction <add>, %94, %cst_63 [1] : vector<32x32xf32> to vector<32xf32>
    %96 = vector.shape_cast %95 : vector<32xf32> to vector<32x1xf32>
    %97 = tpu.reciprocal %96 {approx = true} : vector<32x1xf32> -> vector<32x1xf32>
    %98 = vector.broadcast %97 : vector<32x1xf32> to vector<32x32xf32>
    %99 = arith.mulf %94, %98 : vector<32x32xf32>
    %100 = vector.extract_strided_slice %11 {offsets = [0, 0, 0], sizes = [1, 32, 32], strides = [1, 1, 1]} : vector<8x32x32xf32> to vector<1x32x32xf32>
    %101 = vector.shape_cast %100 : vector<1x32x32xf32> to vector<32x32xf32>
    %cst_64 = arith.constant dense<0.000000e+00> : vector<32x32xf32>
    %102 = tpu.matmul %78, %101, %cst_64 {dimension_numbers = #tpu.dot_dimension_numbers<[1], [0], [0], [1], [0, 0, 1, 1], [], []>} : vector<32x32xf32>, vector<32x32xf32>, vector<32x32xf32> -> vector<32x32xf32>
    %cst_65 = arith.constant dense<0.000000e+00> : vector<32x32xf32>
    %103 = tpu.matmul %99, %102, %cst_65 {dimension_numbers = #tpu.dot_dimension_numbers<[1], [0], [0], [1], [0, 0, 1, 1], [], []>} : vector<32x32xf32>, vector<32x32xf32>, vector<32x32xf32> -> vector<32x32xf32>
    %104 = vector.extract_strided_slice %9 {offsets = [1, 0, 0], sizes = [1, 32, 8], strides = [1, 1, 1]} : vector<8x32x8xf32> to vector<1x32x8xf32>
    %105 = vector.shape_cast %104 : vector<1x32x8xf32> to vector<32x8xf32>
    %cst_66 = arith.constant dense<0.000000e+00> : vector<32x8xf32>
    %106 = tpu.matmul %78, %105, %cst_66 {dimension_numbers = #tpu.dot_dimension_numbers<[1], [0], [0], [1], [0, 0, 1, 1], [], []>} : vector<32x32xf32>, vector<32x8xf32>, vector<32x8xf32> -> vector<32x8xf32>
    %107 = vector.extract_strided_slice %17 {offsets = [6, 0], sizes = [1, 8], strides = [1, 1]} : vector<32x128xf32> to vector<1x8xf32>
    %108 = vector.broadcast %107 : vector<1x8xf32> to vector<32x8xf32>
    %109 = arith.addf %106, %108 : vector<32x8xf32>
    %110 = vector.extract_strided_slice %10 {offsets = [1, 0, 0], sizes = [1, 32, 8], strides = [1, 1, 1]} : vector<8x32x8xf32> to vector<1x32x8xf32>
    %111 = vector.shape_cast %110 : vector<1x32x8xf32> to vector<32x8xf32>
    %cst_67 = arith.constant dense<0.000000e+00> : vector<32x8xf32>
    %112 = tpu.matmul %78, %111, %cst_67 {dimension_numbers = #tpu.dot_dimension_numbers<[1], [0], [0], [1], [0, 0, 1, 1], [], []>} : vector<32x32xf32>, vector<32x8xf32>, vector<32x8xf32> -> vector<32x8xf32>
    %cst_68 = arith.constant dense<0.000000e+00> : vector<32x32xf32>
    %113 = tpu.matmul %109, %112, %cst_68 {dimension_numbers = #tpu.dot_dimension_numbers<[1], [1], [0], [0], [0, 0, 1, 0], [], []>} : vector<32x8xf32>, vector<32x8xf32>, vector<32x32xf32> -> vector<32x32xf32>
    %114 = arith.addf %113, %7 : vector<32x32xf32>
    %cst_69 = arith.constant dense<0xFF800000> : vector<32xf32>
    %115 = vector.multi_reduction <maximumf>, %114, %cst_69 [1] : vector<32x32xf32> to vector<32xf32>
    %116 = vector.shape_cast %115 : vector<32xf32> to vector<32x1xf32>
    %117 = vector.broadcast %116 : vector<32x1xf32> to vector<32x32xf32>
    %118 = arith.subf %114, %117 : vector<32x32xf32>
    %119 = math.exp %118 : vector<32x32xf32>
    %cst_70 = arith.constant dense<0.000000e+00> : vector<32xf32>
    %120 = vector.multi_reduction <add>, %119, %cst_70 [1] : vector<32x32xf32> to vector<32xf32>
    %121 = vector.shape_cast %120 : vector<32xf32> to vector<32x1xf32>
    %122 = tpu.reciprocal %121 {approx = true} : vector<32x1xf32> -> vector<32x1xf32>
    %123 = vector.broadcast %122 : vector<32x1xf32> to vector<32x32xf32>
    %124 = arith.mulf %119, %123 : vector<32x32xf32>
    %125 = vector.extract_strided_slice %11 {offsets = [1, 0, 0], sizes = [1, 32, 32], strides = [1, 1, 1]} : vector<8x32x32xf32> to vector<1x32x32xf32>
    %126 = vector.shape_cast %125 : vector<1x32x32xf32> to vector<32x32xf32>
    %cst_71 = arith.constant dense<0.000000e+00> : vector<32x32xf32>
    %127 = tpu.matmul %78, %126, %cst_71 {dimension_numbers = #tpu.dot_dimension_numbers<[1], [0], [0], [1], [0, 0, 1, 1], [], []>} : vector<32x32xf32>, vector<32x32xf32>, vector<32x32xf32> -> vector<32x32xf32>
    %cst_72 = arith.constant dense<0.000000e+00> : vector<32x32xf32>
    %128 = tpu.matmul %124, %127, %cst_72 {dimension_numbers = #tpu.dot_dimension_numbers<[1], [0], [0], [1], [0, 0, 1, 1], [], []>} : vector<32x32xf32>, vector<32x32xf32>, vector<32x32xf32> -> vector<32x32xf32>
    %129 = arith.addf %103, %128 : vector<32x32xf32>
    %130 = vector.extract_strided_slice %9 {offsets = [2, 0, 0], sizes = [1, 32, 8], strides = [1, 1, 1]} : vector<8x32x8xf32> to vector<1x32x8xf32>
    %131 = vector.shape_cast %130 : vector<1x32x8xf32> to vector<32x8xf32>
    %cst_73 = arith.constant dense<0.000000e+00> : vector<32x8xf32>
    %132 = tpu.matmul %78, %131, %cst_73 {dimension_numbers = #tpu.dot_dimension_numbers<[1], [0], [0], [1], [0, 0, 1, 1], [], []>} : vector<32x32xf32>, vector<32x8xf32>, vector<32x8xf32> -> vector<32x8xf32>
    %133 = vector.extract_strided_slice %17 {offsets = [7, 0], sizes = [1, 8], strides = [1, 1]} : vector<32x128xf32> to vector<1x8xf32>
    %134 = vector.broadcast %133 : vector<1x8xf32> to vector<32x8xf32>
    %135 = arith.addf %132, %134 : vector<32x8xf32>
    %136 = vector.extract_strided_slice %10 {offsets = [2, 0, 0], sizes = [1, 32, 8], strides = [1, 1, 1]} : vector<8x32x8xf32> to vector<1x32x8xf32>
    %137 = vector.shape_cast %136 : vector<1x32x8xf32> to vector<32x8xf32>
    %cst_74 = arith.constant dense<0.000000e+00> : vector<32x8xf32>
    %138 = tpu.matmul %78, %137, %cst_74 {dimension_numbers = #tpu.dot_dimension_numbers<[1], [0], [0], [1], [0, 0, 1, 1], [], []>} : vector<32x32xf32>, vector<32x8xf32>, vector<32x8xf32> -> vector<32x8xf32>
    %cst_75 = arith.constant dense<0.000000e+00> : vector<32x32xf32>
    %139 = tpu.matmul %135, %138, %cst_75 {dimension_numbers = #tpu.dot_dimension_numbers<[1], [1], [0], [0], [0, 0, 1, 0], [], []>} : vector<32x8xf32>, vector<32x8xf32>, vector<32x32xf32> -> vector<32x32xf32>
    %140 = arith.addf %139, %7 : vector<32x32xf32>
    %cst_76 = arith.constant dense<0xFF800000> : vector<32xf32>
    %141 = vector.multi_reduction <maximumf>, %140, %cst_76 [1] : vector<32x32xf32> to vector<32xf32>
    %142 = vector.shape_cast %141 : vector<32xf32> to vector<32x1xf32>
    %143 = vector.broadcast %142 : vector<32x1xf32> to vector<32x32xf32>
    %144 = arith.subf %140, %143 : vector<32x32xf32>
    %145 = math.exp %144 : vector<32x32xf32>
    %cst_77 = arith.constant dense<0.000000e+00> : vector<32xf32>
    %146 = vector.multi_reduction <add>, %145, %cst_77 [1] : vector<32x32xf32> to vector<32xf32>
    %147 = vector.shape_cast %146 : vector<32xf32> to vector<32x1xf32>
    %148 = tpu.reciprocal %147 {approx = true} : vector<32x1xf32> -> vector<32x1xf32>
    %149 = vector.broadcast %148 : vector<32x1xf32> to vector<32x32xf32>
    %150 = arith.mulf %145, %149 : vector<32x32xf32>
    %151 = vector.extract_strided_slice %11 {offsets = [2, 0, 0], sizes = [1, 32, 32], strides = [1, 1, 1]} : vector<8x32x32xf32> to vector<1x32x32xf32>
    %152 = vector.shape_cast %151 : vector<1x32x32xf32> to vector<32x32xf32>
    %cst_78 = arith.constant dense<0.000000e+00> : vector<32x32xf32>
    %153 = tpu.matmul %78, %152, %cst_78 {dimension_numbers = #tpu.dot_dimension_numbers<[1], [0], [0], [1], [0, 0, 1, 1], [], []>} : vector<32x32xf32>, vector<32x32xf32>, vector<32x32xf32> -> vector<32x32xf32>
    %cst_79 = arith.constant dense<0.000000e+00> : vector<32x32xf32>
    %154 = tpu.matmul %150, %153, %cst_79 {dimension_numbers = #tpu.dot_dimension_numbers<[1], [0], [0], [1], [0, 0, 1, 1], [], []>} : vector<32x32xf32>, vector<32x32xf32>, vector<32x32xf32> -> vector<32x32xf32>
    %155 = arith.addf %129, %154 : vector<32x32xf32>
    %156 = vector.extract_strided_slice %9 {offsets = [3, 0, 0], sizes = [1, 32, 8], strides = [1, 1, 1]} : vector<8x32x8xf32> to vector<1x32x8xf32>
    %157 = vector.shape_cast %156 : vector<1x32x8xf32> to vector<32x8xf32>
    %cst_80 = arith.constant dense<0.000000e+00> : vector<32x8xf32>
    %158 = tpu.matmul %78, %157, %cst_80 {dimension_numbers = #tpu.dot_dimension_numbers<[1], [0], [0], [1], [0, 0, 1, 1], [], []>} : vector<32x32xf32>, vector<32x8xf32>, vector<32x8xf32> -> vector<32x8xf32>
    %159 = vector.extract_strided_slice %17 {offsets = [8, 0], sizes = [1, 8], strides = [1, 1]} : vector<32x128xf32> to vector<1x8xf32>
    %160 = vector.broadcast %159 : vector<1x8xf32> to vector<32x8xf32>
    %161 = arith.addf %158, %160 : vector<32x8xf32>
    %162 = vector.extract_strided_slice %10 {offsets = [3, 0, 0], sizes = [1, 32, 8], strides = [1, 1, 1]} : vector<8x32x8xf32> to vector<1x32x8xf32>
    %163 = vector.shape_cast %162 : vector<1x32x8xf32> to vector<32x8xf32>
    %cst_81 = arith.constant dense<0.000000e+00> : vector<32x8xf32>
    %164 = tpu.matmul %78, %163, %cst_81 {dimension_numbers = #tpu.dot_dimension_numbers<[1], [0], [0], [1], [0, 0, 1, 1], [], []>} : vector<32x32xf32>, vector<32x8xf32>, vector<32x8xf32> -> vector<32x8xf32>
    %cst_82 = arith.constant dense<0.000000e+00> : vector<32x32xf32>
    %165 = tpu.matmul %161, %164, %cst_82 {dimension_numbers = #tpu.dot_dimension_numbers<[1], [1], [0], [0], [0, 0, 1, 0], [], []>} : vector<32x8xf32>, vector<32x8xf32>, vector<32x32xf32> -> vector<32x32xf32>
    %166 = arith.addf %165, %7 : vector<32x32xf32>
    %cst_83 = arith.constant dense<0xFF800000> : vector<32xf32>
    %167 = vector.multi_reduction <maximumf>, %166, %cst_83 [1] : vector<32x32xf32> to vector<32xf32>
    %168 = vector.shape_cast %167 : vector<32xf32> to vector<32x1xf32>
    %169 = vector.broadcast %168 : vector<32x1xf32> to vector<32x32xf32>
    %170 = arith.subf %166, %169 : vector<32x32xf32>
    %171 = math.exp %170 : vector<32x32xf32>
    %cst_84 = arith.constant dense<0.000000e+00> : vector<32xf32>
    %172 = vector.multi_reduction <add>, %171, %cst_84 [1] : vector<32x32xf32> to vector<32xf32>
    %173 = vector.shape_cast %172 : vector<32xf32> to vector<32x1xf32>
    %174 = tpu.reciprocal %173 {approx = true} : vector<32x1xf32> -> vector<32x1xf32>
    %175 = vector.broadcast %174 : vector<32x1xf32> to vector<32x32xf32>
    %176 = arith.mulf %171, %175 : vector<32x32xf32>
    %177 = vector.extract_strided_slice %11 {offsets = [3, 0, 0], sizes = [1, 32, 32], strides = [1, 1, 1]} : vector<8x32x32xf32> to vector<1x32x32xf32>
    %178 = vector.shape_cast %177 : vector<1x32x32xf32> to vector<32x32xf32>
    %cst_85 = arith.constant dense<0.000000e+00> : vector<32x32xf32>
    %179 = tpu.matmul %78, %178, %cst_85 {dimension_numbers = #tpu.dot_dimension_numbers<[1], [0], [0], [1], [0, 0, 1, 1], [], []>} : vector<32x32xf32>, vector<32x32xf32>, vector<32x32xf32> -> vector<32x32xf32>
    %cst_86 = arith.constant dense<0.000000e+00> : vector<32x32xf32>
    %180 = tpu.matmul %176, %179, %cst_86 {dimension_numbers = #tpu.dot_dimension_numbers<[1], [0], [0], [1], [0, 0, 1, 1], [], []>} : vector<32x32xf32>, vector<32x32xf32>, vector<32x32xf32> -> vector<32x32xf32>
    %181 = arith.addf %155, %180 : vector<32x32xf32>
    %182 = arith.addf %54, %181 : vector<32x32xf32>
    %183 = vector.extract_strided_slice %17 {offsets = [9, 0], sizes = [1, 32], strides = [1, 1]} : vector<32x128xf32> to vector<1x32xf32>
    %184 = vector.broadcast %183 : vector<1x32xf32> to vector<32x32xf32>
    %185 = arith.addf %182, %184 : vector<32x32xf32>
    %186 = vector.extract_strided_slice %17 {offsets = [10, 0], sizes = [1, 32], strides = [1, 1]} : vector<32x128xf32> to vector<1x32xf32>
    %187 = vector.extract_strided_slice %17 {offsets = [11, 0], sizes = [1, 32], strides = [1, 1]} : vector<32x128xf32> to vector<1x32xf32>
    %cst_87 = arith.constant dense<0.000000e+00> : vector<32xf32>
    %188 = vector.multi_reduction <add>, %185, %cst_87 [1] : vector<32x32xf32> to vector<32xf32>
    %189 = vector.shape_cast %188 : vector<32xf32> to vector<32x1xf32>
    %cst_88 = arith.constant 3.200000e+01 : f32
    %190 = vector.broadcast %cst_88 : f32 to vector<32x1xf32>
    %191 = arith.divf %189, %190 : vector<32x1xf32>
    %192 = vector.broadcast %191 : vector<32x1xf32> to vector<32x32xf32>
    %193 = arith.subf %185, %192 : vector<32x32xf32>
    %194 = arith.mulf %193, %193 : vector<32x32xf32>
    %cst_89 = arith.constant dense<0.000000e+00> : vector<32xf32>
    %195 = vector.multi_reduction <add>, %194, %cst_89 [1] : vector<32x32xf32> to vector<32xf32>
    %196 = vector.shape_cast %195 : vector<32xf32> to vector<32x1xf32>
    %cst_90 = arith.constant 3.200000e+01 : f32
    %197 = vector.broadcast %cst_90 : f32 to vector<32x1xf32>
    %198 = arith.divf %196, %197 : vector<32x1xf32>
    %199 = vector.broadcast %191 : vector<32x1xf32> to vector<32x32xf32>
    %200 = arith.subf %185, %199 : vector<32x32xf32>
    %cst_91 = arith.constant 9.99999974E-6 : f32
    %201 = vector.broadcast %cst_91 : f32 to vector<32x1xf32>
    %202 = arith.addf %198, %201 : vector<32x1xf32>
    %203 = math.rsqrt %202 : vector<32x1xf32>
    %204 = vector.broadcast %203 : vector<32x1xf32> to vector<32x32xf32>
    %205 = arith.mulf %200, %204 : vector<32x32xf32>
    %206 = vector.broadcast %186 : vector<1x32xf32> to vector<32x32xf32>
    %207 = arith.mulf %205, %206 : vector<32x32xf32>
    %208 = vector.broadcast %187 : vector<1x32xf32> to vector<32x32xf32>
    %209 = arith.addf %207, %208 : vector<32x32xf32>
    %210 = vector.extract_strided_slice %12 {offsets = [0, 0, 0], sizes = [1, 32, 64], strides = [1, 1, 1]} : vector<2x32x64xf32> to vector<1x32x64xf32>
    %211 = vector.shape_cast %210 : vector<1x32x64xf32> to vector<32x64xf32>
    %cst_92 = arith.constant dense<0.000000e+00> : vector<32x64xf32>
    %212 = tpu.matmul %209, %211, %cst_92 {dimension_numbers = #tpu.dot_dimension_numbers<[1], [0], [0], [1], [0, 0, 1, 1], [], []>} : vector<32x32xf32>, vector<32x64xf32>, vector<32x64xf32> -> vector<32x64xf32>
    %213 = vector.extract_strided_slice %17 {offsets = [12, 0], sizes = [1, 64], strides = [1, 1]} : vector<32x128xf32> to vector<1x64xf32>
    %214 = vector.broadcast %213 : vector<1x64xf32> to vector<32x64xf32>
    %215 = arith.addf %212, %214 : vector<32x64xf32>
    %216 = arith.mulf %215, %215 : vector<32x64xf32>
    %217 = arith.mulf %215, %216 : vector<32x64xf32>
    %cst_93 = arith.constant 4.471500e-02 : f32
    %218 = vector.broadcast %cst_93 : f32 to vector<32x64xf32>
    %219 = arith.mulf %218, %217 : vector<32x64xf32>
    %220 = arith.addf %215, %219 : vector<32x64xf32>
    %cst_94 = arith.constant 0.797884583 : f32
    %221 = vector.broadcast %cst_94 : f32 to vector<32x64xf32>
    %222 = arith.mulf %221, %220 : vector<32x64xf32>
    %223 = math.tanh %222 : vector<32x64xf32>
    %cst_95 = arith.constant 1.000000e+00 : f32
    %224 = vector.broadcast %cst_95 : f32 to vector<32x64xf32>
    %225 = arith.addf %224, %223 : vector<32x64xf32>
    %cst_96 = arith.constant 5.000000e-01 : f32
    %226 = vector.broadcast %cst_96 : f32 to vector<32x64xf32>
    %227 = arith.mulf %226, %225 : vector<32x64xf32>
    %228 = arith.mulf %215, %227 : vector<32x64xf32>
    %229 = vector.extract_strided_slice %13 {offsets = [0, 0, 0], sizes = [1, 64, 32], strides = [1, 1, 1]} : vector<2x64x32xf32> to vector<1x64x32xf32>
    %230 = vector.shape_cast %229 : vector<1x64x32xf32> to vector<64x32xf32>
    %cst_97 = arith.constant dense<0.000000e+00> : vector<32x32xf32>
    %231 = tpu.matmul %228, %230, %cst_97 {dimension_numbers = #tpu.dot_dimension_numbers<[1], [0], [0], [1], [0, 0, 1, 1], [], []>} : vector<32x64xf32>, vector<64x32xf32>, vector<32x32xf32> -> vector<32x32xf32>
    %232 = arith.addf %185, %231 : vector<32x32xf32>
    %233 = vector.extract_strided_slice %17 {offsets = [13, 0], sizes = [1, 32], strides = [1, 1]} : vector<32x128xf32> to vector<1x32xf32>
    %234 = vector.broadcast %233 : vector<1x32xf32> to vector<32x32xf32>
    %235 = arith.addf %232, %234 : vector<32x32xf32>
    %236 = vector.extract_strided_slice %17 {offsets = [14, 0], sizes = [1, 32], strides = [1, 1]} : vector<32x128xf32> to vector<1x32xf32>
    %237 = vector.extract_strided_slice %17 {offsets = [15, 0], sizes = [1, 32], strides = [1, 1]} : vector<32x128xf32> to vector<1x32xf32>
    %cst_98 = arith.constant dense<0.000000e+00> : vector<32xf32>
    %238 = vector.multi_reduction <add>, %235, %cst_98 [1] : vector<32x32xf32> to vector<32xf32>
    %239 = vector.shape_cast %238 : vector<32xf32> to vector<32x1xf32>
    %cst_99 = arith.constant 3.200000e+01 : f32
    %240 = vector.broadcast %cst_99 : f32 to vector<32x1xf32>
    %241 = arith.divf %239, %240 : vector<32x1xf32>
    %242 = vector.broadcast %241 : vector<32x1xf32> to vector<32x32xf32>
    %243 = arith.subf %235, %242 : vector<32x32xf32>
    %244 = arith.mulf %243, %243 : vector<32x32xf32>
    %cst_100 = arith.constant dense<0.000000e+00> : vector<32xf32>
    %245 = vector.multi_reduction <add>, %244, %cst_100 [1] : vector<32x32xf32> to vector<32xf32>
    %246 = vector.shape_cast %245 : vector<32xf32> to vector<32x1xf32>
    %cst_101 = arith.constant 3.200000e+01 : f32
    %247 = vector.broadcast %cst_101 : f32 to vector<32x1xf32>
    %248 = arith.divf %246, %247 : vector<32x1xf32>
    %249 = vector.broadcast %241 : vector<32x1xf32> to vector<32x32xf32>
    %250 = arith.subf %235, %249 : vector<32x32xf32>
    %cst_102 = arith.constant 9.99999974E-6 : f32
    %251 = vector.broadcast %cst_102 : f32 to vector<32x1xf32>
    %252 = arith.addf %248, %251 : vector<32x1xf32>
    %253 = math.rsqrt %252 : vector<32x1xf32>
    %254 = vector.broadcast %253 : vector<32x1xf32> to vector<32x32xf32>
    %255 = arith.mulf %250, %254 : vector<32x32xf32>
    %256 = vector.broadcast %236 : vector<1x32xf32> to vector<32x32xf32>
    %257 = arith.mulf %255, %256 : vector<32x32xf32>
    %258 = vector.broadcast %237 : vector<1x32xf32> to vector<32x32xf32>
    %259 = arith.addf %257, %258 : vector<32x32xf32>
    %260 = vector.extract_strided_slice %9 {offsets = [4, 0, 0], sizes = [1, 32, 8], strides = [1, 1, 1]} : vector<8x32x8xf32> to vector<1x32x8xf32>
    %261 = vector.shape_cast %260 : vector<1x32x8xf32> to vector<32x8xf32>
    %cst_103 = arith.constant dense<0.000000e+00> : vector<32x8xf32>
    %262 = tpu.matmul %259, %261, %cst_103 {dimension_numbers = #tpu.dot_dimension_numbers<[1], [0], [0], [1], [0, 0, 1, 1], [], []>} : vector<32x32xf32>, vector<32x8xf32>, vector<32x8xf32> -> vector<32x8xf32>
    %263 = vector.extract_strided_slice %17 {offsets = [16, 0], sizes = [1, 8], strides = [1, 1]} : vector<32x128xf32> to vector<1x8xf32>
    %264 = vector.broadcast %263 : vector<1x8xf32> to vector<32x8xf32>
    %265 = arith.addf %262, %264 : vector<32x8xf32>
    %266 = vector.extract_strided_slice %10 {offsets = [4, 0, 0], sizes = [1, 32, 8], strides = [1, 1, 1]} : vector<8x32x8xf32> to vector<1x32x8xf32>
    %267 = vector.shape_cast %266 : vector<1x32x8xf32> to vector<32x8xf32>
    %cst_104 = arith.constant dense<0.000000e+00> : vector<32x8xf32>
    %268 = tpu.matmul %259, %267, %cst_104 {dimension_numbers = #tpu.dot_dimension_numbers<[1], [0], [0], [1], [0, 0, 1, 1], [], []>} : vector<32x32xf32>, vector<32x8xf32>, vector<32x8xf32> -> vector<32x8xf32>
    %cst_105 = arith.constant dense<0.000000e+00> : vector<32x32xf32>
    %269 = tpu.matmul %265, %268, %cst_105 {dimension_numbers = #tpu.dot_dimension_numbers<[1], [1], [0], [0], [0, 0, 1, 0], [], []>} : vector<32x8xf32>, vector<32x8xf32>, vector<32x32xf32> -> vector<32x32xf32>
    %270 = arith.addf %269, %7 : vector<32x32xf32>
    %cst_106 = arith.constant dense<0xFF800000> : vector<32xf32>
    %271 = vector.multi_reduction <maximumf>, %270, %cst_106 [1] : vector<32x32xf32> to vector<32xf32>
    %272 = vector.shape_cast %271 : vector<32xf32> to vector<32x1xf32>
    %273 = vector.broadcast %272 : vector<32x1xf32> to vector<32x32xf32>
    %274 = arith.subf %270, %273 : vector<32x32xf32>
    %275 = math.exp %274 : vector<32x32xf32>
    %cst_107 = arith.constant dense<0.000000e+00> : vector<32xf32>
    %276 = vector.multi_reduction <add>, %275, %cst_107 [1] : vector<32x32xf32> to vector<32xf32>
    %277 = vector.shape_cast %276 : vector<32xf32> to vector<32x1xf32>
    %278 = tpu.reciprocal %277 {approx = true} : vector<32x1xf32> -> vector<32x1xf32>
    %279 = vector.broadcast %278 : vector<32x1xf32> to vector<32x32xf32>
    %280 = arith.mulf %275, %279 : vector<32x32xf32>
    %281 = vector.extract_strided_slice %11 {offsets = [4, 0, 0], sizes = [1, 32, 32], strides = [1, 1, 1]} : vector<8x32x32xf32> to vector<1x32x32xf32>
    %282 = vector.shape_cast %281 : vector<1x32x32xf32> to vector<32x32xf32>
    %cst_108 = arith.constant dense<0.000000e+00> : vector<32x32xf32>
    %283 = tpu.matmul %259, %282, %cst_108 {dimension_numbers = #tpu.dot_dimension_numbers<[1], [0], [0], [1], [0, 0, 1, 1], [], []>} : vector<32x32xf32>, vector<32x32xf32>, vector<32x32xf32> -> vector<32x32xf32>
    %cst_109 = arith.constant dense<0.000000e+00> : vector<32x32xf32>
    %284 = tpu.matmul %280, %283, %cst_109 {dimension_numbers = #tpu.dot_dimension_numbers<[1], [0], [0], [1], [0, 0, 1, 1], [], []>} : vector<32x32xf32>, vector<32x32xf32>, vector<32x32xf32> -> vector<32x32xf32>
    %285 = vector.extract_strided_slice %9 {offsets = [5, 0, 0], sizes = [1, 32, 8], strides = [1, 1, 1]} : vector<8x32x8xf32> to vector<1x32x8xf32>
    %286 = vector.shape_cast %285 : vector<1x32x8xf32> to vector<32x8xf32>
    %cst_110 = arith.constant dense<0.000000e+00> : vector<32x8xf32>
    %287 = tpu.matmul %259, %286, %cst_110 {dimension_numbers = #tpu.dot_dimension_numbers<[1], [0], [0], [1], [0, 0, 1, 1], [], []>} : vector<32x32xf32>, vector<32x8xf32>, vector<32x8xf32> -> vector<32x8xf32>
    %288 = vector.extract_strided_slice %17 {offsets = [17, 0], sizes = [1, 8], strides = [1, 1]} : vector<32x128xf32> to vector<1x8xf32>
    %289 = vector.broadcast %288 : vector<1x8xf32> to vector<32x8xf32>
    %290 = arith.addf %287, %289 : vector<32x8xf32>
    %291 = vector.extract_strided_slice %10 {offsets = [5, 0, 0], sizes = [1, 32, 8], strides = [1, 1, 1]} : vector<8x32x8xf32> to vector<1x32x8xf32>
    %292 = vector.shape_cast %291 : vector<1x32x8xf32> to vector<32x8xf32>
    %cst_111 = arith.constant dense<0.000000e+00> : vector<32x8xf32>
    %293 = tpu.matmul %259, %292, %cst_111 {dimension_numbers = #tpu.dot_dimension_numbers<[1], [0], [0], [1], [0, 0, 1, 1], [], []>} : vector<32x32xf32>, vector<32x8xf32>, vector<32x8xf32> -> vector<32x8xf32>
    %cst_112 = arith.constant dense<0.000000e+00> : vector<32x32xf32>
    %294 = tpu.matmul %290, %293, %cst_112 {dimension_numbers = #tpu.dot_dimension_numbers<[1], [1], [0], [0], [0, 0, 1, 0], [], []>} : vector<32x8xf32>, vector<32x8xf32>, vector<32x32xf32> -> vector<32x32xf32>
    %295 = arith.addf %294, %7 : vector<32x32xf32>
    %cst_113 = arith.constant dense<0xFF800000> : vector<32xf32>
    %296 = vector.multi_reduction <maximumf>, %295, %cst_113 [1] : vector<32x32xf32> to vector<32xf32>
    %297 = vector.shape_cast %296 : vector<32xf32> to vector<32x1xf32>
    %298 = vector.broadcast %297 : vector<32x1xf32> to vector<32x32xf32>
    %299 = arith.subf %295, %298 : vector<32x32xf32>
    %300 = math.exp %299 : vector<32x32xf32>
    %cst_114 = arith.constant dense<0.000000e+00> : vector<32xf32>
    %301 = vector.multi_reduction <add>, %300, %cst_114 [1] : vector<32x32xf32> to vector<32xf32>
    %302 = vector.shape_cast %301 : vector<32xf32> to vector<32x1xf32>
    %303 = tpu.reciprocal %302 {approx = true} : vector<32x1xf32> -> vector<32x1xf32>
    %304 = vector.broadcast %303 : vector<32x1xf32> to vector<32x32xf32>
    %305 = arith.mulf %300, %304 : vector<32x32xf32>
    %306 = vector.extract_strided_slice %11 {offsets = [5, 0, 0], sizes = [1, 32, 32], strides = [1, 1, 1]} : vector<8x32x32xf32> to vector<1x32x32xf32>
    %307 = vector.shape_cast %306 : vector<1x32x32xf32> to vector<32x32xf32>
    %cst_115 = arith.constant dense<0.000000e+00> : vector<32x32xf32>
    %308 = tpu.matmul %259, %307, %cst_115 {dimension_numbers = #tpu.dot_dimension_numbers<[1], [0], [0], [1], [0, 0, 1, 1], [], []>} : vector<32x32xf32>, vector<32x32xf32>, vector<32x32xf32> -> vector<32x32xf32>
    %cst_116 = arith.constant dense<0.000000e+00> : vector<32x32xf32>
    %309 = tpu.matmul %305, %308, %cst_116 {dimension_numbers = #tpu.dot_dimension_numbers<[1], [0], [0], [1], [0, 0, 1, 1], [], []>} : vector<32x32xf32>, vector<32x32xf32>, vector<32x32xf32> -> vector<32x32xf32>
    %310 = arith.addf %284, %309 : vector<32x32xf32>
    %311 = vector.extract_strided_slice %9 {offsets = [6, 0, 0], sizes = [1, 32, 8], strides = [1, 1, 1]} : vector<8x32x8xf32> to vector<1x32x8xf32>
    %312 = vector.shape_cast %311 : vector<1x32x8xf32> to vector<32x8xf32>
    %cst_117 = arith.constant dense<0.000000e+00> : vector<32x8xf32>
    %313 = tpu.matmul %259, %312, %cst_117 {dimension_numbers = #tpu.dot_dimension_numbers<[1], [0], [0], [1], [0, 0, 1, 1], [], []>} : vector<32x32xf32>, vector<32x8xf32>, vector<32x8xf32> -> vector<32x8xf32>
    %314 = vector.extract_strided_slice %17 {offsets = [18, 0], sizes = [1, 8], strides = [1, 1]} : vector<32x128xf32> to vector<1x8xf32>
    %315 = vector.broadcast %314 : vector<1x8xf32> to vector<32x8xf32>
    %316 = arith.addf %313, %315 : vector<32x8xf32>
    %317 = vector.extract_strided_slice %10 {offsets = [6, 0, 0], sizes = [1, 32, 8], strides = [1, 1, 1]} : vector<8x32x8xf32> to vector<1x32x8xf32>
    %318 = vector.shape_cast %317 : vector<1x32x8xf32> to vector<32x8xf32>
    %cst_118 = arith.constant dense<0.000000e+00> : vector<32x8xf32>
    %319 = tpu.matmul %259, %318, %cst_118 {dimension_numbers = #tpu.dot_dimension_numbers<[1], [0], [0], [1], [0, 0, 1, 1], [], []>} : vector<32x32xf32>, vector<32x8xf32>, vector<32x8xf32> -> vector<32x8xf32>
    %cst_119 = arith.constant dense<0.000000e+00> : vector<32x32xf32>
    %320 = tpu.matmul %316, %319, %cst_119 {dimension_numbers = #tpu.dot_dimension_numbers<[1], [1], [0], [0], [0, 0, 1, 0], [], []>} : vector<32x8xf32>, vector<32x8xf32>, vector<32x32xf32> -> vector<32x32xf32>
    %321 = arith.addf %320, %7 : vector<32x32xf32>
    %cst_120 = arith.constant dense<0xFF800000> : vector<32xf32>
    %322 = vector.multi_reduction <maximumf>, %321, %cst_120 [1] : vector<32x32xf32> to vector<32xf32>
    %323 = vector.shape_cast %322 : vector<32xf32> to vector<32x1xf32>
    %324 = vector.broadcast %323 : vector<32x1xf32> to vector<32x32xf32>
    %325 = arith.subf %321, %324 : vector<32x32xf32>
    %326 = math.exp %325 : vector<32x32xf32>
    %cst_121 = arith.constant dense<0.000000e+00> : vector<32xf32>
    %327 = vector.multi_reduction <add>, %326, %cst_121 [1] : vector<32x32xf32> to vector<32xf32>
    %328 = vector.shape_cast %327 : vector<32xf32> to vector<32x1xf32>
    %329 = tpu.reciprocal %328 {approx = true} : vector<32x1xf32> -> vector<32x1xf32>
    %330 = vector.broadcast %329 : vector<32x1xf32> to vector<32x32xf32>
    %331 = arith.mulf %326, %330 : vector<32x32xf32>
    %332 = vector.extract_strided_slice %11 {offsets = [6, 0, 0], sizes = [1, 32, 32], strides = [1, 1, 1]} : vector<8x32x32xf32> to vector<1x32x32xf32>
    %333 = vector.shape_cast %332 : vector<1x32x32xf32> to vector<32x32xf32>
    %cst_122 = arith.constant dense<0.000000e+00> : vector<32x32xf32>
    %334 = tpu.matmul %259, %333, %cst_122 {dimension_numbers = #tpu.dot_dimension_numbers<[1], [0], [0], [1], [0, 0, 1, 1], [], []>} : vector<32x32xf32>, vector<32x32xf32>, vector<32x32xf32> -> vector<32x32xf32>
    %cst_123 = arith.constant dense<0.000000e+00> : vector<32x32xf32>
    %335 = tpu.matmul %331, %334, %cst_123 {dimension_numbers = #tpu.dot_dimension_numbers<[1], [0], [0], [1], [0, 0, 1, 1], [], []>} : vector<32x32xf32>, vector<32x32xf32>, vector<32x32xf32> -> vector<32x32xf32>
    %336 = arith.addf %310, %335 : vector<32x32xf32>
    %337 = vector.extract_strided_slice %9 {offsets = [7, 0, 0], sizes = [1, 32, 8], strides = [1, 1, 1]} : vector<8x32x8xf32> to vector<1x32x8xf32>
    %338 = vector.shape_cast %337 : vector<1x32x8xf32> to vector<32x8xf32>
    %cst_124 = arith.constant dense<0.000000e+00> : vector<32x8xf32>
    %339 = tpu.matmul %259, %338, %cst_124 {dimension_numbers = #tpu.dot_dimension_numbers<[1], [0], [0], [1], [0, 0, 1, 1], [], []>} : vector<32x32xf32>, vector<32x8xf32>, vector<32x8xf32> -> vector<32x8xf32>
    %340 = vector.extract_strided_slice %17 {offsets = [19, 0], sizes = [1, 8], strides = [1, 1]} : vector<32x128xf32> to vector<1x8xf32>
    %341 = vector.broadcast %340 : vector<1x8xf32> to vector<32x8xf32>
    %342 = arith.addf %339, %341 : vector<32x8xf32>
    %343 = vector.extract_strided_slice %10 {offsets = [7, 0, 0], sizes = [1, 32, 8], strides = [1, 1, 1]} : vector<8x32x8xf32> to vector<1x32x8xf32>
    %344 = vector.shape_cast %343 : vector<1x32x8xf32> to vector<32x8xf32>
    %cst_125 = arith.constant dense<0.000000e+00> : vector<32x8xf32>
    %345 = tpu.matmul %259, %344, %cst_125 {dimension_numbers = #tpu.dot_dimension_numbers<[1], [0], [0], [1], [0, 0, 1, 1], [], []>} : vector<32x32xf32>, vector<32x8xf32>, vector<32x8xf32> -> vector<32x8xf32>
    %cst_126 = arith.constant dense<0.000000e+00> : vector<32x32xf32>
    %346 = tpu.matmul %342, %345, %cst_126 {dimension_numbers = #tpu.dot_dimension_numbers<[1], [1], [0], [0], [0, 0, 1, 0], [], []>} : vector<32x8xf32>, vector<32x8xf32>, vector<32x32xf32> -> vector<32x32xf32>
    %347 = arith.addf %346, %7 : vector<32x32xf32>
    %cst_127 = arith.constant dense<0xFF800000> : vector<32xf32>
    %348 = vector.multi_reduction <maximumf>, %347, %cst_127 [1] : vector<32x32xf32> to vector<32xf32>
    %349 = vector.shape_cast %348 : vector<32xf32> to vector<32x1xf32>
    %350 = vector.broadcast %349 : vector<32x1xf32> to vector<32x32xf32>
    %351 = arith.subf %347, %350 : vector<32x32xf32>
    %352 = math.exp %351 : vector<32x32xf32>
    %cst_128 = arith.constant dense<0.000000e+00> : vector<32xf32>
    %353 = vector.multi_reduction <add>, %352, %cst_128 [1] : vector<32x32xf32> to vector<32xf32>
    %354 = vector.shape_cast %353 : vector<32xf32> to vector<32x1xf32>
    %355 = tpu.reciprocal %354 {approx = true} : vector<32x1xf32> -> vector<32x1xf32>
    %356 = vector.broadcast %355 : vector<32x1xf32> to vector<32x32xf32>
    %357 = arith.mulf %352, %356 : vector<32x32xf32>
    %358 = vector.extract_strided_slice %11 {offsets = [7, 0, 0], sizes = [1, 32, 32], strides = [1, 1, 1]} : vector<8x32x32xf32> to vector<1x32x32xf32>
    %359 = vector.shape_cast %358 : vector<1x32x32xf32> to vector<32x32xf32>
    %cst_129 = arith.constant dense<0.000000e+00> : vector<32x32xf32>
    %360 = tpu.matmul %259, %359, %cst_129 {dimension_numbers = #tpu.dot_dimension_numbers<[1], [0], [0], [1], [0, 0, 1, 1], [], []>} : vector<32x32xf32>, vector<32x32xf32>, vector<32x32xf32> -> vector<32x32xf32>
    %cst_130 = arith.constant dense<0.000000e+00> : vector<32x32xf32>
    %361 = tpu.matmul %357, %360, %cst_130 {dimension_numbers = #tpu.dot_dimension_numbers<[1], [0], [0], [1], [0, 0, 1, 1], [], []>} : vector<32x32xf32>, vector<32x32xf32>, vector<32x32xf32> -> vector<32x32xf32>
    %362 = arith.addf %336, %361 : vector<32x32xf32>
    %363 = arith.addf %235, %362 : vector<32x32xf32>
    %364 = vector.extract_strided_slice %17 {offsets = [20, 0], sizes = [1, 32], strides = [1, 1]} : vector<32x128xf32> to vector<1x32xf32>
    %365 = vector.broadcast %364 : vector<1x32xf32> to vector<32x32xf32>
    %366 = arith.addf %363, %365 : vector<32x32xf32>
    %367 = vector.extract_strided_slice %17 {offsets = [21, 0], sizes = [1, 32], strides = [1, 1]} : vector<32x128xf32> to vector<1x32xf32>
    %368 = vector.extract_strided_slice %17 {offsets = [22, 0], sizes = [1, 32], strides = [1, 1]} : vector<32x128xf32> to vector<1x32xf32>
    %cst_131 = arith.constant dense<0.000000e+00> : vector<32xf32>
    %369 = vector.multi_reduction <add>, %366, %cst_131 [1] : vector<32x32xf32> to vector<32xf32>
    %370 = vector.shape_cast %369 : vector<32xf32> to vector<32x1xf32>
    %cst_132 = arith.constant 3.200000e+01 : f32
    %371 = vector.broadcast %cst_132 : f32 to vector<32x1xf32>
    %372 = arith.divf %370, %371 : vector<32x1xf32>
    %373 = vector.broadcast %372 : vector<32x1xf32> to vector<32x32xf32>
    %374 = arith.subf %366, %373 : vector<32x32xf32>
    %375 = arith.mulf %374, %374 : vector<32x32xf32>
    %cst_133 = arith.constant dense<0.000000e+00> : vector<32xf32>
    %376 = vector.multi_reduction <add>, %375, %cst_133 [1] : vector<32x32xf32> to vector<32xf32>
    %377 = vector.shape_cast %376 : vector<32xf32> to vector<32x1xf32>
    %cst_134 = arith.constant 3.200000e+01 : f32
    %378 = vector.broadcast %cst_134 : f32 to vector<32x1xf32>
    %379 = arith.divf %377, %378 : vector<32x1xf32>
    %380 = vector.broadcast %372 : vector<32x1xf32> to vector<32x32xf32>
    %381 = arith.subf %366, %380 : vector<32x32xf32>
    %cst_135 = arith.constant 9.99999974E-6 : f32
    %382 = vector.broadcast %cst_135 : f32 to vector<32x1xf32>
    %383 = arith.addf %379, %382 : vector<32x1xf32>
    %384 = math.rsqrt %383 : vector<32x1xf32>
    %385 = vector.broadcast %384 : vector<32x1xf32> to vector<32x32xf32>
    %386 = arith.mulf %381, %385 : vector<32x32xf32>
    %387 = vector.broadcast %367 : vector<1x32xf32> to vector<32x32xf32>
    %388 = arith.mulf %386, %387 : vector<32x32xf32>
    %389 = vector.broadcast %368 : vector<1x32xf32> to vector<32x32xf32>
    %390 = arith.addf %388, %389 : vector<32x32xf32>
    %391 = vector.extract_strided_slice %12 {offsets = [1, 0, 0], sizes = [1, 32, 64], strides = [1, 1, 1]} : vector<2x32x64xf32> to vector<1x32x64xf32>
    %392 = vector.shape_cast %391 : vector<1x32x64xf32> to vector<32x64xf32>
    %cst_136 = arith.constant dense<0.000000e+00> : vector<32x64xf32>
    %393 = tpu.matmul %390, %392, %cst_136 {dimension_numbers = #tpu.dot_dimension_numbers<[1], [0], [0], [1], [0, 0, 1, 1], [], []>} : vector<32x32xf32>, vector<32x64xf32>, vector<32x64xf32> -> vector<32x64xf32>
    %394 = vector.extract_strided_slice %17 {offsets = [23, 0], sizes = [1, 64], strides = [1, 1]} : vector<32x128xf32> to vector<1x64xf32>
    %395 = vector.broadcast %394 : vector<1x64xf32> to vector<32x64xf32>
    %396 = arith.addf %393, %395 : vector<32x64xf32>
    %397 = arith.mulf %396, %396 : vector<32x64xf32>
    %398 = arith.mulf %396, %397 : vector<32x64xf32>
    %cst_137 = arith.constant 4.471500e-02 : f32
    %399 = vector.broadcast %cst_137 : f32 to vector<32x64xf32>
    %400 = arith.mulf %399, %398 : vector<32x64xf32>
    %401 = arith.addf %396, %400 : vector<32x64xf32>
    %cst_138 = arith.constant 0.797884583 : f32
    %402 = vector.broadcast %cst_138 : f32 to vector<32x64xf32>
    %403 = arith.mulf %402, %401 : vector<32x64xf32>
    %404 = math.tanh %403 : vector<32x64xf32>
    %cst_139 = arith.constant 1.000000e+00 : f32
    %405 = vector.broadcast %cst_139 : f32 to vector<32x64xf32>
    %406 = arith.addf %405, %404 : vector<32x64xf32>
    %cst_140 = arith.constant 5.000000e-01 : f32
    %407 = vector.broadcast %cst_140 : f32 to vector<32x64xf32>
    %408 = arith.mulf %407, %406 : vector<32x64xf32>
    %409 = arith.mulf %396, %408 : vector<32x64xf32>
    %410 = vector.extract_strided_slice %13 {offsets = [1, 0, 0], sizes = [1, 64, 32], strides = [1, 1, 1]} : vector<2x64x32xf32> to vector<1x64x32xf32>
    %411 = vector.shape_cast %410 : vector<1x64x32xf32> to vector<64x32xf32>
    %cst_141 = arith.constant dense<0.000000e+00> : vector<32x32xf32>
    %412 = tpu.matmul %409, %411, %cst_141 {dimension_numbers = #tpu.dot_dimension_numbers<[1], [0], [0], [1], [0, 0, 1, 1], [], []>} : vector<32x64xf32>, vector<64x32xf32>, vector<32x32xf32> -> vector<32x32xf32>
    %413 = arith.addf %366, %412 : vector<32x32xf32>
    %414 = vector.extract_strided_slice %17 {offsets = [24, 0], sizes = [1, 32], strides = [1, 1]} : vector<32x128xf32> to vector<1x32xf32>
    %415 = vector.broadcast %414 : vector<1x32xf32> to vector<32x32xf32>
    %416 = arith.addf %413, %415 : vector<32x32xf32>
    %417 = vector.extract_strided_slice %416 {offsets = [0, 0], sizes = [8, 32], strides = [1, 1]} : vector<32x32xf32> to vector<8x32xf32>
    %418 = vector.extract_strided_slice %17 {offsets = [25, 0], sizes = [1, 32], strides = [1, 1]} : vector<32x128xf32> to vector<1x32xf32>
    %419 = vector.extract_strided_slice %17 {offsets = [26, 0], sizes = [1, 32], strides = [1, 1]} : vector<32x128xf32> to vector<1x32xf32>
    %cst_142 = arith.constant dense<0.000000e+00> : vector<8xf32>
    %420 = vector.multi_reduction <add>, %417, %cst_142 [1] : vector<8x32xf32> to vector<8xf32>
    %421 = vector.shape_cast %420 : vector<8xf32> to vector<8x1xf32>
    %cst_143 = arith.constant 3.200000e+01 : f32
    %422 = vector.broadcast %cst_143 : f32 to vector<8x1xf32>
    %423 = arith.divf %421, %422 : vector<8x1xf32>
    %424 = vector.broadcast %423 : vector<8x1xf32> to vector<8x32xf32>
    %425 = arith.subf %417, %424 : vector<8x32xf32>
    %426 = arith.mulf %425, %425 : vector<8x32xf32>
    %cst_144 = arith.constant dense<0.000000e+00> : vector<8xf32>
    %427 = vector.multi_reduction <add>, %426, %cst_144 [1] : vector<8x32xf32> to vector<8xf32>
    %428 = vector.shape_cast %427 : vector<8xf32> to vector<8x1xf32>
    %cst_145 = arith.constant 3.200000e+01 : f32
    %429 = vector.broadcast %cst_145 : f32 to vector<8x1xf32>
    %430 = arith.divf %428, %429 : vector<8x1xf32>
    %431 = vector.broadcast %423 : vector<8x1xf32> to vector<8x32xf32>
    %432 = arith.subf %417, %431 : vector<8x32xf32>
    %cst_146 = arith.constant 9.99999974E-6 : f32
    %433 = vector.broadcast %cst_146 : f32 to vector<8x1xf32>
    %434 = arith.addf %430, %433 : vector<8x1xf32>
    %435 = math.rsqrt %434 : vector<8x1xf32>
    %436 = vector.broadcast %435 : vector<8x1xf32> to vector<8x32xf32>
    %437 = arith.mulf %432, %436 : vector<8x32xf32>
    %438 = vector.broadcast %418 : vector<1x32xf32> to vector<8x32xf32>
    %439 = arith.mulf %437, %438 : vector<8x32xf32>
    %440 = vector.broadcast %419 : vector<1x32xf32> to vector<8x32xf32>
    %441 = arith.addf %439, %440 : vector<8x32xf32>
    %cst_147 = arith.constant dense<0.000000e+00> : vector<8x32xf32>
    %442 = tpu.matmul %441, %14, %cst_147 {dimension_numbers = #tpu.dot_dimension_numbers<[1], [0], [0], [1], [0, 0, 1, 1], [], []>} : vector<8x32xf32>, vector<32x32xf32>, vector<8x32xf32> -> vector<8x32xf32>
    %443 = vector.extract_strided_slice %17 {offsets = [27, 0], sizes = [1, 32], strides = [1, 1]} : vector<32x128xf32> to vector<1x32xf32>
    %444 = vector.broadcast %443 : vector<1x32xf32> to vector<8x32xf32>
    %445 = arith.addf %442, %444 : vector<8x32xf32>
    %cst_148 = arith.constant 0.000000e+00 : f32
    %446 = vector.broadcast %cst_148 : f32 to vector<8x32xf32>
    %447 = arith.maximumf %445, %446 : vector<8x32xf32>
    %cst_149 = arith.constant dense<0.000000e+00> : vector<8x16xf32>
    %448 = tpu.matmul %447, %15, %cst_149 {dimension_numbers = #tpu.dot_dimension_numbers<[1], [0], [0], [1], [0, 0, 1, 1], [], []>} : vector<8x32xf32>, vector<32x16xf32>, vector<8x16xf32> -> vector<8x16xf32>
    %449 = vector.extract_strided_slice %17 {offsets = [28, 0], sizes = [1, 16], strides = [1, 1]} : vector<32x128xf32> to vector<1x16xf32>
    %450 = vector.broadcast %449 : vector<1x16xf32> to vector<8x16xf32>
    %451 = arith.addf %448, %450 : vector<8x16xf32>
    %cst_150 = arith.constant 0.000000e+00 : f32
    %452 = vector.broadcast %cst_150 : f32 to vector<8x16xf32>
    %453 = arith.maximumf %451, %452 : vector<8x16xf32>
    %cst_151 = arith.constant dense<0.000000e+00> : vector<8x3xf32>
    %454 = tpu.matmul %453, %16, %cst_151 {dimension_numbers = #tpu.dot_dimension_numbers<[1], [0], [0], [1], [0, 0, 1, 1], [], []>} : vector<8x16xf32>, vector<16x3xf32>, vector<8x3xf32> -> vector<8x3xf32>
    %455 = vector.extract_strided_slice %17 {offsets = [29, 0], sizes = [1, 3], strides = [1, 1]} : vector<32x128xf32> to vector<1x3xf32>
    %456 = vector.broadcast %455 : vector<1x3xf32> to vector<8x3xf32>
    %457 = arith.addf %454, %456 : vector<8x3xf32>
    %c0_152 = arith.constant 0 : index
    %c0_153 = arith.constant 0 : index
    %458 = vector.load %arg18[%c0_152, %c0_153] : memref<8x3xf32, #tpu.memory_space<vmem>>, vector<8x3xf32>
    tpu.vector_store %arg18[%c0_152, %c0_153], %457 {strides = array<i32>} : memref<8x3xf32, #tpu.memory_space<vmem>>, vector<8x3xf32>,
    return
  }
}

</mosaic_0001>

<bundles_post_ra>
// kernel: tpu_custom_call.1
= control target key start
LH: loop header
LB: loop body
LE: loop exit
PB: predicated region body
PF: predicated region fallthrough
CT: control target
= control target key end

     0   :  { %vm294_vm0 = vcmask 64512   ;;  %vm220_vm1 = vcmask 130048   ;;  %v8277_v12 = vmov 0.0|0.0   ;;  %vm8278_vm2 = vmmov 0   ;;  %s8280_s23 = smov 96   ;;  %s8281_s24 = smov 64   ;;  %s9818_s3 = inlined_call_operand.vmem [shape: f32[8,16], index: 3, kind: input, shape index: {}]   ;;  %s9819_s0 = inlined_call_operand.vmem [shape: f32[16,8], index: 0, kind: input, shape index: {}]   ;;  %s9820_s1 = inlined_call_operand.vmem [shape: f32[16,16], index: 1, kind: input, shape index: {}]   ;;  %s9821_s4 = inlined_call_operand.vmem [shape: f32[16,16], index: 4, kind: input, shape index: {}]   ;;  %s9822_s2 = inlined_call_operand.vmem [shape: f32[8,16], index: 2, kind: input, shape index: {}]   ;;  %s9823_s17 = inlined_call_operand.vmem [shape: f32[32,128], index: 17, kind: input, shape index: {}]   ;;  %s9824_s5 = inlined_call_operand.vmem [shape: f32[40,48], index: 5, kind: input, shape index: {}]   ;;  %s9825_s6 = inlined_call_operand.vmem [shape: f32[48,96], index: 6, kind: input, shape index: {}]   ;;  %s9826_s8 = inlined_call_operand.vmem [shape: f32[32,32], index: 8, kind: input, shape index: {}]   ;;  %s9827_s9 = inlined_call_operand.vmem [shape: f32[8,32,8], index: 9, kind: input, shape index: {}]   ;;  %s9828_s10 = inlined_call_operand.vmem [shape: f32[8,32,8], index: 10, kind: input, shape index: {}]   ;;  %s9829_s11 = inlined_call_operand.vmem [shape: f32[8,32,32], index: 11, kind: input, shape index: {}]   ;;  %s9830_s7 = inlined_call_operand.vmem [shape: f32[32,32], index: 7, kind: input, shape index: {}]   ;;  %s9831_s12 = inlined_call_operand.vmem [shape: f32[2,32,64], index: 12, kind: input, shape index: {}]   ;;  %s9832_s13 = inlined_call_operand.vmem [shape: f32[2,64,32], index: 13, kind: input, shape index: {}]   ;;  %s9833_s14 = inlined_call_operand.vmem [shape: f32[32,32], index: 14, kind: input, shape index: {}]   ;;  %s9834_s15 = inlined_call_operand.vmem [shape: f32[32,16], index: 15, kind: input, shape index: {}]   ;;  %s9835_s16 = inlined_call_operand.vmem [shape: f32[16,3], index: 16, kind: input, shape index: {}]   ;;  %s9836_s18 = inlined_call_operand.vmem [shape: f32[8,3], index: 18, kind: output, shape index: {}]  }
   0x1   :  { %9839 = sst [smem:[#allocation2_spill]] %s9818_s3  ;;  %v65_v8 = vld [vmem:[%s9821_s4] sm:$0xff]  ;;  %v66_v9 = vld [vmem:[%s9821_s4 + $0x8] sm:$0xff]  ;;  %7612 = vmatprep.subr.bf16.mxu0 %v8277_v12  ;;  %v8279_v13 = vmov 0.0   ;;  %v376_v15 = vlaneseq  ;;  %v69_v33 = vld [vmem:[%s9824_s5 + $0x10] sm:$0xff]  ;;  %vm1076_vm3 = vcmask 261120  }
   0x2   :  { %9840 = sst [smem:[#allocation3_spill]] %s9819_s0  ;;  %s9842_s29 = sld [smem:[#allocation2_spill]]  ;;  %v7622_v10 = vpack.c.bf16 %v66_v9, %v65_v8  ;;  %6874 = vmatprep.mubr.msk.f32.mxu0 %vm8278_vm2, %v8279_v13  ;;  %v63_v14 = vld [vmem:[%s9822_s2] sm:$0xff]  ;;  %v68_v32 = vld [vmem:[%s9824_s5 + $0x8] sm:$0xff]  ;;  %v70_v37 = vld [vmem:[%s9824_s5 + $0x18] sm:$0xff]  ;;  %vm991_vm4 = vcmask 392192  }
   0x3   :  { %9841 = sst [smem:[#allocation4_spill]] %s9820_s1  ;;  %s9843_s19 = sld [smem:[#allocation3_spill]]  ;;  %v8413_v16 = vshrl.u32 %v376_v15, 7  ;;  %v8421_v18 = vld [vmem:[%s9823_s17] sm:$0xff]  ;;  %v7634_v35 = vpack.c.bf16 %v69_v33, %v68_v32  ;;  %v73_v53 = vld [vmem:[%s9825_s6 + $0x8] sm:$0xff]  ;;  %v74_v60 = vld [vmem:[%s9825_s6 + $0x10] sm:$0xff] }
   0x4   :  { %s9844_s1 = sld [smem:[#allocation4_spill]]  ;;  %v71_v38 = vld [vmem:[%s9824_s5 + $0x20] sm:$0xff]  ;;  %v75_v61 = vld [vmem:[%s9825_s6 + $0x18] sm:$0xff]  ;;  %vm8631_vm5 = vmpackc.low %vm294_vm0, %vm294_vm0  ;;  %vm3419_vm6 = vcmask 523264   ;;  %vm6226_vm7 = vcmask 23552  }
   0x5   :  { %v8416_v17 = vsub.s32 0, %v8413_v16  ;;  %v7637_v39 = vpack.c.bf16 %v71_v38, %v70_v37  ;;  %v8452_v40 = vsub.s32 1, %v8413_v16  ;;  %v67_v51 = vld [vmem:[%s9824_s5] sm:$0xff]  ;;  %v7643_v62 = vpack.c.bf16 %v75_v61, %v74_v60 }
   0x6   :  { %v72_v52 = vld [vmem:[%s9825_s6] sm:$0xff]  ;;  %v8541_v60 = vsub.s32 4, %v8413_v16 }
   0x7   :  { %v379_v19 = vrot.slane %v8421_v18, %v8416_v17  ;;  %v617_v41 = vrot.slane %v8421_v18, %v8452_v40  ;;  %v7640_v54 = vpack.c.bf16 %v73_v53, %v72_v52  ;;  %v76_v63 = vld [vmem:[%s9825_s6 + $0x20] sm:$0xff] }
   0x8   :  { %v64_v0 = vld [vmem:[%s9842_s29] sm:$0xff] }
   0x9   :  { %v59_v1 = vld [vmem:[%s9843_s19] sm:$0xff]  ;;  %v60_v2 = vld [vmem:[%s9843_s19 + $0x8] sm:$0xff]  ;;  %6877 = vmatprep.subr.mxu1 %v64_v0 }
   0xa   :  { %6879 = vmatprep.mubr.msk.f32.mxu1 %vm294_vm0, %v59_v1  ;;  %6878 = vmatpush3.msra.mxu1 %v64_v0  ;;  %v61_v3 = vld [vmem:[%s9844_s1] sm:$0xff]  ;;  %v62_v7 = vld [vmem:[%s9844_s1 + $0x8] sm:$0xff]  ;;  %v7613_v11 = vpack.c.bf16 %v60_v2, %v59_v1 }
   0xb   :  { %6880 = vmatmul.mubr.msk.f32.vlgmr.msra.gmra.mrb[0].mxu1 %vm294_vm0, %v60_v2  ;;  %v77_v0 = vld [vmem:[%s9825_s6 + $0x28] sm:$0xff]  ;;  %v82_v2 = vld [vmem:[%s9826_s8] sm:$0xff] }
   0xc   :  { %6886 = vmatprep.mubr.msk.f32.mxu1 %vm220_vm1, %v61_v3  ;;  %7614 = vmatpush3.bf16.msra.mxu0 %v7613_v11  ;;  %v7646_v1 = vpack.c.bf16 %v77_v0, %v76_v63  ;;  %v83_v11 = vld [vmem:[%s9826_s8 + $0x8] sm:$0xff]  ;;  %v1141_v63 = vrot.slane %v8421_v18, %v8541_v60 }
   0xd   :  { %7619 = vmatprep.subr.bf16.mxu0 %v8277_v12 }
   0xf   :  { %6875 = vmatmul.mubr.msk.f32.vlgmr.msra.gmra.mrb[0].mxu0 %vm220_vm1, %v63_v14 }
  0x10   :  { %6893 = vmatprep.mubr.msk.f32.mxu0 %vm8278_vm2, %v8279_v13 }
  0xde   :  { %v6881_v4 = vpop.f32.mrb[0].mxu1 }
  0xdf   :  { %v367_v5 = vpop.f32.mrb[1].mxu1 }
  0xe0   :  { %v7615_v6 = vpack.c.bf16 %v6881_v4, %v367_v5  ;;  %v8493_v4 = vsub.s32 2, %v8413_v16 }
  0xe2   :  { %7616 = vmatprep.subr.bf16.mxu1 %v7615_v6  ;;  %v290_v27 = vpop.f32.mrb[0].mxu0  ;;  %v988_v5 = vrot.slane %v8421_v18, %v8493_v4 }
  0xe3   :  { %7618 = vmatpush3.bf16.msra.mxu1 %v7615_v6  ;;  %v6876_v28 = vpop.f32.mrb[1].mxu0 }
  0xe4   :  { %7623 = vmatprep.subr.bf16.mxu1 %v7622_v10 }
  0xe6   :  { %6887 = vmatmul.mubr.msk.f32.vlgmr.msra.gmra.mrb[2].mxu1 %vm220_vm1, %v62_v7 }
  0xe7   :  { %7625 = vmatpush3.bf16.msra.mxu1 %v7622_v10 }
  0xe8   :  { %7630 = vmatprep.subr.bf16.mxu1 %v8277_v12 }
 0x1b9   :  { %v6888_v20 = vpop.f32.mrb[2].mxu1 }
 0x1ba   :  { %v458_v21 = vadd.f32 %v6888_v20, %v379_v19  ;;  %v452_v22 = vpop.f32.mrb[3].mxu1 }
 0x1bb   :  { %v453_v23 = vadd.f32 %v452_v22, %v379_v19 }
 0x1bc   :  { %v462_v24 = vmax.f32 %v458_v21, 0.0 }
 0x1bd   :  { %v461_v25 = vmax.f32 %v453_v23, 0.0  ;;  %v84_v23 = vld [vmem:[%s9826_s8 + $0x10] sm:$0xff] }
 0x1bf   :  { %v7620_v26 = vpack.c.bf16 %v462_v24, %v461_v25  ;;  %6900 = vmatprep.mubr.msk.f32.mxu1 %vm220_vm1, %v461_v25 }
 0x1c0   :  { %6901 = vmatmul.mubr.msk.f32.vlgmr.msra.gmra.mrb[4].mxu1 %vm220_vm1, %v462_v24 }
 0x1c1   :  { %7621 = vmatpush3.bf16.msra.mxu0 %v7620_v26  ;;  %6914 = vmatprep.mubr.msk.f32.mxu1 %vm8278_vm2, %v8279_v13 }
 0x1c4   :  { %6894 = vmatmul.mubr.msk.f32.vlgmr.msra.gmra.mrb[2].mxu0 %vm220_vm1, %v63_v14 }
 0x1c5   :  { %6907 = vmatprep.mubr.msk.f32.mxu0 %vm220_vm1, %v61_v3  ;;  %v1077_v3 = vsel %vm1076_vm3, %v82_v2, 0.0 }
 0x1c6   :  { %1078 = vadd.xlane.f32.xlu1 %v1077_v3 }
 0x253   :  { %v1079_v21 = vpop.xlane.xlu1 %1078 }
 0x254   :  { %v1090_v22 = vmul.f32 0.03125, %v1079_v21 }
 0x256   :  { %v1094_v26 = vsub.f32 %v82_v2, %v1090_v22 }
 0x293   :  { %v6902_v29 = vpop.f32.mrb[4].mxu1 }
 0x294   :  { %v605_v30 = vpop.f32.mrb[5].mxu1 }
 0x295   :  { %v7626_v31 = vpack.c.bf16 %v6902_v29, %v605_v30 }
 0x297   :  { %7627 = vmatprep.subr.bf16.mxu0 %v7626_v31  ;;  %v529_v34 = vpop.f32.mrb[2].mxu0 }
 0x298   :  { %7629 = vmatpush3.bf16.msra.mxu0 %v7626_v31  ;;  %v6895_v36 = vpop.f32.mrb[3].mxu0  ;;  %v1098_v31 = vmul.f32 %v1094_v26, %v1094_v26 }
 0x299   :  { %7633 = vmatprep.subr.bf16.mxu0 %v8277_v12 }
 0x29a   :  { %v1102_v33 = vsel %vm1076_vm3, %v1098_v31, 0.0 }
 0x29b   :  { %6908 = vmatmul.mubr.msk.f32.vlgmr.msra.gmra.mrb[4].mxu0 %vm220_vm1, %v62_v7 }
 0x29c   :  { %7635 = vmatpush3.bf16.msra.mxu0 %v7634_v35  ;;  %6921 = vmatprep.mubr.msk.f32.mxu0 %vm8278_vm2, %v8279_v13 }
 0x29d   :  { %7636 = vmatprep.subr.bf16.mxu0 %v8277_v12 }
 0x29f   :  { %6922 = vmatmul.mubr.msk.f32.vlgmr.msra.gmra.mrb[6].mxu0 %vm220_vm1, %v529_v34 }
 0x2a0   :  { %6933 = vmatprep.mubr.msk.f32.mxu0 %vm8278_vm2, %v8279_v13  ;;  %7638 = vmatpush3.bf16.msra.mxu0 %v7637_v39  ;;  %v86_v39 = vld [vmem:[%s9827_s9] sm:$0xff] }
 0x36e   :  { %v6909_v42 = vpop.f32.mrb[4].mxu0 }
 0x36f   :  { %v690_v43 = vadd.f32 %v6909_v42, %v617_v41  ;;  %v684_v44 = vpop.f32.mrb[5].mxu0 }
 0x370   :  { %v685_v45 = vadd.f32 %v684_v44, %v617_v41  ;;  %v87_v41 = vld [vmem:[%s9827_s9 + $0x8] sm:$0xff]  ;;  %v89_v44 = vld [vmem:[%s9827_s9 + $0x18] sm:$0xff] }
 0x371   :  { %v694_v46 = vmax.f32 %v690_v43, 0.0  ;;  %v7648_v42 = vpack.c.bf16 %v87_v41, %v86_v39  ;;  %v88_v43 = vld [vmem:[%s9827_s9 + $0x10] sm:$0xff] }
 0x372   :  { %v693_v47 = vmax.f32 %v685_v45, 0.0  ;;  %v834_v48 = vpop.f32.mrb[6].mxu0  ;;  %v7652_v45 = vpack.c.bf16 %v89_v44, %v88_v43  ;;  %v152_v43 = vld [vmem:[%s9829_s11 + $0x10] sm:$0xff]  ;;  %v153_v44 = vld [vmem:[%s9829_s11 + $0x18] sm:$0xff] }
 0x373   :  { %v6923_v49 = vpop.f32.mrb[7].mxu0  ;;  %7649 = vmatprep.subr.bf16.mxu0 %v7648_v42 }
 0x374   :  { %v7631_v50 = vpack.c.bf16 %v694_v46, %v693_v47 }
 0x376   :  { %7632 = vmatpush3.bf16.msra.mxu1 %v7631_v50 }
 0x377   :  { %6924 = vmatprep.subr.mxu1 %v8279_v13 }
 0x379   :  { %6915 = vmatmul.mubr.msk.f32.vlgmr.msra.gmra.mrb[6].mxu1 %vm220_vm1, %v63_v14 }
 0x37a   :  { %6925 = vmatpush3.msra.mxu1 %v67_v51  ;;  %6926 = vmatprep.mubr.msk.f32.mxu1 %vm8278_vm2, %v8279_v13 }
 0x37b   :  { %7639 = vmatprep.subr.bf16.mxu1 %v8277_v12 }
 0x37d   :  { %6927 = vmatmul.mubr.msk.f32.vlgmr.msra.gmra.mrb[8].mxu1 %vm294_vm0, %v290_v27  ;;  %v85_v27 = vld [vmem:[%s9826_s8 + $0x18] sm:$0xff] }
 0x37e   :  { %6948 = vmatprep.mubr.msk.f32.mxu1 %vm8278_vm2, %v8279_v13  ;;  %7641 = vmatpush3.bf16.msra.mxu1 %v7640_v54 }
 0x37f   :  { %7642 = vmatprep.subr.bf16.mxu1 %v8277_v12 }
 0x382   :  { %7644 = vmatpush3.bf16.msra.mxu1 %v7643_v62 }
 0x383   :  { %7645 = vmatprep.subr.bf16.mxu1 %v8277_v12 }
 0x386   :  { %7647 = vmatpush3.bf16.msra.mxu1 %v7646_v1 }
 0x44c   :  { %v761_v55 = vpop.f32.mrb[6].mxu1 }
 0x44d   :  { %v6916_v56 = vpop.f32.mrb[7].mxu1  ;;  %6934 = vmatmul.mubr.msk.f32.vlgmr.msra.gmra.mrb[8].mxu0 %vm220_vm1, %v761_v55 }
 0x44e   :  { %7651 = vmatpush3.bf16.msra.mxu0 %v7648_v42 }
 0x44f   :  { %7653 = vmatprep.subr.bf16.mxu0 %v7652_v45 }
 0x450   :  { %v907_v57 = vpop.f32.mrb[8].mxu1 }
 0x451   :  { %v908_v58 = vadd.f32 %v907_v57, %v834_v48  ;;  %v6928_v59 = vpop.f32.mrb[9].mxu1 }
 0x452   :  { %7655 = vmatpush3.bf16.msra.mxu0 %v7652_v45  ;;  %v8538_v59 = vsub.s32 3, %v8413_v16  ;;  %v7680_v45 = vpack.c.bf16 %v153_v44, %v152_v43 }
 0x454   :  { %v1133_v61 = vrot.slane %v8421_v18, %v8538_v59 }
 0x520   :  { %v980_v6 = vpop.f32.mrb[8].mxu0 }
 0x521   :  { %v984_v7 = vadd.f32 %v980_v6, %v908_v58  ;;  %v6935_v8 = vpop.f32.mrb[9].mxu0 }
 0x522   :  { %v119_v8 = vld [vmem:[%s9828_s10 + $0x8] sm:$0xff] }
 0x523   :  { %v989_v9 = vadd.f32 %v988_v5, %v984_v7  ;;  %v118_v7 = vld [vmem:[%s9828_s10] sm:$0xff] }
 0x525   :  { %v990_v10 = vmax.f32 %v989_v9, 0.0  ;;  %v7656_v9 = vpack.c.bf16 %v119_v8, %v118_v7  ;;  %v123_v7 = vld [vmem:[%s9828_s10 + $0x28] sm:$0xff] }
 0x527   :  { %6949 = vmatmul.mubr.msk.f32.vlgmr.msra.gmra.mrb[10].mxu1 %vm991_vm4, %v990_v10  ;;  %7657 = vmatprep.subr.bf16.mxu0 %v7656_v9 }
 0x5fa   :  { %v1061_v14 = vpop.f32.mrb[10].mxu1 }
 0x5fb   :  { %v8500_v15 = vadd.f32 %v1061_v14, %v83_v11  ;;  %1066 = vrot.lane.b32.xlu0 %v1061_v14, %s8280_s23  ;;  %v6950_v19 = vpop.f32.mrb[11].mxu1 }
 0x5fc   :  { %v121_v19 = vld [vmem:[%s9828_s10 + $0x18] sm:$0xff] }
 0x5fd   :  { %v1080_v20 = vsel %vm1076_vm3, %v8500_v15, 0.0 }
 0x5fe   :  { %1081 = vadd.xlane.f32.xlu1 %v1080_v20 }
 0x5ff   :  { %1069 = vrot.lane.b32.xlu0 %v1061_v14, %s8281_s24  ;;  %v120_v14 = vld [vmem:[%s9828_s10 + $0x10] sm:$0xff] }
 0x600   :  { %v7660_v22 = vpack.c.bf16 %v121_v19, %v120_v14 }
 0x66d   :  { %v1067_v24 = vpop.permute.xlu0 %1066 }
 0x66e   :  { %v8507_v25 = vadd.f32 %v1067_v24, %v84_v23  ;;  %v150_v23 = vld [vmem:[%s9829_s11] sm:$0xff]  ;;  %v151_v24 = vld [vmem:[%s9829_s11 + $0x8] sm:$0xff] }
 0x670   :  { %v1083_v28 = vsel %vm1076_vm3, %v8507_v25, 0.0 }
 0x671   :  { %1084 = vadd.xlane.f32.xlu0 %v1083_v28  ;;  %v1070_v29 = vpop.permute.xlu0 %1069 }
 0x672   :  { %v8514_v30 = vadd.f32 %v1070_v29, %v85_v27 }
 0x674   :  { %v1086_v32 = vsel %vm1076_vm3, %v8514_v30, 0.0 }
 0x675   :  { %1087 = vadd.xlane.f32.xlu1 %v1086_v32 }
 0x679   :  { %1103 = vadd.xlane.f32.xlu1 %v1102_v33 }
 0x68b   :  { %v1082_v34 = vpop.xlane.xlu1 %1081 }
 0x68c   :  { %v1091_v35 = vmul.f32 0.03125, %v1082_v34 }
 0x68e   :  { %v1095_v36 = vsub.f32 %v8500_v15, %v1091_v35 }
 0x690   :  { %v1099_v37 = vmul.f32 %v1095_v36, %v1095_v36 }
 0x692   :  { %v1105_v38 = vsel %vm1076_vm3, %v1099_v37, 0.0 }
 0x693   :  { %1106 = vadd.xlane.f32.xlu1 %v1105_v38 }
 0x6fe   :  { %v1085_v46 = vpop.xlane.xlu0 %1084 }
 0x6ff   :  { %v1092_v47 = vmul.f32 0.03125, %v1085_v46  ;;  %v90_v46 = vld [vmem:[%s9827_s9 + $0x20] sm:$0xff] }
 0x701   :  { %v1096_v48 = vsub.f32 %v8507_v25, %v1092_v47  ;;  %v91_v47 = vld [vmem:[%s9827_s9 + $0x28] sm:$0xff] }
 0x702   :  { %v1088_v49 = vpop.xlane.xlu1 %1087 }
 0x703   :  { %v1093_v50 = vmul.f32 0.03125, %v1088_v49  ;;  %v1100_v51 = vmul.f32 %v1096_v48, %v1096_v48  ;;  %v92_v49 = vld [vmem:[%s9827_s9 + $0x30] sm:$0xff] }
 0x705   :  { %v1097_v52 = vsub.f32 %v8514_v30, %v1093_v50  ;;  %v1108_v53 = vsel %vm1076_vm3, %v1100_v51, 0.0  ;;  %v93_v50 = vld [vmem:[%s9827_s9 + $0x38] sm:$0xff] }
 0x706   :  { %1109 = vadd.xlane.f32.xlu1 %v1108_v53  ;;  %v1104_v54 = vpop.xlane.xlu1 %1103  ;;  %v7688_v51 = vpack.c.bf16 %v93_v50, %v92_v49 }
 0x707   :  { %v1114_v55 = vmul.f32 0.03125, %v1104_v54  ;;  %v1101_v56 = vmul.f32 %v1097_v52, %v1097_v52 }
 0x709   :  { %v1118_v57 = vadd.f32 1e-05, %v1114_v55  ;;  %v1111_v58 = vsel %vm1076_vm3, %v1101_v56, 0.0 }
 0x70a   :  { %1112 = vadd.xlane.f32.xlu1 %v1111_v58 }
 0x70b   :  { %8092 = vrsqrt.f32 %v1118_v57 }
 0x715   :  { %v8093_v62 = vpop.eup %8092 }
 0x716   :  { %v1126_v0 = vmul.f32 %v8093_v62, %v1094_v26  ;;  %v7676_v26 = vpack.c.bf16 %v151_v24, %v150_v23  ;;  %v124_v24 = vld [vmem:[%s9828_s10 + $0x30] sm:$0xff] }
 0x718   :  { %v1134_v1 = vmul.f32 %v1133_v61, %v1126_v0 }
 0x71a   :  { %v8547_v2 = vadd.f32 %v1141_v63, %v1134_v1 }
 0x71c   :  { %6959 = vmatprep.mubr.msk.f32.mxu0 %vm1076_vm3, %v8547_v2 }
 0x720   :  { %v1107_v3 = vpop.xlane.xlu1 %1106 }
 0x721   :  { %v1115_v5 = vmul.f32 0.03125, %v1107_v3 }
 0x723   :  { %v1119_v6 = vadd.f32 1e-05, %v1115_v5 }
 0x725   :  { %8094 = vrsqrt.f32 %v1119_v6  ;;  %v122_v6 = vld [vmem:[%s9828_s10 + $0x20] sm:$0xff] }
 0x726   :  { %v7692_v14 = vpack.c.bf16 %v123_v7, %v122_v6 }
 0x72f   :  { %v8095_v10 = vpop.eup %8094 }
 0x730   :  { %v1127_v11 = vmul.f32 %v8095_v10, %v1095_v36  ;;  %v8648_v10 = vsub.s32 6, %v8413_v16 }
 0x732   :  { %v1135_v20 = vmul.f32 %v1133_v61, %v1127_v11 }
 0x734   :  { %v8563_v21 = vadd.f32 %v1141_v63, %v1135_v20 }
 0x736   :  { %6960 = vmatmul.mubr.msk.f32.vlgmr.msra.gmra.mrb[10].mxu0 %vm1076_vm3, %v8563_v21 }
 0x737   :  { %7659 = vmatpush3.bf16.msra.mxu0 %v7656_v9 }
 0x738   :  { %7661 = vmatprep.subr.bf16.mxu0 %v7660_v22 }
 0x73b   :  { %7663 = vmatpush3.bf16.msra.mxu0 %v7660_v22  ;;  %v1573_v22 = vrot.slane %v8421_v18, %v8648_v10 }
 0x73c   :  { %7677 = vmatprep.subr.bf16.mxu0 %v7676_v26 }
 0x793   :  { %v1110_v27 = vpop.xlane.xlu1 %1109 }
 0x794   :  { %v1116_v28 = vmul.f32 0.03125, %v1110_v27 }
 0x796   :  { %v1120_v29 = vadd.f32 1e-05, %v1116_v28 }
 0x797   :  { %v1113_v31 = vpop.xlane.xlu1 %1112 }
 0x798   :  { %8096 = vrsqrt.f32 %v1120_v29  ;;  %v1117_v32 = vmul.f32 0.03125, %v1113_v31 }
 0x79a   :  { %v1121_v33 = vadd.f32 1e-05, %v1117_v32 }
 0x79c   :  { %8098 = vrsqrt.f32 %v1121_v33 }
 0x7a2   :  { %v8097_v34 = vpop.eup %8096 }
 0x7a3   :  { %v1128_v35 = vmul.f32 %v8097_v34, %v1096_v48  ;;  %v7684_v48 = vpack.c.bf16 %v91_v47, %v90_v46  ;;  %v157_v46 = vld [vmem:[%s9829_s11 + $0x38] sm:$0xff] }
 0x7a5   :  { %v1136_v36 = vmul.f32 %v1133_v61, %v1128_v35  ;;  %v155_v35 = vld [vmem:[%s9829_s11 + $0x28] sm:$0xff] }
 0x7a6   :  { %v8099_v37 = vpop.eup %8098 }
 0x7a7   :  { %v8573_v38 = vadd.f32 %v1141_v63, %v1136_v36  ;;  %v1129_v39 = vmul.f32 %v8099_v37, %v1097_v52  ;;  %v8624_v52 = vsub.s32 5, %v8413_v16 }
 0x7a9   :  { %v1137_v41 = vmul.f32 %v1133_v61, %v1129_v39  ;;  %6962 = vmatprep.mubr.msk.f32.mxu0 %vm1076_vm3, %v8573_v38  ;;  %v1149_v53 = vrot.slane %v8421_v18, %v8624_v52  ;;  %v154_v18 = vld [vmem:[%s9829_s11 + $0x20] sm:$0xff] }
 0x7aa   :  { %v7712_v44 = vpack.c.bf16 %v155_v35, %v154_v18  ;;  %v98_v35 = vld [vmem:[%s9827_s9 + $0x60] sm:$0xff] }
 0x7ab   :  { %v8577_v42 = vadd.f32 %v1141_v63, %v1137_v41 }
 0x7ad   :  { %6963 = vmatmul.mubr.msk.f32.gmra.mrb[12].mxu0 %vm1076_vm3, %v8577_v42 }
 0x7ae   :  { %6973 = vmatprep.mubr.msk.f32.mxu0 %vm1076_vm3, %v8547_v2 }
 0x7b1   :  { %6974 = vmatmul.mubr.msk.f32.vlgmr.msra.gmra.mrb[14].mxu0 %vm1076_vm3, %v8563_v21 }
 0x7b2   :  { %6976 = vmatprep.mubr.msk.f32.mxu0 %vm1076_vm3, %v8573_v38  ;;  %7679 = vmatpush3.bf16.msra.mxu0 %v7676_v26  ;;  %v125_v26 = vld [vmem:[%s9828_s10 + $0x38] sm:$0xff] }
 0x7b3   :  { %7681 = vmatprep.subr.bf16.mxu0 %v7680_v45  ;;  %v7696_v33 = vpack.c.bf16 %v125_v26, %v124_v24  ;;  %v128_v26 = vld [vmem:[%s9828_s10 + $0x50] sm:$0xff] }
 0x7b5   :  { %6977 = vmatmul.mubr.msk.f32.gmra.mrb[16].mxu0 %vm1076_vm3, %v8577_v42 }
 0x7b6   :  { %7683 = vmatpush3.bf16.msra.mxu0 %v7680_v45  ;;  %7001 = vmatprep.mubr.msk.f32.mxu0 %vm1076_vm3, %v8547_v2  ;;  %v156_v45 = vld [vmem:[%s9829_s11 + $0x30] sm:$0xff] }
 0x7b7   :  { %7685 = vmatprep.subr.bf16.mxu0 %v7684_v48  ;;  %v7716_v47 = vpack.c.bf16 %v157_v46, %v156_v45  ;;  %v131_v45 = vld [vmem:[%s9828_s10 + $0x68] sm:$0xff] }
 0x7b9   :  { %7002 = vmatmul.mubr.msk.f32.vlgmr.msra.gmra.mrb[18].mxu0 %vm1076_vm3, %v8563_v21 }
 0x7ba   :  { %7004 = vmatprep.mubr.msk.f32.mxu0 %vm1076_vm3, %v8573_v38  ;;  %7687 = vmatpush3.bf16.msra.mxu0 %v7684_v48 }
 0x7bb   :  { %7689 = vmatprep.subr.bf16.mxu0 %v7688_v51 }
 0x7bd   :  { %7005 = vmatmul.mubr.msk.f32.gmra.mrb[20].mxu0 %vm1076_vm3, %v8577_v42 }
 0x7be   :  { %7691 = vmatpush3.bf16.msra.mxu0 %v7688_v51  ;;  %7015 = vmatprep.mubr.msk.f32.mxu0 %vm1076_vm3, %v8547_v2 }
 0x7c1   :  { %7016 = vmatmul.mubr.msk.f32.vlgmr.msra.gmra.mrb[22].mxu0 %vm1076_vm3, %v8563_v21 }
 0x7c2   :  { %7018 = vmatprep.mubr.msk.f32.mxu0 %vm1076_vm3, %v8573_v38 }
 0x7c5   :  { %7019 = vmatmul.mubr.msk.f32.gmra.mrb[24].mxu0 %vm1076_vm3, %v8577_v42 }
 0x809   :  { %v6961_v54 = vpop.f32.mrb[10].mxu0 }
 0x80a   :  { %v1228_v55 = vpop.f32.mrb[11].mxu0  ;;  %v1234_v31 = vadd.f32 %v6961_v54, %v1149_v53 }
 0x80b   :  { %v1229_v56 = vadd.f32 %v1228_v55, %v1149_v53 }
 0x80d   :  { %6987 = vmatprep.mubr.msk.f32.mxu1 %vm294_vm0, %v1229_v56 }
 0x880   :  { %v6964_v57 = vpop.f32.mrb[12].mxu0 }
 0x881   :  { %v1238_v58 = vpop.f32.mrb[13].mxu0  ;;  %v1244_v41 = vadd.f32 %v6964_v57, %v1149_v53 }
 0x882   :  { %v1239_v34 = vadd.f32 %v1238_v58, %v1149_v53 }
 0x884   :  { %v6975_v61 = vpop.f32.mrb[14].mxu0 }
 0x885   :  { %v1313_v62 = vpop.f32.mrb[15].mxu0 }
 0x886   :  { %v7664_v0 = vpack.c.bf16 %v6975_v61, %v1313_v62  ;;  %v94_v61 = vld [vmem:[%s9827_s9 + $0x40] sm:$0xff]  ;;  %v95_v62 = vld [vmem:[%s9827_s9 + $0x48] sm:$0xff] }
 0x888   :  { %v6978_v1 = vpop.f32.mrb[16].mxu0  ;;  %7666 = vmatprep.subr.msk.bf16.mxu1 %vm8631_vm5, %v7664_v0 }
 0x889   :  { %v1323_v3 = vpop.f32.mrb[17].mxu0  ;;  %7669 = vmatpush3.bf16.xpose.msk.msra.mxu1 %vm8631_vm5, %v7664_v0 }
 0x88a   :  { %v7670_v5 = vpack.c.bf16 %v6978_v1, %v1323_v3 }
 0x88c   :  { %7672 = vmatprep.subr.msk.bf16.mxu1 %vm8631_vm5, %v7670_v5  ;;  %v7003_v8 = vpop.f32.mrb[18].mxu0 }
 0x88d   :  { %v1551_v9 = vpop.f32.mrb[19].mxu0 }
 0x88e   :  { %v8650_v11 = vpack.c.bf16 %v7003_v8, %v1551_v9  ;;  %v96_v9 = vld [vmem:[%s9827_s9 + $0x50] sm:$0xff] }
 0x890   :  { %v7006_v19 = vpop.f32.mrb[20].mxu0 }
 0x891   :  { %7675 = vmatpush3.bf16.xpose.msk.msra.mxu1 %vm8631_vm5, %v7670_v5  ;;  %v1561_v20 = vpop.f32.mrb[21].mxu0  ;;  %v7736_v5 = vpack.c.bf16 %v95_v62, %v94_v61  ;;  %v165_v61 = vld [vmem:[%s9829_s11 + $0x78] sm:$0xff] }
 0x892   :  { %v8656_v23 = vpack.c.bf16 %v7006_v19, %v1561_v20  ;;  %7693 = vmatprep.subr.bf16.mxu1 %v7692_v14  ;;  %v126_v20 = vld [vmem:[%s9828_s10 + $0x40] sm:$0xff] }
 0x894   :  { %v7017_v27 = vpop.f32.mrb[22].mxu0 }
 0x895   :  { %v8664_v28 = vadd.f32 %v7017_v27, %v1573_v22  ;;  %v1640_v29 = vpop.f32.mrb[23].mxu0  ;;  %v129_v27 = vld [vmem:[%s9828_s10 + $0x58] sm:$0xff] }
 0x896   :  { %v1641_v32 = vadd.f32 %v1640_v29, %v1573_v22  ;;  %v158_v29 = vld [vmem:[%s9829_s11 + $0x40] sm:$0xff] }
 0x898   :  { %6988 = vmatmul.mubr.msk.f32.vlgmr.msra.gmra.mrb[12].mxu1 %vm294_vm0, %v1234_v31  ;;  %v7020_v36 = vpop.f32.mrb[24].mxu0  ;;  %7043 = vmatprep.mubr.msk.f32.mxu0 %vm294_vm0, %v1641_v32  ;;  %v159_v31 = vld [vmem:[%s9829_s11 + $0x48] sm:$0xff] }
 0x899   :  { %v8674_v37 = vadd.f32 %v7020_v36, %v1573_v22  ;;  %6990 = vmatprep.mubr.msk.f32.mxu1 %vm294_vm0, %v1239_v34  ;;  %v1650_v39 = vpop.f32.mrb[25].mxu0  ;;  %7695 = vmatpush3.bf16.msra.mxu1 %v7692_v14  ;;  %v97_v14 = vld [vmem:[%s9827_s9 + $0x58] sm:$0xff]  ;;  %v7764_v32 = vpack.c.bf16 %v159_v31, %v158_v29  ;;  %v99_v36 = vld [vmem:[%s9827_s9 + $0x68] sm:$0xff] }
 0x89a   :  { %v1651_v43 = vadd.f32 %v1650_v39, %v1573_v22  ;;  %7697 = vmatprep.subr.bf16.mxu1 %v7696_v33  ;;  %v7740_v19 = vpack.c.bf16 %v97_v14, %v96_v9  ;;  %v127_v22 = vld [vmem:[%s9828_s10 + $0x48] sm:$0xff]  ;;  %v161_v34 = vld [vmem:[%s9829_s11 + $0x58] sm:$0xff]  ;;  %v100_v39 = vld [vmem:[%s9827_s9 + $0x70] sm:$0xff] }
 0x89b   :  { %v7744_v24 = vpack.c.bf16 %v127_v22, %v126_v20  ;;  %v8875_v14 = vld [vmem:[%s9830_s7 + $0x10] sm:$0xff] }
 0x89c   :  { %6991 = vmatmul.mubr.msk.f32.gmra.mrb[14].mxu1 %vm294_vm0, %v1244_v41  ;;  %v101_v41 = vld [vmem:[%s9827_s9 + $0x78] sm:$0xff] }
 0x89d   :  { %7699 = vmatpush3.bf16.msra.mxu1 %v7696_v33  ;;  %7029 = vmatprep.mubr.msk.f32.mxu1 %vm1076_vm3, %v8547_v2  ;;  %v160_v33 = vld [vmem:[%s9829_s11 + $0x50] sm:$0xff] }
 0x89e   :  { %7713 = vmatprep.subr.bf16.mxu1 %v7712_v44  ;;  %v7768_v18 = vpack.c.bf16 %v161_v34, %v160_v33 }
 0x8a0   :  { %7030 = vmatmul.mubr.msk.f32.vlgmr.msra.gmra.mrb[16].mxu1 %vm1076_vm3, %v8563_v21 }
 0x8a1   :  { %7032 = vmatprep.mubr.msk.f32.mxu1 %vm1076_vm3, %v8573_v38  ;;  %7715 = vmatpush3.bf16.msra.mxu1 %v7712_v44  ;;  %v130_v44 = vld [vmem:[%s9828_s10 + $0x60] sm:$0xff] }
 0x8a2   :  { %7717 = vmatprep.subr.bf16.mxu1 %v7716_v47  ;;  %v7788_v46 = vpack.c.bf16 %v131_v45, %v130_v44 }
 0x8a4   :  { %7033 = vmatmul.mubr.msk.f32.gmra.mrb[18].mxu1 %vm1076_vm3, %v8577_v42 }
 0x8a5   :  { %7719 = vmatpush3.bf16.msra.mxu1 %v7716_v47  ;;  %7057 = vmatprep.mubr.msk.f32.mxu1 %vm1076_vm3, %v8547_v2  ;;  %v132_v47 = vld [vmem:[%s9828_s10 + $0x70] sm:$0xff] }
 0x8a8   :  { %7058 = vmatmul.mubr.msk.f32.vlgmr.msra.gmra.mrb[20].mxu1 %vm1076_vm3, %v8563_v21 }
 0x8a9   :  { %7060 = vmatprep.mubr.msk.f32.mxu1 %vm1076_vm3, %v8573_v38 }
 0x8ac   :  { %7061 = vmatmul.mubr.msk.f32.gmra.mrb[22].mxu1 %vm1076_vm3, %v8577_v42 }
 0x96b   :  { %v8700_v48 = vpop.f32.mrb[12].mxu1 }
 0x96c   :  { %v8702_v49 = vpop.f32.mrb[13].mxu1 }
 0x96f   :  { %v8704_v50 = vpop.f32.mrb[14].mxu1 }
 0x970   :  { %v8706_v51 = vpop.f32.mrb[15].mxu1 }
 0x971   :  { %v8908_v33 = vadd.f32 %v8706_v51, %v8875_v14 }
 0x973   :  { %v7031_v53 = vpop.f32.mrb[16].mxu1 }
 0x974   :  { %v1725_v54 = vpop.f32.mrb[17].mxu1 }
 0x975   :  { %v7700_v55 = vpack.c.bf16 %v7031_v53, %v1725_v54  ;;  %v133_v53 = vld [vmem:[%s9828_s10 + $0x78] sm:$0xff] }
 0x976   :  { %v7792_v54 = vpack.c.bf16 %v133_v53, %v132_v47 }
 0x977   :  { %v7034_v56 = vpop.f32.mrb[18].mxu1  ;;  %7702 = vmatprep.subr.msk.bf16.mxu0 %vm8631_vm5, %v7700_v55 }
 0x978   :  { %v1735_v57 = vpop.f32.mrb[19].mxu1  ;;  %7705 = vmatpush3.bf16.xpose.msk.msra.mxu0 %vm8631_vm5, %v7700_v55  ;;  %v162_v55 = vld [vmem:[%s9829_s11 + $0x60] sm:$0xff] }
 0x979   :  { %v7706_v58 = vpack.c.bf16 %v7034_v56, %v1735_v57  ;;  %v163_v56 = vld [vmem:[%s9829_s11 + $0x68] sm:$0xff] }
 0x97a   :  { %v7808_v57 = vpack.c.bf16 %v163_v56, %v162_v55 }
 0x97b   :  { %7708 = vmatprep.subr.msk.bf16.mxu0 %vm8631_vm5, %v7706_v58  ;;  %v7059_v0 = vpop.f32.mrb[20].mxu1 }
 0x97c   :  { %v1963_v1 = vpop.f32.mrb[21].mxu1 }
 0x97d   :  { %v7720_v3 = vpack.c.bf16 %v7059_v0, %v1963_v1  ;;  %v8845_v1 = vld [vmem:[%s9830_s7] sm:$0xff] }
 0x97f   :  { %v7062_v6 = vpop.f32.mrb[22].mxu1  ;;  %7721 = vmatprep.subr.bf16.mxu1 %v7720_v3 }
 0x980   :  { %7711 = vmatpush3.bf16.xpose.msk.msra.mxu0 %vm8631_vm5, %v7706_v58  ;;  %v1973_v7 = vpop.f32.mrb[23].mxu1  ;;  %7723 = vmatpush3.bf16.msra.mxu1 %v7720_v3  ;;  %v164_v58 = vld [vmem:[%s9829_s11 + $0x70] sm:$0xff] }
 0x981   :  { %v7724_v8 = vpack.c.bf16 %v7062_v6, %v1973_v7  ;;  %7737 = vmatprep.subr.bf16.mxu0 %v7736_v5  ;;  %v7812_v62 = vpack.c.bf16 %v165_v61, %v164_v58 }
 0x983   :  { %7725 = vmatprep.subr.bf16.mxu1 %v7724_v8 }
 0x984   :  { %7727 = vmatpush3.bf16.msra.mxu1 %v7724_v8 }
 0x985   :  { %7729 = vmatprep.subr.bf16.mxu1 %v8650_v11 }
 0x987   :  { %7044 = vmatmul.mubr.msk.f32.vlgmr.msra.gmra.mrb[26].mxu0 %vm294_vm0, %v8664_v28  ;;  %v7748_v28 = vpack.c.bf16 %v129_v27, %v128_v26 }
 0x988   :  { %7046 = vmatprep.mubr.msk.f32.mxu0 %vm294_vm0, %v1651_v43  ;;  %7739 = vmatpush3.bf16.msra.mxu0 %v7736_v5  ;;  %v7784_v43 = vpack.c.bf16 %v101_v41, %v100_v39 }
 0x989   :  { %7741 = vmatprep.subr.bf16.mxu0 %v7740_v19 }
 0x98b   :  { %7047 = vmatmul.mubr.msk.f32.gmra.mrb[28].mxu0 %vm294_vm0, %v8674_v37  ;;  %v7780_v37 = vpack.c.bf16 %v99_v36, %v98_v35 }
 0x98c   :  { %7743 = vmatpush3.bf16.msra.mxu0 %v7740_v19  ;;  %7099 = vmatprep.mubr.msk.f32.mxu0 %vm1076_vm3, %v8547_v2 }
 0x98d   :  { %7745 = vmatprep.subr.bf16.mxu0 %v7744_v24 }
 0x98f   :  { %7100 = vmatmul.mubr.msk.f32.vlgmr.msra.gmra.mrb[30].mxu0 %vm1076_vm3, %v8563_v21 }
 0x990   :  { %7102 = vmatprep.mubr.msk.f32.mxu0 %vm1076_vm3, %v8573_v38  ;;  %7747 = vmatpush3.bf16.msra.mxu0 %v7744_v24 }
 0x991   :  { %7749 = vmatprep.subr.bf16.mxu0 %v7748_v28 }
 0x993   :  { %7103 = vmatmul.mubr.msk.f32.gmra.mrb[32].mxu0 %vm1076_vm3, %v8577_v42 }
 0x994   :  { %7751 = vmatpush3.bf16.msra.mxu0 %v7748_v28  ;;  %7113 = vmatprep.mubr.msk.f32.mxu0 %vm1076_vm3, %v8547_v2  ;;  %v8896_v28 = vadd.f32 %v8702_v49, %v8845_v1 }
 0x995   :  { %7765 = vmatprep.subr.bf16.mxu0 %v7764_v32 }
 0x996   :  { %v1441_v49 = vsel %vm1076_vm3, %v8896_v28, -inf }
 0x997   :  { %7114 = vmatmul.mubr.msk.f32.vlgmr.msra.gmra.mrb[34].mxu0 %vm1076_vm3, %v8563_v21 }
 0x998   :  { %7116 = vmatprep.mubr.msk.f32.mxu0 %vm1076_vm3, %v8573_v38  ;;  %7767 = vmatpush3.bf16.msra.mxu0 %v7764_v32 }
 0x999   :  { %7769 = vmatprep.subr.bf16.mxu0 %v7768_v18 }
 0x99b   :  { %7117 = vmatmul.mubr.msk.f32.gmra.mrb[36].mxu0 %vm1076_vm3, %v8577_v42 }
 0x99c   :  { %7771 = vmatpush3.bf16.msra.mxu0 %v7768_v18  ;;  %7141 = vmatprep.mubr.msk.f32.mxu0 %vm1076_vm3, %v8547_v2 }
 0x99d   :  { %7781 = vmatprep.subr.bf16.mxu0 %v7780_v37 }
 0x99f   :  { %7142 = vmatmul.mubr.msk.f32.vlgmr.msra.gmra.mrb[38].mxu0 %vm1076_vm3, %v8563_v21 }
 0x9a0   :  { %7144 = vmatprep.mubr.msk.f32.mxu0 %vm1076_vm3, %v8573_v38  ;;  %7783 = vmatpush3.bf16.msra.mxu0 %v7780_v37  ;;  %v1447_v37 = vsel %vm1076_vm3, %v8908_v33, -inf }
 0x9a1   :  { %7785 = vmatprep.subr.bf16.mxu0 %v7784_v43 }
 0x9a3   :  { %7145 = vmatmul.mubr.msk.f32.gmra.mrb[40].mxu0 %vm1076_vm3, %v8577_v42 }
 0x9a4   :  { %7787 = vmatpush3.bf16.msra.mxu0 %v7784_v43  ;;  %7169 = vmatprep.mubr.msk.f32.mxu0 %vm1076_vm3, %v8547_v2 }
 0x9a5   :  { %7789 = vmatprep.subr.bf16.mxu0 %v7788_v46 }
 0x9a7   :  { %7170 = vmatmul.mubr.msk.f32.vlgmr.msra.gmra.mrb[42].mxu0 %vm1076_vm3, %v8563_v21 }
 0x9a8   :  { %7172 = vmatprep.mubr.msk.f32.mxu0 %vm1076_vm3, %v8573_v38  ;;  %7791 = vmatpush3.bf16.msra.mxu0 %v7788_v46 }
 0x9a9   :  { %7793 = vmatprep.subr.bf16.mxu0 %v7792_v54 }
 0x9ab   :  { %7173 = vmatmul.mubr.msk.f32.gmra.mrb[44].mxu0 %vm1076_vm3, %v8577_v42 }
 0x9ac   :  { %7795 = vmatpush3.bf16.msra.mxu0 %v7792_v54  ;;  %7183 = vmatprep.mubr.msk.f32.mxu0 %vm1076_vm3, %v8547_v2 }
 0x9ad   :  { %7809 = vmatprep.subr.bf16.mxu0 %v7808_v57 }
 0x9af   :  { %7184 = vmatmul.mubr.msk.f32.vlgmr.msra.gmra.mrb[46].mxu0 %vm1076_vm3, %v8563_v21 }
 0x9b0   :  { %7186 = vmatprep.mubr.msk.f32.mxu0 %vm1076_vm3, %v8573_v38  ;;  %7811 = vmatpush3.bf16.msra.mxu0 %v7808_v57 }
 0x9b1   :  { %7813 = vmatprep.subr.bf16.mxu0 %v7812_v62 }
 0x9b3   :  { %7187 = vmatmul.mubr.msk.f32.gmra.mrb[48].mxu0 %vm1076_vm3, %v8577_v42 }
 0x9b4   :  { %7815 = vmatpush3.bf16.msra.mxu0 %v7812_v62  ;;  %7211 = vmatprep.mubr.msk.f32.mxu0 %vm1076_vm3, %v8547_v2  ;;  %v8853_v2 = vld [vmem:[%s9830_s7 + $0x8] sm:$0xff] }
 0x9b5   :  { %v8870_v9 = vadd.f32 %v8700_v48, %v8853_v2 }
 0x9b7   :  { %7212 = vmatmul.mubr.msk.f32.vlgmr.msra.gmra.mrb[50].mxu0 %vm1076_vm3, %v8563_v21  ;;  %v8858_v21 = vld [vmem:[%s9830_s7 + $0x18] sm:$0xff]  ;;  %v1444_v27 = vsel %vm1076_vm3, %v8870_v9, -inf }
 0x9b8   :  { %7214 = vmatprep.mubr.msk.f32.mxu0 %vm1076_vm3, %v8573_v38  ;;  %v8890_v48 = vadd.f32 %v8704_v50, %v8858_v21 }
 0x9ba   :  { %v1450_v50 = vsel %vm1076_vm3, %v8890_v48, -inf }
 0x9bb   :  { %7215 = vmatmul.mubr.msk.f32.gmra.mrb[52].mxu0 %vm1076_vm3, %v8577_v42 }
 0xa5a   :  { %v7045_v0 = vpop.f32.mrb[26].mxu0 }
 0xa5b   :  { %v1834_v3 = vpop.f32.mrb[27].mxu0  ;;  %v8861_v38 = vadd.f32 %v7045_v0, %v8853_v2 }
 0xa5c   :  { %v8848_v5 = vadd.f32 %v1834_v3, %v8845_v1 }
 0xa5d   :  { %v1856_v24 = vsel %vm1076_vm3, %v8861_v38, -inf }
 0xa5e   :  { %v7048_v42 = vpop.f32.mrb[28].mxu0  ;;  %v1853_v6 = vsel %vm1076_vm3, %v8848_v5, -inf }
 0xa5f   :  { %v8866_v7 = vadd.f32 %v7048_v42, %v8858_v21  ;;  %v1844_v8 = vpop.f32.mrb[29].mxu0  ;;  %1854 = vmax.xlane.f32.xlu1 %v1853_v6 }
 0xa60   :  { %v8880_v20 = vadd.f32 %v1844_v8, %v8875_v14 }
 0xa61   :  { %v1862_v19 = vsel %vm1076_vm3, %v8866_v7, -inf }
 0xa62   :  { %1863 = vmax.xlane.f32.xlu0 %v1862_v19  ;;  %v8882_v22 = vpop.f32.mrb[30].mxu0  ;;  %v1859_v31 = vsel %vm1076_vm3, %v8880_v20, -inf }
 0xa63   :  { %v8886_v26 = vpop.f32.mrb[31].mxu0  ;;  %1857 = vmax.xlane.f32.xlu1 %v1856_v24 }
 0xa66   :  { %1445 = vmax.xlane.f32.xlu0 %v1444_v27  ;;  %v8898_v29 = vpop.f32.mrb[32].mxu0 }
 0xa67   :  { %v8902_v32 = vpop.f32.mrb[33].mxu0  ;;  %1860 = vmax.xlane.f32.xlu1 %v1859_v31 }
 0xa6a   :  { %1451 = vmax.xlane.f32.xlu0 %v1450_v50  ;;  %v7115_v34 = vpop.f32.mrb[34].mxu0 }
 0xa6b   :  { %v2331_v18 = vpop.f32.mrb[35].mxu0  ;;  %1442 = vmax.xlane.f32.xlu1 %v1441_v49 }
 0xa6c   :  { %v8912_v35 = vpack.c.bf16 %v7115_v34, %v2331_v18 }
 0xa6e   :  { %v7118_v36 = vpop.f32.mrb[36].mxu0 }
 0xa6f   :  { %v2341_v39 = vpop.f32.mrb[37].mxu0  ;;  %1448 = vmax.xlane.f32.xlu1 %v1447_v37 }
 0xa70   :  { %v8916_v41 = vpack.c.bf16 %v7118_v36, %v2341_v39 }
 0xa72   :  { %v7143_v43 = vpop.f32.mrb[38].mxu0 }
 0xa73   :  { %v2569_v51 = vpop.f32.mrb[39].mxu0 }
 0xa74   :  { %v8918_v44 = vpack.c.bf16 %v7143_v43, %v2569_v51 }
 0xa76   :  { %v7146_v45 = vpop.f32.mrb[40].mxu0 }
 0xa77   :  { %v2579_v46 = vpop.f32.mrb[41].mxu0 }
 0xa78   :  { %v8920_v47 = vpack.c.bf16 %v7146_v45, %v2579_v46 }
 0xa7a   :  { %v8922_v53 = vpop.f32.mrb[42].mxu0 }
 0xa7b   :  { %v8924_v54 = vpop.f32.mrb[43].mxu0 }
 0xa7e   :  { %v8926_v55 = vpop.f32.mrb[44].mxu0 }
 0xa7f   :  { %v8928_v56 = vpop.f32.mrb[45].mxu0 }
 0xa82   :  { %v7185_v57 = vpop.f32.mrb[46].mxu0 }
 0xa83   :  { %v2844_v58 = vpop.f32.mrb[47].mxu0 }
 0xa84   :  { %v8930_v61 = vpack.c.bf16 %v7185_v57, %v2844_v58 }
 0xa86   :  { %v7188_v62 = vpop.f32.mrb[48].mxu0 }
 0xa87   :  { %v2854_v0 = vpop.f32.mrb[49].mxu0 }
 0xa88   :  { %v8932_v3 = vpack.c.bf16 %v7188_v62, %v2854_v0 }
 0xa8a   :  { %v7213_v42 = vpop.f32.mrb[50].mxu0 }
 0xa8b   :  { %v3082_v6 = vpop.f32.mrb[51].mxu0 }
 0xa8c   :  { %v8934_v8 = vpack.c.bf16 %v7213_v42, %v3082_v6 }
 0xa8e   :  { %v7216_v19 = vpop.f32.mrb[52].mxu0 }
 0xa8f   :  { %v3092_v24 = vpop.f32.mrb[53].mxu0 }
 0xa90   :  { %v8936_v27 = vpack.c.bf16 %v7216_v19, %v3092_v24 }
 0xaec   :  { %v1855_v31 = vpop.xlane.xlu1 %1854 }
 0xaed   :  { %v1865_v50 = vsub.f32 %v8848_v5, %v1855_v31 }
 0xaef   :  { %v1869_v34 = vmul.f32 1.442695, %v1865_v50  ;;  %v1864_v49 = vpop.xlane.xlu0 %1863 }
 0xaf0   :  { %v1868_v18 = vsub.f32 %v8866_v7, %v1864_v49  ;;  %v1858_v36 = vpop.xlane.xlu1 %1857 }
 0xaf1   :  { %8100 = vpow2.f32 %v1869_v34  ;;  %v1866_v37 = vsub.f32 %v8861_v38, %v1858_v36 }
 0xaf2   :  { %v1875_v39 = vmul.f32 1.442695, %v1868_v18 }
 0xaf3   :  { %v1871_v43 = vmul.f32 1.442695, %v1866_v37  ;;  %v1446_v51 = vpop.xlane.xlu0 %1445 }
 0xaf4   :  { %v1454_v45 = vsub.f32 %v8870_v9, %v1446_v51  ;;  %v1861_v46 = vpop.xlane.xlu1 %1860 }
 0xaf5   :  { %8102 = vpow2.f32 %v1871_v43  ;;  %v1867_v57 = vsub.f32 %v8880_v20, %v1861_v46 }
 0xaf6   :  { %8104 = vpow2.f32 %v1875_v39  ;;  %v1459_v58 = vmul.f32 1.442695, %v1454_v45 }
 0xaf7   :  { %v1873_v5 = vmul.f32 1.442695, %v1867_v57  ;;  %v1452_v62 = vpop.xlane.xlu0 %1451 }
 0xaf8   :  { %v1456_v0 = vsub.f32 %v8890_v48, %v1452_v62  ;;  %v1443_v7 = vpop.xlane.xlu1 %1442 }
 0xaf9   :  { %8106 = vpow2.f32 %v1873_v5  ;;  %v1453_v42 = vsub.f32 %v8896_v28, %v1443_v7 }
 0xafa   :  { %8108 = vpow2.f32 %v1459_v58  ;;  %v1463_v6 = vmul.f32 1.442695, %v1456_v0 }
 0xafb   :  { %v8101_v38 = vpop.eup %8100  ;;  %v1457_v19 = vmul.f32 1.442695, %v1453_v42 }
 0xafc   :  { %v1449_v24 = vpop.xlane.xlu1 %1448  ;;  %v1877_v9 = vsel %vm1076_vm3, %v8101_v38, 0.0 }
 0xafd   :  { %8110 = vpow2.f32 %v1457_v19  ;;  %v1455_v20 = vsub.f32 %v8908_v33, %v1449_v24  ;;  %1878 = vadd.xlane.f32.xlu1 %v1877_v9 }
 0xafe   :  { %8112 = vpow2.f32 %v1463_v6 }
 0xaff   :  { %v8103_v31 = vpop.eup %8102  ;;  %v1461_v50 = vmul.f32 1.442695, %v1455_v20 }
 0xb00   :  { %v1880_v48 = vsel %vm1076_vm3, %v8103_v31, 0.0  ;;  %v8105_v34 = vpop.eup %8104 }
 0xb01   :  { %8114 = vpow2.f32 %v1461_v50  ;;  %1881 = vadd.xlane.f32.xlu0 %v1880_v48  ;;  %v1886_v49 = vsel %vm1076_vm3, %v8105_v34, 0.0 }
 0xb03   :  { %v8107_v28 = vpop.eup %8106 }
 0xb04   :  { %v1883_v18 = vsel %vm1076_vm3, %v8107_v28, 0.0  ;;  %v8109_v36 = vpop.eup %8108 }
 0xb05   :  { %1887 = vadd.xlane.f32.xlu0 %v1886_v49  ;;  %1884 = vadd.xlane.f32.xlu1 %v1883_v18  ;;  %v1468_v33 = vsel %vm1076_vm3, %v8109_v36, 0.0 }
 0xb07   :  { %v8111_v37 = vpop.eup %8110 }
 0xb08   :  { %v1465_v39 = vsel %vm1076_vm3, %v8111_v37, 0.0  ;;  %v8113_v43 = vpop.eup %8112 }
 0xb09   :  { %1469 = vadd.xlane.f32.xlu0 %v1468_v33  ;;  %1466 = vadd.xlane.f32.xlu1 %v1465_v39  ;;  %v1474_v45 = vsel %vm1076_vm3, %v8113_v43, 0.0  ;;  %v8959_v33 = vsub.s32 7, %v8413_v16 }
 0xb0b   :  { %v8115_v51 = vpop.eup %8114 }
 0xb0c   :  { %v1471_v46 = vsel %vm1076_vm3, %v8115_v51, 0.0 }
 0xb0d   :  { %1475 = vadd.xlane.f32.xlu0 %v1474_v45  ;;  %1472 = vadd.xlane.f32.xlu1 %v1471_v46 }
 0xb8a   :  { %v1879_v57 = vpop.xlane.xlu1 %1878 }
 0xb8b   :  { %8116 = vrcp.f32 %v1879_v57 }
 0xb8e   :  { %v1882_v58 = vpop.xlane.xlu0 %1881 }
 0xb8f   :  { %8118 = vrcp.f32 %v1882_v58 }
 0xb92   :  { %v1888_v5 = vpop.xlane.xlu0 %1887  ;;  %v1885_v62 = vpop.xlane.xlu1 %1884 }
 0xb93   :  { %8120 = vrcp.f32 %v1888_v5 }
 0xb94   :  { %8122 = vrcp.f32 %v1885_v62 }
 0xb95   :  { %v8117_v0 = vpop.eup %8116 }
 0xb96   :  { %v1470_v7 = vpop.xlane.xlu0 %1469  ;;  %v1467_v42 = vpop.xlane.xlu1 %1466  ;;  %v1893_v6 = vmul.f32 %v8117_v0, %v8101_v38 }
 0xb97   :  { %8124 = vrcp.f32 %v1470_v7 }
 0xb98   :  { %8126 = vrcp.f32 %v1467_v42  ;;  %7071 = vmatprep.mubr.msk.f32.mxu1 %vm1076_vm3, %v1893_v6 }
 0xb99   :  { %v8119_v19 = vpop.eup %8118 }
 0xb9a   :  { %v1894_v24 = vmul.f32 %v8119_v19, %v8103_v31  ;;  %v1476_v9 = vpop.xlane.xlu0 %1475  ;;  %v1473_v20 = vpop.xlane.xlu1 %1472 }
 0xb9b   :  { %8128 = vrcp.f32 %v1476_v9 }
 0xb9c   :  { %8130 = vrcp.f32 %v1473_v20  ;;  %7072 = vmatmul.mubr.msk.f32.vlgmr.msra.gmra.mrb[24].mxu1 %vm1076_vm3, %v1894_v24 }
 0xb9d   :  { %v8121_v50 = vpop.eup %8120  ;;  %7731 = vmatpush3.bf16.msra.mxu1 %v8650_v11 }
 0xb9e   :  { %v8123_v48 = vpop.eup %8122  ;;  %7733 = vmatprep.subr.bf16.mxu1 %v8656_v23  ;;  %v1896_v49 = vmul.f32 %v8121_v50, %v8105_v34  ;;  %v8270_v34 = vld [vmem:[%s9823_s17] sm:$0xff] }
 0xb9f   :  { %v1895_v38 = vmul.f32 %v8123_v48, %v8107_v28  ;;  %v2179_v16 = vrot.slane %v8270_v34, %v8959_v33 }
 0xba1   :  { %v8125_v18 = vpop.eup %8124  ;;  %7074 = vmatprep.mubr.msk.f32.mxu1 %vm1076_vm3, %v1895_v38  ;;  %7735 = vmatpush3.bf16.msra.mxu1 %v8656_v23  ;;  %v2247_v46 = vadd.f32 %v8886_v26, %v2179_v16  ;;  %v2252_v26 = vadd.f32 %v8882_v22, %v2179_v16 }
 0xba2   :  { %v8127_v31 = vpop.eup %8126  ;;  %v1482_v39 = vmul.f32 %v8125_v18, %v8109_v36  ;;  %7075 = vmatmul.mubr.msk.f32.gmra.mrb[26].mxu1 %vm1076_vm3, %v1896_v49  ;;  %7754 = vmatprep.subr.msk.bf16.mxu1 %vm8631_vm5, %v8912_v35 }
 0xba3   :  { %v1481_v11 = vmul.f32 %v8127_v31, %v8111_v37  ;;  %v2257_v37 = vadd.f32 %v8902_v32, %v2179_v16 }
 0xba5   :  { %v8129_v45 = vpop.eup %8128  ;;  %7085 = vmatprep.mubr.msk.f32.mxu1 %vm1076_vm3, %v1481_v11 }
 0xba6   :  { %v8131_v28 = vpop.eup %8130  ;;  %7086 = vmatmul.mubr.msk.f32.vlgmr.msra.gmra.mrb[24].mxu1 %vm1076_vm3, %v1482_v39  ;;  %v1484_v23 = vmul.f32 %v8129_v45, %v8113_v43 }
 0xba7   :  { %v1483_v36 = vmul.f32 %v8131_v28, %v8115_v51 }
 0xba9   :  { %7088 = vmatprep.mubr.msk.f32.mxu1 %vm1076_vm3, %v1483_v36 }
 0xbaa   :  { %7089 = vmatmul.mubr.msk.f32.gmra.mrb[26].mxu1 %vm1076_vm3, %v1484_v23 }
 0xbab   :  { %7757 = vmatpush3.bf16.xpose.msk.msra.mxu1 %vm8631_vm5, %v8912_v35  ;;  %7127 = vmatprep.mubr.msk.f32.mxu1 %vm294_vm0, %v2247_v46  ;;  %v2262_v35 = vadd.f32 %v8898_v29, %v2179_v16 }
 0xbac   :  { %7760 = vmatprep.subr.msk.bf16.mxu1 %vm8631_vm5, %v8916_v41 }
 0xbb3   :  { %7763 = vmatpush3.bf16.xpose.msk.msra.mxu1 %vm8631_vm5, %v8916_v41 }
 0xbb4   :  { %7773 = vmatprep.subr.bf16.mxu1 %v8918_v44 }
 0xbba   :  { %7128 = vmatmul.mubr.msk.f32.vlgmr.msra.gmra.mrb[28].mxu1 %vm294_vm0, %v2252_v26 }
 0xbbb   :  { %7130 = vmatprep.mubr.msk.f32.mxu1 %vm294_vm0, %v2257_v37  ;;  %7775 = vmatpush3.bf16.msra.mxu1 %v8918_v44 }
 0xbbc   :  { %7777 = vmatprep.subr.bf16.mxu1 %v8920_v47 }
 0xbbe   :  { %7131 = vmatmul.mubr.msk.f32.gmra.mrb[30].mxu1 %vm294_vm0, %v2262_v35 }
 0xbbf   :  { %7779 = vmatpush3.bf16.msra.mxu1 %v8920_v47 }
 0xbc0   :  { %7798 = vmatprep.subr.msk.bf16.mxu1 %vm8631_vm5, %v8930_v61 }
 0xc8d   :  { %v7129_v22 = vpop.f32.mrb[28].mxu1 }
 0xc8e   :  { %v2446_v32 = vadd.f32 %v7129_v22, %v8853_v2  ;;  %v2440_v41 = vpop.f32.mrb[29].mxu1  ;;  %v9014_v22 = vld [vmem:[%s9823_s17 + $0x8] sm:$0xff] }
 0xc8f   :  { %v2441_v43 = vadd.f32 %v2440_v41, %v8845_v1 }
 0xc90   :  { %v2462_v44 = vsel %vm1076_vm3, %v2446_v32, -inf }
 0xc91   :  { %2463 = vmax.xlane.f32.xlu0 %v2462_v44  ;;  %v7132_v29 = vpop.f32.mrb[30].mxu1  ;;  %v2459_v51 = vsel %vm1076_vm3, %v2441_v43, -inf  ;;  %v2692_v44 = vrot.slane %v9014_v22, %v8416_v17 }
 0xc92   :  { %v2456_v57 = vadd.f32 %v7132_v29, %v8858_v21  ;;  %v2450_v58 = vpop.f32.mrb[31].mxu1  ;;  %2460 = vmax.xlane.f32.xlu1 %v2459_v51 }
 0xc93   :  { %v2451_v47 = vadd.f32 %v2450_v58, %v8875_v14  ;;  %v2760_v58 = vadd.f32 %v8924_v54, %v2692_v44  ;;  %v2775_v54 = vadd.f32 %v8926_v55, %v2692_v44 }
 0xc94   :  { %v2468_v5 = vsel %vm1076_vm3, %v2456_v57, -inf }
 0xc95   :  { %2469 = vmax.xlane.f32.xlu0 %v2468_v5  ;;  %v2465_v62 = vsel %vm1076_vm3, %v2451_v47, -inf }
 0xc96   :  { %2466 = vmax.xlane.f32.xlu1 %v2465_v62 }
 0xd1e   :  { %v2464_v0 = vpop.xlane.xlu0 %2463 }
 0xd1f   :  { %v2472_v7 = vsub.f32 %v2446_v32, %v2464_v0  ;;  %v2461_v42 = vpop.xlane.xlu1 %2460 }
 0xd20   :  { %v2471_v6 = vsub.f32 %v2441_v43, %v2461_v42 }
 0xd21   :  { %v2477_v19 = vmul.f32 1.442695, %v2472_v7 }
 0xd22   :  { %v2475_v24 = vmul.f32 1.442695, %v2471_v6  ;;  %v2470_v9 = vpop.xlane.xlu0 %2469 }
 0xd23   :  { %8132 = vpow2.f32 %v2477_v19  ;;  %v2474_v20 = vsub.f32 %v2456_v57, %v2470_v9  ;;  %v2467_v50 = vpop.xlane.xlu1 %2466 }
 0xd24   :  { %8134 = vpow2.f32 %v2475_v24  ;;  %v2473_v48 = vsub.f32 %v2451_v47, %v2467_v50  ;;  %v2770_v47 = vadd.f32 %v8928_v56, %v2692_v44 }
 0xd25   :  { %v2481_v49 = vmul.f32 1.442695, %v2474_v20 }
 0xd26   :  { %v2479_v38 = vmul.f32 1.442695, %v2473_v48 }
 0xd27   :  { %8136 = vpow2.f32 %v2481_v49 }
 0xd28   :  { %8138 = vpow2.f32 %v2479_v38 }
 0xd2d   :  { %v8133_v18 = vpop.eup %8132 }
 0xd2e   :  { %v8135_v31 = vpop.eup %8134  ;;  %v2486_v39 = vsel %vm1076_vm3, %v8133_v18, 0.0 }
 0xd2f   :  { %2487 = vadd.xlane.f32.xlu0 %v2486_v39  ;;  %v2483_v11 = vsel %vm1076_vm3, %v8135_v31, 0.0 }
 0xd30   :  { %2484 = vadd.xlane.f32.xlu1 %v2483_v11 }
 0xd31   :  { %v8137_v45 = vpop.eup %8136 }
 0xd32   :  { %v8139_v34 = vpop.eup %8138  ;;  %v2492_v16 = vsel %vm1076_vm3, %v8137_v45, 0.0 }
 0xd33   :  { %2493 = vadd.xlane.f32.xlu0 %v2492_v16  ;;  %v2489_v28 = vsel %vm1076_vm3, %v8139_v34, 0.0 }
 0xd34   :  { %2490 = vadd.xlane.f32.xlu1 %v2489_v28 }
 0xdbc   :  { %v2488_v23 = vpop.xlane.xlu0 %2487 }
 0xdbd   :  { %8140 = vrcp.f32 %v2488_v23  ;;  %v2485_v36 = vpop.xlane.xlu1 %2484 }
 0xdbe   :  { %8142 = vrcp.f32 %v2485_v36 }
 0xdc0   :  { %v2494_v46 = vpop.xlane.xlu0 %2493 }
 0xdc1   :  { %8144 = vrcp.f32 %v2494_v46  ;;  %v2491_v26 = vpop.xlane.xlu1 %2490 }
 0xdc2   :  { %8146 = vrcp.f32 %v2491_v26 }
 0xdc7   :  { %v8141_v37 = vpop.eup %8140 }
 0xdc8   :  { %v8143_v35 = vpop.eup %8142  ;;  %v2500_v41 = vmul.f32 %v8141_v37, %v8133_v18 }
 0xdc9   :  { %v2499_v32 = vmul.f32 %v8143_v35, %v8135_v31 }
 0xdcb   :  { %v8145_v43 = vpop.eup %8144  ;;  %7155 = vmatprep.mubr.msk.f32.mxu1 %vm1076_vm3, %v2499_v32 }
 0xdcc   :  { %v8147_v29 = vpop.eup %8146  ;;  %7156 = vmatmul.mubr.msk.f32.vlgmr.msra.gmra.mrb[24].mxu1 %vm1076_vm3, %v2500_v41  ;;  %v2502_v57 = vmul.f32 %v8145_v43, %v8137_v45 }
 0xdcd   :  { %7801 = vmatpush3.bf16.xpose.msk.msra.mxu1 %vm8631_vm5, %v8930_v61  ;;  %v2501_v51 = vmul.f32 %v8147_v29, %v8139_v34  ;;  %v2765_v61 = vadd.f32 %v8922_v53, %v2692_v44 }
 0xdce   :  { %7804 = vmatprep.subr.msk.bf16.mxu1 %vm8631_vm5, %v8932_v3 }
 0xdcf   :  { %7158 = vmatprep.mubr.msk.f32.mxu1 %vm1076_vm3, %v2501_v51 }
 0xdd0   :  { %7159 = vmatmul.mubr.msk.f32.gmra.mrb[26].mxu1 %vm1076_vm3, %v2502_v57  ;;  %v3209_v57 = vrot.slane %v9014_v22, %v8452_v40 }
 0xdd1   :  { %7197 = vmatprep.mubr.msk.f32.mxu1 %vm294_vm0, %v2760_v58 }
 0xdd5   :  { %7807 = vmatpush3.bf16.xpose.msk.msra.mxu1 %vm8631_vm5, %v8932_v3 }
 0xdd6   :  { %7817 = vmatprep.subr.bf16.mxu1 %v8934_v8 }
 0xddc   :  { %7198 = vmatmul.mubr.msk.f32.vlgmr.msra.gmra.mrb[32].mxu1 %vm294_vm0, %v2765_v61 }
 0xddd   :  { %7200 = vmatprep.mubr.msk.f32.mxu1 %vm294_vm0, %v2770_v47  ;;  %7819 = vmatpush3.bf16.msra.mxu1 %v8934_v8 }
 0xdde   :  { %7821 = vmatprep.subr.bf16.mxu1 %v8936_v27 }
 0xde0   :  { %7201 = vmatmul.mubr.msk.f32.gmra.mrb[34].mxu1 %vm294_vm0, %v2775_v54  ;;  %v8271_v54 = vld [vmem:[%s9826_s8] sm:$0xff] }
 0xde1   :  { %7823 = vmatpush3.bf16.msra.mxu1 %v8936_v27 }
 0xeaf   :  { %v7199_v3 = vpop.f32.mrb[32].mxu1 }
 0xeb0   :  { %v2959_v5 = vadd.f32 %v7199_v3, %v8853_v2  ;;  %v2953_v53 = vpop.f32.mrb[33].mxu1 }
 0xeb1   :  { %v2954_v56 = vadd.f32 %v2953_v53, %v8845_v1 }
 0xeb2   :  { %v2975_v62 = vsel %vm1076_vm3, %v2959_v5, -inf }
 0xeb3   :  { %2976 = vmax.xlane.f32.xlu0 %v2975_v62  ;;  %v7202_v0 = vpop.f32.mrb[34].mxu1  ;;  %v2972_v8 = vsel %vm1076_vm3, %v2954_v56, -inf }
 0xeb4   :  { %v2969_v55 = vadd.f32 %v7202_v0, %v8858_v21  ;;  %v2963_v7 = vpop.f32.mrb[35].mxu1  ;;  %2973 = vmax.xlane.f32.xlu1 %v2972_v8 }
 0xeb5   :  { %v2964_v42 = vadd.f32 %v2963_v7, %v8875_v14 }
 0xeb6   :  { %v2981_v27 = vsel %vm1076_vm3, %v2969_v55, -inf }
 0xeb7   :  { %2982 = vmax.xlane.f32.xlu0 %v2981_v27  ;;  %v2978_v2 = vsel %vm1076_vm3, %v2964_v42, -inf }
 0xeb8   :  { %2979 = vmax.xlane.f32.xlu1 %v2978_v2 }
 0xf40   :  { %v2977_v6 = vpop.xlane.xlu0 %2976 }
 0xf41   :  { %v2985_v1 = vsub.f32 %v2959_v5, %v2977_v6  ;;  %v2974_v19 = vpop.xlane.xlu1 %2973 }
 0xf42   :  { %v2984_v24 = vsub.f32 %v2954_v56, %v2974_v19 }
 0xf43   :  { %v2990_v9 = vmul.f32 1.442695, %v2985_v1 }
 0xf44   :  { %v2988_v20 = vmul.f32 1.442695, %v2984_v24  ;;  %v2983_v50 = vpop.xlane.xlu0 %2982 }
 0xf45   :  { %8148 = vpow2.f32 %v2990_v9  ;;  %v2987_v48 = vsub.f32 %v2969_v55, %v2983_v50  ;;  %v2980_v21 = vpop.xlane.xlu1 %2979 }
 0xf46   :  { %8150 = vpow2.f32 %v2988_v20  ;;  %v2986_v49 = vsub.f32 %v2964_v42, %v2980_v21 }
 0xf47   :  { %v2994_v38 = vmul.f32 1.442695, %v2987_v48 }
 0xf48   :  { %v2992_v14 = vmul.f32 1.442695, %v2986_v49 }
 0xf49   :  { %8152 = vpow2.f32 %v2994_v38 }
 0xf4a   :  { %8154 = vpow2.f32 %v2992_v14 }
 0xf4f   :  { %v8149_v18 = vpop.eup %8148 }
 0xf50   :  { %v8151_v31 = vpop.eup %8150  ;;  %v2999_v39 = vsel %vm1076_vm3, %v8149_v18, 0.0 }
 0xf51   :  { %3000 = vadd.xlane.f32.xlu0 %v2999_v39  ;;  %v2996_v11 = vsel %vm1076_vm3, %v8151_v31, 0.0 }
 0xf52   :  { %2997 = vadd.xlane.f32.xlu1 %v2996_v11 }
 0xf53   :  { %v8153_v45 = vpop.eup %8152 }
 0xf54   :  { %v8155_v34 = vpop.eup %8154  ;;  %v3005_v16 = vsel %vm1076_vm3, %v8153_v45, 0.0 }
 0xf55   :  { %3006 = vadd.xlane.f32.xlu0 %v3005_v16  ;;  %v3002_v28 = vsel %vm1076_vm3, %v8155_v34, 0.0  ;;  %v182_v16 = vld [vmem:[%s9831_s12] sm:$0xff] }
 0xf56   :  { %3003 = vadd.xlane.f32.xlu1 %v3002_v28  ;;  %v183_v28 = vld [vmem:[%s9831_s12 + $0x8] sm:$0xff] }
 0xfde   :  { %v3001_v23 = vpop.xlane.xlu0 %3000 }
 0xfdf   :  { %8156 = vrcp.f32 %v3001_v23  ;;  %v2998_v36 = vpop.xlane.xlu1 %2997  ;;  %v7824_v23 = vpack.c.bf16 %v183_v28, %v182_v16  ;;  %v3285_v16 = vrot.slane %v9014_v22, %v8541_v60 }
 0xfe0   :  { %8158 = vrcp.f32 %v2998_v36  ;;  %v184_v36 = vld [vmem:[%s9831_s12 + $0x10] sm:$0xff] }
 0xfe1   :  { %7825 = vmatprep.subr.bf16.mxu0 %v7824_v23 }
 0xfe2   :  { %v3007_v46 = vpop.xlane.xlu0 %3006  ;;  %7827 = vmatpush3.bf16.msra.mxu0 %v7824_v23 }
 0xfe3   :  { %8160 = vrcp.f32 %v3007_v46  ;;  %v3004_v26 = vpop.xlane.xlu1 %3003  ;;  %v185_v46 = vld [vmem:[%s9831_s12 + $0x18] sm:$0xff] }
 0xfe4   :  { %8162 = vrcp.f32 %v3004_v26  ;;  %v7828_v26 = vpack.c.bf16 %v185_v46, %v184_v36 }
 0xfe6   :  { %7829 = vmatprep.subr.bf16.mxu0 %v7828_v26 }
 0xfe7   :  { %7831 = vmatpush3.bf16.msra.mxu0 %v7828_v26 }
 0xfe9   :  { %v8157_v37 = vpop.eup %8156 }
 0xfea   :  { %v8159_v35 = vpop.eup %8158  ;;  %v3013_v41 = vmul.f32 %v8157_v37, %v8149_v18 }
 0xfeb   :  { %v3012_v32 = vmul.f32 %v8159_v35, %v8151_v31 }
 0xfed   :  { %v8161_v43 = vpop.eup %8160  ;;  %7225 = vmatprep.mubr.msk.f32.mxu1 %vm1076_vm3, %v3012_v32 }
 0xfee   :  { %v8163_v44 = vpop.eup %8162  ;;  %7226 = vmatmul.mubr.msk.f32.vlgmr.msra.gmra.mrb[24].mxu1 %vm1076_vm3, %v3013_v41  ;;  %v3015_v51 = vmul.f32 %v8161_v43, %v8153_v45 }
 0xfef   :  { %v3014_v29 = vmul.f32 %v8163_v44, %v8155_v34 }
 0xff1   :  { %7228 = vmatprep.mubr.msk.f32.mxu1 %vm1076_vm3, %v3014_v29 }
 0xff2   :  { %7229 = vmatmul.mubr.msk.f32.gmra.mrb[26].mxu1 %vm1076_vm3, %v3015_v51 }
0x10c1   :  { %v7227_v58 = vpop.f32.mrb[24].mxu1 }
0x10c2   :  { %v3203_v61 = vadd.f32 %v7227_v58, %v8500_v15  ;;  %v3179_v47 = vpop.f32.mrb[25].mxu1 }
0x10c3   :  { %v3202_v3 = vadd.f32 %v8271_v54, %v3179_v47  ;;  %v3269_v54 = vrot.slane %v9014_v22, %v8493_v4 }
0x10c4   :  { %v9065_v5 = vadd.f32 %v3209_v57, %v3203_v61 }
0x10c5   :  { %v9067_v53 = vadd.f32 %v3209_v57, %v3202_v3  ;;  %v7230_v56 = vpop.f32.mrb[26].mxu1 }
0x10c6   :  { %v3205_v62 = vadd.f32 %v7230_v56, %v8514_v30  ;;  %v3189_v0 = vpop.f32.mrb[27].mxu1  ;;  %v3217_v8 = vsel %vm1076_vm3, %v9065_v5, 0.0 }
0x10c7   :  { %v3204_v55 = vadd.f32 %v3189_v0, %v8507_v25  ;;  %3218 = vadd.xlane.f32.xlu0 %v3217_v8  ;;  %v3214_v15 = vsel %vm1076_vm3, %v9067_v53, 0.0  ;;  %v3277_v8 = vrot.slane %v9014_v22, %v8538_v59 }
0x10c8   :  { %v9075_v7 = vadd.f32 %v3209_v57, %v3205_v62  ;;  %3215 = vadd.xlane.f32.xlu1 %v3214_v15 }
0x10c9   :  { %v9077_v42 = vadd.f32 %v3209_v57, %v3204_v55 }
0x10ca   :  { %v3223_v27 = vsel %vm1076_vm3, %v9075_v7, 0.0 }
0x10cb   :  { %3224 = vadd.xlane.f32.xlu0 %v3223_v27  ;;  %v3220_v30 = vsel %vm1076_vm3, %v9077_v42, 0.0 }
0x10cc   :  { %3221 = vadd.xlane.f32.xlu1 %v3220_v30 }
0x1154   :  { %v3219_v2 = vpop.xlane.xlu0 %3218 }
0x1155   :  { %v3227_v6 = vmul.f32 0.03125, %v3219_v2  ;;  %v3216_v25 = vpop.xlane.xlu1 %3215 }
0x1156   :  { %v3226_v1 = vmul.f32 0.03125, %v3216_v25 }
0x1157   :  { %v3231_v19 = vsub.f32 %v9065_v5, %v3227_v6 }
0x1158   :  { %v3230_v24 = vsub.f32 %v9067_v53, %v3226_v1  ;;  %v3225_v9 = vpop.xlane.xlu0 %3224 }
0x1159   :  { %v3229_v20 = vmul.f32 0.03125, %v3225_v9  ;;  %v3222_v50 = vpop.xlane.xlu1 %3221  ;;  %v3235_v48 = vmul.f32 %v3231_v19, %v3231_v19 }
0x115a   :  { %v3228_v21 = vmul.f32 0.03125, %v3222_v50  ;;  %v3234_v49 = vmul.f32 %v3230_v24, %v3230_v24 }
0x115b   :  { %v3233_v38 = vsub.f32 %v9075_v7, %v3229_v20  ;;  %v3241_v14 = vsel %vm1076_vm3, %v3235_v48, 0.0  ;;  %v191_v48 = vld [vmem:[%s9832_s13 + $0x8] sm:$0xff] }
0x115c   :  { %v3232_v18 = vsub.f32 %v9077_v42, %v3228_v21  ;;  %3242 = vadd.xlane.f32.xlu0 %v3241_v14  ;;  %v3238_v31 = vsel %vm1076_vm3, %v3234_v49, 0.0  ;;  %v192_v49 = vld [vmem:[%s9832_s13 + $0x10] sm:$0xff] }
0x115d   :  { %3239 = vadd.xlane.f32.xlu1 %v3238_v31  ;;  %v3237_v39 = vmul.f32 %v3233_v38, %v3233_v38  ;;  %v195_v31 = vld [vmem:[%s9832_s13 + $0x28] sm:$0xff] }
0x115e   :  { %v3236_v11 = vmul.f32 %v3232_v18, %v3232_v18 }
0x115f   :  { %v3247_v45 = vsel %vm1076_vm3, %v3237_v39, 0.0 }
0x1160   :  { %3248 = vadd.xlane.f32.xlu0 %v3247_v45  ;;  %v3244_v34 = vsel %vm1076_vm3, %v3236_v11, 0.0  ;;  %v196_v11 = vld [vmem:[%s9832_s13 + $0x30] sm:$0xff]  ;;  %v197_v45 = vld [vmem:[%s9832_s13 + $0x38] sm:$0xff] }
0x1161   :  { %3245 = vadd.xlane.f32.xlu1 %v3244_v34  ;;  %v7844_v34 = vpack.c.bf16 %v197_v45, %v196_v11  ;;  %v3524_v11 = vrot.slane %v9014_v22, %v8624_v52 }
0x11e9   :  { %v3243_v37 = vpop.xlane.xlu0 %3242 }
0x11ea   :  { %v3251_v35 = vmul.f32 0.03125, %v3243_v37  ;;  %v3240_v32 = vpop.xlane.xlu1 %3239 }
0x11eb   :  { %v3250_v41 = vmul.f32 0.03125, %v3240_v32 }
0x11ec   :  { %v3255_v43 = vadd.f32 1e-05, %v3251_v35 }
0x11ed   :  { %v3254_v44 = vadd.f32 1e-05, %v3250_v41  ;;  %v3249_v29 = vpop.xlane.xlu0 %3248 }
0x11ee   :  { %8164 = vrsqrt.f32 %v3255_v43  ;;  %v3253_v51 = vmul.f32 0.03125, %v3249_v29  ;;  %v3246_v57 = vpop.xlane.xlu1 %3245 }
0x11ef   :  { %8166 = vrsqrt.f32 %v3254_v44  ;;  %v3252_v58 = vmul.f32 0.03125, %v3246_v57 }
0x11f0   :  { %v3257_v61 = vadd.f32 1e-05, %v3253_v51 }
0x11f1   :  { %v3256_v47 = vadd.f32 1e-05, %v3252_v58 }
0x11f2   :  { %8168 = vrsqrt.f32 %v3257_v61 }
0x11f3   :  { %8170 = vrsqrt.f32 %v3256_v47 }
0x11f8   :  { %v8165_v3 = vpop.eup %8164 }
0x11f9   :  { %v8167_v56 = vpop.eup %8166  ;;  %v3263_v62 = vmul.f32 %v8165_v3, %v3231_v19 }
0x11fa   :  { %v3262_v0 = vmul.f32 %v8167_v56, %v3230_v24  ;;  %v190_v24 = vld [vmem:[%s9832_s13] sm:$0xff] }
0x11fb   :  { %v3271_v55 = vmul.f32 %v3269_v54, %v3263_v62  ;;  %v7832_v21 = vpack.c.bf16 %v191_v48, %v190_v24 }
0x11fc   :  { %v8169_v15 = vpop.eup %8168  ;;  %v3270_v27 = vmul.f32 %v3269_v54, %v3262_v0 }
0x11fd   :  { %v8171_v30 = vpop.eup %8170  ;;  %v3265_v2 = vmul.f32 %v8169_v15, %v3233_v38  ;;  %v3279_v1 = vadd.f32 %v3277_v8, %v3271_v55  ;;  %7833 = vmatprep.subr.bf16.mxu0 %v7832_v21  ;;  %v193_v38 = vld [vmem:[%s9832_s13 + $0x18] sm:$0xff] }
0x11fe   :  { %v3278_v6 = vadd.f32 %v3277_v8, %v3270_v27  ;;  %v3264_v25 = vmul.f32 %v8171_v30, %v3232_v18  ;;  %v7836_v14 = vpack.c.bf16 %v193_v38, %v192_v49  ;;  %v194_v18 = vld [vmem:[%s9832_s13 + $0x20] sm:$0xff] }
0x11ff   :  { %v3273_v9 = vmul.f32 %v3269_v54, %v3265_v2  ;;  %v7840_v39 = vpack.c.bf16 %v195_v31, %v194_v18 }
0x1200   :  { %7239 = vmatprep.mubr.msk.f32.mxu0 %vm1076_vm3, %v3278_v6  ;;  %v3272_v20 = vmul.f32 %v3269_v54, %v3264_v25 }
0x1201   :  { %7240 = vmatmul.mubr.msk.f32.vlgmr.msra.gmra.mrb[54].mxu0 %vm1076_vm3, %v3279_v1  ;;  %v3281_v19 = vadd.f32 %v3277_v8, %v3273_v9 }
0x1202   :  { %v3280_v50 = vadd.f32 %v3277_v8, %v3272_v20  ;;  %7835 = vmatpush3.bf16.msra.mxu0 %v7832_v21 }
0x1203   :  { %7837 = vmatprep.subr.bf16.mxu0 %v7836_v14 }
0x1204   :  { %7242 = vmatprep.mubr.msk.f32.mxu0 %vm1076_vm3, %v3280_v50 }
0x1205   :  { %7243 = vmatmul.mubr.msk.f32.gmra.mrb[56].mxu0 %vm1076_vm3, %v3281_v19 }
0x1206   :  { %7839 = vmatpush3.bf16.msra.mxu0 %v7836_v14 }
0x1207   :  { %7841 = vmatprep.subr.bf16.mxu0 %v7840_v39 }
0x120a   :  { %7843 = vmatpush3.bf16.msra.mxu0 %v7840_v39 }
0x120b   :  { %7845 = vmatprep.subr.bf16.mxu0 %v7844_v34 }
0x120e   :  { %7847 = vmatpush3.bf16.msra.mxu0 %v7844_v34 }
0x12d4   :  { %v7241_v28 = vpop.f32.mrb[54].mxu0 }
0x12d5   :  { %v3370_v23 = vadd.f32 %v7241_v28, %v3285_v16  ;;  %v3364_v36 = vpop.f32.mrb[55].mxu0 }
0x12d6   :  { %v3365_v46 = vadd.f32 %v3364_v36, %v3285_v16 }
0x12d7   :  { %v3384_v26 = vmul.f32 %v3370_v23, %v3370_v23 }
0x12d8   :  { %v3383_v37 = vmul.f32 %v3365_v46, %v3365_v46  ;;  %v7244_v35 = vpop.f32.mrb[56].mxu0 }
0x12d9   :  { %v3388_v32 = vmul.f32 %v3384_v26, %v3370_v23  ;;  %v3380_v41 = vadd.f32 %v7244_v35, %v3285_v16  ;;  %v3374_v43 = vpop.f32.mrb[57].mxu0 }
0x12da   :  { %v3387_v44 = vmul.f32 %v3383_v37, %v3365_v46  ;;  %v3375_v29 = vadd.f32 %v3374_v43, %v3285_v16 }
0x12db   :  { %v3392_v51 = vmul.f32 0.044715, %v3388_v32  ;;  %v3386_v57 = vmul.f32 %v3380_v41, %v3380_v41 }
0x12dc   :  { %v3391_v58 = vmul.f32 0.044715, %v3387_v44  ;;  %v3385_v61 = vmul.f32 %v3375_v29, %v3375_v29 }
0x12dd   :  { %v3396_v47 = vadd.f32 %v3392_v51, %v3370_v23  ;;  %v3390_v54 = vmul.f32 %v3386_v57, %v3380_v41 }
0x12de   :  { %v3395_v3 = vadd.f32 %v3391_v58, %v3365_v46  ;;  %v3389_v56 = vmul.f32 %v3385_v61, %v3375_v29 }
0x12df   :  { %v3400_v62 = vmul.f32 0.7978846, %v3396_v47  ;;  %v3394_v0 = vmul.f32 0.044715, %v3390_v54 }
0x12e0   :  { %v3399_v8 = vmul.f32 0.7978846, %v3395_v3  ;;  %v3393_v55 = vmul.f32 0.044715, %v3389_v56 }
0x12e1   :  { %8172 = vtanh.f32 %v3400_v62  ;;  %v3398_v15 = vadd.f32 %v3394_v0, %v3380_v41 }
0x12e2   :  { %8174 = vtanh.f32 %v3399_v8  ;;  %v3397_v27 = vadd.f32 %v3393_v55, %v3375_v29 }
0x12e3   :  { %v3402_v30 = vmul.f32 0.7978846, %v3398_v15 }
0x12e4   :  { %v3401_v2 = vmul.f32 0.7978846, %v3397_v27 }
0x12e5   :  { %8176 = vtanh.f32 %v3402_v30 }
0x12e6   :  { %8178 = vtanh.f32 %v3401_v2 }
0x12eb   :  { %v8173_v6 = vpop.eup %8172 }
0x12ec   :  { %v8175_v25 = vpop.eup %8174  ;;  %v3408_v1 = vadd.f32 1.0, %v8173_v6 }
0x12ed   :  { %v3407_v9 = vadd.f32 1.0, %v8175_v25  ;;  %v102_v25 = vld [vmem:[%s9827_s9 + $0x80] sm:$0xff] }
0x12ee   :  { %v3412_v20 = vmul.f32 0.5, %v3408_v1  ;;  %v103_v1 = vld [vmem:[%s9827_s9 + $0x88] sm:$0xff] }
0x12ef   :  { %v8177_v50 = vpop.eup %8176  ;;  %v3411_v19 = vmul.f32 0.5, %v3407_v9  ;;  %v7848_v9 = vpack.c.bf16 %v103_v1, %v102_v25  ;;  %v107_v25 = vld [vmem:[%s9827_s9 + $0xa8] sm:$0xff] }
0x12f0   :  { %v8179_v24 = vpop.eup %8178  ;;  %v3410_v48 = vadd.f32 1.0, %v8177_v50  ;;  %v3416_v38 = vmul.f32 %v3412_v20, %v3370_v23  ;;  %v104_v20 = vld [vmem:[%s9827_s9 + $0x90] sm:$0xff]  ;;  %v105_v50 = vld [vmem:[%s9827_s9 + $0x98] sm:$0xff] }
0x12f1   :  { %v3415_v21 = vmul.f32 %v3411_v19, %v3365_v46  ;;  %v3409_v49 = vadd.f32 1.0, %v8179_v24  ;;  %7849 = vmatprep.subr.bf16.mxu1 %v7848_v9  ;;  %v7852_v19 = vpack.c.bf16 %v105_v50, %v104_v20  ;;  %v134_v24 = vld [vmem:[%s9828_s10 + $0x80] sm:$0xff]  ;;  %v109_v20 = vld [vmem:[%s9827_s9 + $0xb8] sm:$0xff] }
0x12f2   :  { %v3414_v14 = vmul.f32 0.5, %v3410_v48  ;;  %7851 = vmatpush3.bf16.msra.mxu1 %v7848_v9  ;;  %v135_v48 = vld [vmem:[%s9828_s10 + $0x88] sm:$0xff]  ;;  %v108_v9 = vld [vmem:[%s9827_s9 + $0xb0] sm:$0xff] }
0x12f3   :  { %7261 = vmatprep.mubr.msk.f32.mxu0 %vm3419_vm6, %v3415_v21  ;;  %v3413_v18 = vmul.f32 0.5, %v3409_v49  ;;  %7853 = vmatprep.subr.bf16.mxu1 %v7852_v19  ;;  %v7856_v21 = vpack.c.bf16 %v135_v48, %v134_v24  ;;  %v7888_v50 = vpack.c.bf16 %v109_v20, %v108_v9 }
0x12f4   :  { %7262 = vmatmul.mubr.msk.f32.vlgmr.msra.gmra.mrb[58].mxu0 %vm3419_vm6, %v3416_v38  ;;  %v3418_v39 = vmul.f32 %v3414_v14, %v3380_v41 }
0x12f5   :  { %v3417_v31 = vmul.f32 %v3413_v18, %v3375_v29 }
0x12f6   :  { %7855 = vmatpush3.bf16.msra.mxu1 %v7852_v19  ;;  %v9266_v19 = vld [vmem:[%s9823_s17 + $0x10] sm:$0xff] }
0x12f7   :  { %7264 = vmatprep.mubr.msk.f32.mxu0 %vm3419_vm6, %v3417_v31  ;;  %7857 = vmatprep.subr.bf16.mxu1 %v7856_v21  ;;  %v3600_v24 = vrot.slane %v9266_v19, %v8416_v17 }
0x12f8   :  { %7265 = vmatmul.mubr.msk.f32.gmra.mrb[60].mxu0 %vm3419_vm6, %v3418_v39 }
0x13c7   :  { %v7263_v45 = vpop.f32.mrb[58].mxu0 }
0x13c8   :  { %v3518_v34 = vadd.f32 %v7263_v45, %v9065_v5  ;;  %v3498_v16 = vpop.f32.mrb[59].mxu0 }
0x13c9   :  { %v3517_v28 = vadd.f32 %v3498_v16, %v9067_v53 }
0x13ca   :  { %v9145_v23 = vadd.f32 %v3524_v11, %v3518_v34 }
0x13cb   :  { %v9147_v36 = vadd.f32 %v3524_v11, %v3517_v28  ;;  %v7266_v46 = vpop.f32.mrb[60].mxu0 }
0x13cc   :  { %v3520_v26 = vadd.f32 %v7266_v46, %v9075_v7  ;;  %v3508_v37 = vpop.f32.mrb[61].mxu0  ;;  %v3532_v35 = vsel %vm1076_vm3, %v9145_v23, 0.0 }
0x13cd   :  { %v3519_v32 = vadd.f32 %v3508_v37, %v9077_v42  ;;  %3533 = vadd.xlane.f32.xlu0 %v3532_v35  ;;  %v3529_v5 = vsel %vm1076_vm3, %v9147_v36, 0.0 }
0x13ce   :  { %v9155_v41 = vadd.f32 %v3524_v11, %v3520_v26  ;;  %3530 = vadd.xlane.f32.xlu1 %v3529_v5  ;;  %v3584_v26 = vrot.slane %v9014_v22, %v8648_v10  ;;  %v3592_v5 = vrot.slane %v9014_v22, %v8959_v33 }
0x13cf   :  { %v9157_v53 = vadd.f32 %v3524_v11, %v3519_v32 }
0x13d0   :  { %v3538_v43 = vsel %vm1076_vm3, %v9155_v41, 0.0 }
0x13d1   :  { %3539 = vadd.xlane.f32.xlu0 %v3538_v43  ;;  %v3535_v7 = vsel %vm1076_vm3, %v9157_v53, 0.0 }
0x13d2   :  { %3536 = vadd.xlane.f32.xlu1 %v3535_v7 }
0x145a   :  { %v3534_v44 = vpop.xlane.xlu0 %3533 }
0x145b   :  { %v3542_v29 = vmul.f32 0.03125, %v3534_v44  ;;  %v3531_v42 = vpop.xlane.xlu1 %3530 }
0x145c   :  { %v3541_v51 = vmul.f32 0.03125, %v3531_v42  ;;  %v136_v42 = vld [vmem:[%s9828_s10 + $0x90] sm:$0xff] }
0x145d   :  { %v3546_v57 = vsub.f32 %v9145_v23, %v3542_v29 }
0x145e   :  { %v3545_v58 = vsub.f32 %v9147_v36, %v3541_v51  ;;  %v3540_v61 = vpop.xlane.xlu0 %3539  ;;  %v137_v51 = vld [vmem:[%s9828_s10 + $0x98] sm:$0xff] }
0x145f   :  { %v3544_v47 = vmul.f32 0.03125, %v3540_v61  ;;  %v3537_v54 = vpop.xlane.xlu1 %3536  ;;  %v3550_v3 = vmul.f32 %v3546_v57, %v3546_v57 }
0x1460   :  { %v3543_v56 = vmul.f32 0.03125, %v3537_v54  ;;  %v3549_v62 = vmul.f32 %v3545_v58, %v3545_v58 }
0x1461   :  { %v3548_v0 = vsub.f32 %v9155_v41, %v3544_v47  ;;  %v3556_v8 = vsel %vm1076_vm3, %v3550_v3, 0.0 }
0x1462   :  { %v3547_v55 = vsub.f32 %v9157_v53, %v3543_v56  ;;  %3557 = vadd.xlane.f32.xlu0 %v3556_v8  ;;  %v3553_v15 = vsel %vm1076_vm3, %v3549_v62, 0.0  ;;  %v166_v62 = vld [vmem:[%s9829_s11 + $0x80] sm:$0xff]  ;;  %v167_v8 = vld [vmem:[%s9829_s11 + $0x88] sm:$0xff] }
0x1463   :  { %3554 = vadd.xlane.f32.xlu1 %v3553_v15  ;;  %v3552_v27 = vmul.f32 %v3548_v0, %v3548_v0  ;;  %v7876_v15 = vpack.c.bf16 %v167_v8, %v166_v62  ;;  %v171_v62 = vld [vmem:[%s9829_s11 + $0xa8] sm:$0xff] }
0x1464   :  { %v3551_v30 = vmul.f32 %v3547_v55, %v3547_v55 }
0x1465   :  { %v3562_v2 = vsel %vm1076_vm3, %v3552_v27, 0.0  ;;  %v168_v27 = vld [vmem:[%s9829_s11 + $0x90] sm:$0xff] }
0x1466   :  { %3563 = vadd.xlane.f32.xlu0 %v3562_v2  ;;  %v3559_v6 = vsel %vm1076_vm3, %v3551_v30, 0.0  ;;  %v169_v30 = vld [vmem:[%s9829_s11 + $0x98] sm:$0xff] }
0x1467   :  { %3560 = vadd.xlane.f32.xlu1 %v3559_v6  ;;  %v7880_v2 = vpack.c.bf16 %v169_v30, %v168_v27  ;;  %v106_v6 = vld [vmem:[%s9827_s9 + $0xa0] sm:$0xff] }
0x1468   :  { %v7884_v1 = vpack.c.bf16 %v107_v25, %v106_v6  ;;  %v172_v25 = vld [vmem:[%s9829_s11 + $0xb0] sm:$0xff] }
0x14ef   :  { %v3558_v49 = vpop.xlane.xlu0 %3557 }
0x14f0   :  { %v3566_v38 = vmul.f32 0.03125, %v3558_v49  ;;  %v3555_v14 = vpop.xlane.xlu1 %3554 }
0x14f1   :  { %v3565_v18 = vmul.f32 0.03125, %v3555_v14 }
0x14f2   :  { %v3570_v31 = vadd.f32 1e-05, %v3566_v38 }
0x14f3   :  { %v3569_v39 = vadd.f32 1e-05, %v3565_v18  ;;  %v3564_v11 = vpop.xlane.xlu0 %3563 }
0x14f4   :  { %8180 = vrsqrt.f32 %v3570_v31  ;;  %v3568_v45 = vmul.f32 0.03125, %v3564_v11  ;;  %v3561_v34 = vpop.xlane.xlu1 %3560 }
0x14f5   :  { %8182 = vrsqrt.f32 %v3569_v39  ;;  %v3567_v16 = vmul.f32 0.03125, %v3561_v34 }
0x14f6   :  { %v3572_v28 = vadd.f32 1e-05, %v3568_v45 }
0x14f7   :  { %v3571_v46 = vadd.f32 1e-05, %v3567_v16  ;;  %v138_v16 = vld [vmem:[%s9828_s10 + $0xa0] sm:$0xff] }
0x14f8   :  { %8184 = vrsqrt.f32 %v3572_v28  ;;  %v139_v28 = vld [vmem:[%s9828_s10 + $0xa8] sm:$0xff] }
0x14f9   :  { %8186 = vrsqrt.f32 %v3571_v46 }
0x14fe   :  { %v8181_v37 = vpop.eup %8180 }
0x14ff   :  { %v8183_v35 = vpop.eup %8182  ;;  %v3578_v32 = vmul.f32 %v8181_v37, %v3546_v57 }
0x1500   :  { %v3577_v43 = vmul.f32 %v8183_v35, %v3545_v58  ;;  %v7860_v58 = vpack.c.bf16 %v137_v51, %v136_v42  ;;  %v7892_v35 = vpack.c.bf16 %v139_v28, %v138_v16 }
0x1501   :  { %v3586_v7 = vmul.f32 %v3584_v26, %v3578_v32 }
0x1502   :  { %v8185_v44 = vpop.eup %8184  ;;  %v3585_v29 = vmul.f32 %v3584_v26, %v3577_v43  ;;  %v4024_v43 = vrot.slane %v9266_v19, %v8452_v40 }
0x1503   :  { %v8187_v61 = vpop.eup %8186  ;;  %v3580_v47 = vmul.f32 %v8185_v44, %v3548_v0  ;;  %v9201_v3 = vadd.f32 %v3592_v5, %v3586_v7  ;;  %v140_v44 = vld [vmem:[%s9828_s10 + $0xb0] sm:$0xff] }
0x1504   :  { %v9199_v54 = vadd.f32 %v3592_v5, %v3585_v29  ;;  %v3579_v57 = vmul.f32 %v8187_v61, %v3547_v55  ;;  %v141_v29 = vld [vmem:[%s9828_s10 + $0xb8] sm:$0xff] }
0x1505   :  { %v3588_v22 = vmul.f32 %v3584_v26, %v3580_v47 }
0x1506   :  { %v3587_v56 = vmul.f32 %v3584_v26, %v3579_v57  ;;  %7275 = vmatprep.mubr.msk.f32.mxu1 %vm1076_vm3, %v9199_v54 }
0x1507   :  { %7276 = vmatmul.mubr.msk.f32.vlgmr.msra.gmra.mrb[36].mxu1 %vm1076_vm3, %v9201_v3  ;;  %v9215_v55 = vadd.f32 %v3592_v5, %v3588_v22  ;;  %v7896_v22 = vpack.c.bf16 %v141_v29, %v140_v44  ;;  %v142_v44 = vld [vmem:[%s9828_s10 + $0xc0] sm:$0xff]  ;;  %v143_v29 = vld [vmem:[%s9828_s10 + $0xc8] sm:$0xff] }
0x1508   :  { %v9213_v0 = vadd.f32 %v3592_v5, %v3587_v56  ;;  %7859 = vmatpush3.bf16.msra.mxu1 %v7856_v21  ;;  %v170_v56 = vld [vmem:[%s9829_s11 + $0xa0] sm:$0xff] }
0x1509   :  { %7861 = vmatprep.subr.bf16.mxu1 %v7860_v58  ;;  %v7912_v6 = vpack.c.bf16 %v171_v62, %v170_v56  ;;  %v176_v56 = vld [vmem:[%s9829_s11 + $0xd0] sm:$0xff]  ;;  %v177_v62 = vld [vmem:[%s9829_s11 + $0xd8] sm:$0xff] }
0x150a   :  { %7278 = vmatprep.mubr.msk.f32.mxu1 %vm1076_vm3, %v9213_v0 }
0x150b   :  { %7279 = vmatmul.mubr.msk.f32.gmra.mrb[38].mxu1 %vm1076_vm3, %v9215_v55 }
0x150c   :  { %7863 = vmatpush3.bf16.msra.mxu1 %v7860_v58  ;;  %7289 = vmatprep.mubr.msk.f32.mxu1 %vm1076_vm3, %v9199_v54 }
0x150d   :  { %7877 = vmatprep.subr.bf16.mxu1 %v7876_v15 }
0x150f   :  { %7290 = vmatmul.mubr.msk.f32.vlgmr.msra.gmra.mrb[40].mxu1 %vm1076_vm3, %v9201_v3 }
0x1510   :  { %7292 = vmatprep.mubr.msk.f32.mxu1 %vm1076_vm3, %v9213_v0  ;;  %7879 = vmatpush3.bf16.msra.mxu1 %v7876_v15 }
0x1511   :  { %7881 = vmatprep.subr.bf16.mxu1 %v7880_v2 }
0x1513   :  { %7293 = vmatmul.mubr.msk.f32.gmra.mrb[42].mxu1 %vm1076_vm3, %v9215_v55 }
0x1514   :  { %7883 = vmatpush3.bf16.msra.mxu1 %v7880_v2  ;;  %7317 = vmatprep.mubr.msk.f32.mxu1 %vm1076_vm3, %v9199_v54 }
0x1515   :  { %7885 = vmatprep.subr.bf16.mxu1 %v7884_v1 }
0x1517   :  { %7318 = vmatmul.mubr.msk.f32.vlgmr.msra.gmra.mrb[44].mxu1 %vm1076_vm3, %v9201_v3 }
0x1518   :  { %7320 = vmatprep.mubr.msk.f32.mxu1 %vm1076_vm3, %v9213_v0  ;;  %7887 = vmatpush3.bf16.msra.mxu1 %v7884_v1  ;;  %v173_v1 = vld [vmem:[%s9829_s11 + $0xb8] sm:$0xff] }
0x1519   :  { %7889 = vmatprep.subr.bf16.mxu1 %v7888_v50  ;;  %v7916_v9 = vpack.c.bf16 %v173_v1, %v172_v25  ;;  %v146_v1 = vld [vmem:[%s9828_s10 + $0xe0] sm:$0xff] }
0x151b   :  { %7321 = vmatmul.mubr.msk.f32.gmra.mrb[46].mxu1 %vm1076_vm3, %v9215_v55 }
0x151c   :  { %7891 = vmatpush3.bf16.msra.mxu1 %v7888_v50  ;;  %7331 = vmatprep.mubr.msk.f32.mxu1 %vm1076_vm3, %v9199_v54 }
0x151f   :  { %7332 = vmatmul.mubr.msk.f32.vlgmr.msra.gmra.mrb[48].mxu1 %vm1076_vm3, %v9201_v3 }
0x1520   :  { %7334 = vmatprep.mubr.msk.f32.mxu1 %vm1076_vm3, %v9213_v0 }
0x1523   :  { %7335 = vmatmul.mubr.msk.f32.gmra.mrb[50].mxu1 %vm1076_vm3, %v9215_v55 }
0x15da   :  { %v7277_v48 = vpop.f32.mrb[36].mxu1 }
0x15db   :  { %v3679_v21 = vpop.f32.mrb[37].mxu1  ;;  %v3685_v47 = vadd.f32 %v7277_v48, %v3600_v24 }
0x15dc   :  { %v3680_v49 = vadd.f32 %v3679_v21, %v3600_v24 }
0x15de   :  { %v7280_v38 = vpop.f32.mrb[38].mxu1  ;;  %7303 = vmatprep.mubr.msk.f32.mxu0 %vm294_vm0, %v3680_v49 }
0x15df   :  { %v3689_v14 = vpop.f32.mrb[39].mxu1  ;;  %v3695_v30 = vadd.f32 %v7280_v38, %v3600_v24 }
0x15e0   :  { %v3690_v58 = vadd.f32 %v3689_v14, %v3600_v24 }
0x15e2   :  { %v7291_v18 = vpop.f32.mrb[40].mxu1 }
0x15e3   :  { %v3764_v31 = vpop.f32.mrb[41].mxu1 }
0x15e4   :  { %v7864_v39 = vpack.c.bf16 %v7291_v18, %v3764_v31 }
0x15e6   :  { %v7294_v11 = vpop.f32.mrb[42].mxu1  ;;  %7866 = vmatprep.subr.msk.bf16.mxu0 %vm8631_vm5, %v7864_v39 }
0x15e7   :  { %v3774_v45 = vpop.f32.mrb[43].mxu1  ;;  %7869 = vmatpush3.bf16.xpose.msk.msra.mxu0 %vm8631_vm5, %v7864_v39  ;;  %v110_v39 = vld [vmem:[%s9827_s9 + $0xc0] sm:$0xff] }
0x15e8   :  { %v7870_v34 = vpack.c.bf16 %v7294_v11, %v3774_v45  ;;  %v111_v11 = vld [vmem:[%s9827_s9 + $0xc8] sm:$0xff] }
0x15e9   :  { %v7936_v28 = vpack.c.bf16 %v111_v11, %v110_v39  ;;  %v180_v11 = vld [vmem:[%s9829_s11 + $0xf0] sm:$0xff] }
0x15ea   :  { %7872 = vmatprep.subr.msk.bf16.mxu0 %vm8631_vm5, %v7870_v34  ;;  %v7319_v46 = vpop.f32.mrb[44].mxu1 }
0x15eb   :  { %v4002_v26 = vpop.f32.mrb[45].mxu1 }
0x15ec   :  { %v9283_v37 = vpack.c.bf16 %v7319_v46, %v4002_v26 }
0x15ee   :  { %v7322_v32 = vpop.f32.mrb[46].mxu1 }
0x15ef   :  { %7875 = vmatpush3.bf16.xpose.msk.msra.mxu0 %vm8631_vm5, %v7870_v34  ;;  %v4012_v5 = vpop.f32.mrb[47].mxu1 }
0x15f0   :  { %v9289_v7 = vpack.c.bf16 %v7322_v32, %v4012_v5  ;;  %7893 = vmatprep.subr.bf16.mxu0 %v7892_v35  ;;  %v112_v32 = vld [vmem:[%s9827_s9 + $0xd0] sm:$0xff]  ;;  %v113_v5 = vld [vmem:[%s9827_s9 + $0xd8] sm:$0xff] }
0x15f2   :  { %v7333_v42 = vpop.f32.mrb[48].mxu1 }
0x15f3   :  { %v9297_v51 = vadd.f32 %v7333_v42, %v4024_v43  ;;  %v4091_v61 = vpop.f32.mrb[49].mxu1  ;;  %v7944_v42 = vpack.c.bf16 %v143_v29, %v142_v44  ;;  %v9506_v44 = vld [vmem:[%s9830_s7 + $0x10] sm:$0xff] }
0x15f4   :  { %v4092_v57 = vadd.f32 %v4091_v61, %v4024_v43  ;;  %v144_v61 = vld [vmem:[%s9828_s10 + $0xd0] sm:$0xff] }
0x15f6   :  { %7304 = vmatmul.mubr.msk.f32.vlgmr.msra.gmra.mrb[62].mxu0 %vm294_vm0, %v3685_v47  ;;  %v7336_v8 = vpop.f32.mrb[50].mxu1  ;;  %7359 = vmatprep.mubr.msk.f32.mxu1 %vm294_vm0, %v4092_v57  ;;  %v145_v47 = vld [vmem:[%s9828_s10 + $0xd8] sm:$0xff]  ;;  %v174_v57 = vld [vmem:[%s9829_s11 + $0xc0] sm:$0xff] }
0x15f7   :  { %v9307_v15 = vadd.f32 %v7336_v8, %v4024_v43  ;;  %7306 = vmatprep.mubr.msk.f32.mxu0 %vm294_vm0, %v3690_v58  ;;  %v4101_v27 = vpop.f32.mrb[51].mxu1  ;;  %7895 = vmatpush3.bf16.msra.mxu0 %v7892_v35  ;;  %v7968_v8 = vpack.c.bf16 %v177_v62, %v176_v56 }
0x15f8   :  { %v4102_v2 = vadd.f32 %v4101_v27, %v4024_v43  ;;  %7897 = vmatprep.subr.bf16.mxu0 %v7896_v22  ;;  %v7940_v43 = vpack.c.bf16 %v113_v5, %v112_v32  ;;  %v115_v27 = vld [vmem:[%s9827_s9 + $0xe8] sm:$0xff]  ;;  %v9498_v32 = vld [vmem:[%s9830_s7 + $0x18] sm:$0xff] }
0x15fa   :  { %7307 = vmatmul.mubr.msk.f32.gmra.mrb[64].mxu0 %vm294_vm0, %v3695_v30 }
0x15fb   :  { %7899 = vmatpush3.bf16.msra.mxu0 %v7896_v22  ;;  %7345 = vmatprep.mubr.msk.f32.mxu0 %vm1076_vm3, %v9199_v54  ;;  %v175_v22 = vld [vmem:[%s9829_s11 + $0xc8] sm:$0xff] }
0x15fc   :  { %7913 = vmatprep.subr.bf16.mxu0 %v7912_v6  ;;  %v7964_v58 = vpack.c.bf16 %v175_v22, %v174_v57 }
0x15fe   :  { %7346 = vmatmul.mubr.msk.f32.vlgmr.msra.gmra.mrb[66].mxu0 %vm1076_vm3, %v9201_v3 }
0x15ff   :  { %7348 = vmatprep.mubr.msk.f32.mxu0 %vm1076_vm3, %v9213_v0  ;;  %7915 = vmatpush3.bf16.msra.mxu0 %v7912_v6  ;;  %v117_v6 = vld [vmem:[%s9827_s9 + $0xf8] sm:$0xff] }
0x1600   :  { %7917 = vmatprep.subr.bf16.mxu0 %v7916_v9 }
0x1602   :  { %7349 = vmatmul.mubr.msk.f32.gmra.mrb[68].mxu0 %vm1076_vm3, %v9215_v55 }
0x1603   :  { %7919 = vmatpush3.bf16.msra.mxu0 %v7916_v9  ;;  %7373 = vmatprep.mubr.msk.f32.mxu0 %vm1076_vm3, %v9199_v54  ;;  %v147_v9 = vld [vmem:[%s9828_s10 + $0xe8] sm:$0xff] }
0x1606   :  { %7374 = vmatmul.mubr.msk.f32.vlgmr.msra.gmra.mrb[70].mxu0 %vm1076_vm3, %v9201_v3 }
0x1607   :  { %7376 = vmatprep.mubr.msk.f32.mxu0 %vm1076_vm3, %v9213_v0 }
0x160a   :  { %7377 = vmatmul.mubr.msk.f32.gmra.mrb[72].mxu0 %vm1076_vm3, %v9215_v55 }
0x16c9   :  { %v9333_v20 = vpop.f32.mrb[62].mxu0 }
0x16ca   :  { %v9335_v50 = vpop.f32.mrb[63].mxu0 }
0x16cd   :  { %v9337_v24 = vpop.f32.mrb[64].mxu0 }
0x16ce   :  { %v9339_v48 = vpop.f32.mrb[65].mxu0 }
0x16cf   :  { %v9532_v56 = vadd.f32 %v9506_v44, %v9339_v48 }
0x16d1   :  { %v7347_v21 = vpop.f32.mrb[66].mxu0 }
0x16d2   :  { %v4176_v49 = vpop.f32.mrb[67].mxu0 }
0x16d3   :  { %v7900_v38 = vpack.c.bf16 %v7347_v21, %v4176_v49  ;;  %v7988_v21 = vpack.c.bf16 %v147_v9, %v146_v1  ;;  %v148_v49 = vld [vmem:[%s9828_s10 + $0xf0] sm:$0xff] }
0x16d5   :  { %v7350_v14 = vpop.f32.mrb[68].mxu0  ;;  %7902 = vmatprep.subr.msk.bf16.mxu1 %vm8631_vm5, %v7900_v38 }
0x16d6   :  { %v4186_v18 = vpop.f32.mrb[69].mxu0  ;;  %7905 = vmatpush3.bf16.xpose.msk.msra.mxu1 %vm8631_vm5, %v7900_v38  ;;  %v149_v38 = vld [vmem:[%s9828_s10 + $0xf8] sm:$0xff] }
0x16d7   :  { %v7906_v31 = vpack.c.bf16 %v7350_v14, %v4186_v18  ;;  %v7992_v14 = vpack.c.bf16 %v149_v38, %v148_v49  ;;  %v178_v18 = vld [vmem:[%s9829_s11 + $0xe0] sm:$0xff] }
0x16d9   :  { %7908 = vmatprep.subr.msk.bf16.mxu1 %vm8631_vm5, %v7906_v31  ;;  %v7375_v45 = vpop.f32.mrb[70].mxu0 }
0x16da   :  { %v4414_v34 = vpop.f32.mrb[71].mxu0 }
0x16db   :  { %v7920_v16 = vpack.c.bf16 %v7375_v45, %v4414_v34  ;;  %v181_v45 = vld [vmem:[%s9829_s11 + $0xf8] sm:$0xff] }
0x16dc   :  { %v8012_v34 = vpack.c.bf16 %v181_v45, %v180_v11 }
0x16dd   :  { %v7378_v46 = vpop.f32.mrb[72].mxu0  ;;  %7921 = vmatprep.subr.bf16.mxu0 %v7920_v16 }
0x16de   :  { %7911 = vmatpush3.bf16.xpose.msk.msra.mxu1 %vm8631_vm5, %v7906_v31  ;;  %v4424_v26 = vpop.f32.mrb[73].mxu0  ;;  %7923 = vmatpush3.bf16.msra.mxu0 %v7920_v16  ;;  %v179_v31 = vld [vmem:[%s9829_s11 + $0xe8] sm:$0xff] }
0x16df   :  { %v7924_v35 = vpack.c.bf16 %v7378_v46, %v4424_v26  ;;  %7937 = vmatprep.subr.bf16.mxu1 %v7936_v28  ;;  %v8008_v39 = vpack.c.bf16 %v179_v31, %v178_v18 }
0x16e1   :  { %7925 = vmatprep.subr.bf16.mxu0 %v7924_v35 }
0x16e2   :  { %7927 = vmatpush3.bf16.msra.mxu0 %v7924_v35 }
0x16e3   :  { %7929 = vmatprep.subr.bf16.mxu0 %v9283_v37 }
0x16e5   :  { %7360 = vmatmul.mubr.msk.f32.vlgmr.msra.gmra.mrb[52].mxu1 %vm294_vm0, %v9297_v51  ;;  %v7948_v51 = vpack.c.bf16 %v145_v47, %v144_v61 }
0x16e6   :  { %7362 = vmatprep.mubr.msk.f32.mxu1 %vm294_vm0, %v4102_v2  ;;  %7939 = vmatpush3.bf16.msra.mxu1 %v7936_v28  ;;  %v116_v2 = vld [vmem:[%s9827_s9 + $0xf0] sm:$0xff]  ;;  %v9478_v28 = vld [vmem:[%s9830_s7 + $0x8] sm:$0xff] }
0x16e7   :  { %7941 = vmatprep.subr.bf16.mxu1 %v7940_v43  ;;  %v7984_v25 = vpack.c.bf16 %v117_v6, %v116_v2 }
0x16e9   :  { %7363 = vmatmul.mubr.msk.f32.gmra.mrb[54].mxu1 %vm294_vm0, %v9307_v15  ;;  %v114_v15 = vld [vmem:[%s9827_s9 + $0xe0] sm:$0xff] }
0x16ea   :  { %7943 = vmatpush3.bf16.msra.mxu1 %v7940_v43  ;;  %7415 = vmatprep.mubr.msk.f32.mxu1 %vm1076_vm3, %v9199_v54  ;;  %v7980_v30 = vpack.c.bf16 %v115_v27, %v114_v15  ;;  %v3898_v27 = vsel %vm1076_vm3, %v9532_v56, -inf }
0x16eb   :  { %7945 = vmatprep.subr.bf16.mxu1 %v7944_v42 }
0x16ed   :  { %7416 = vmatmul.mubr.msk.f32.vlgmr.msra.gmra.mrb[56].mxu1 %vm1076_vm3, %v9201_v3 }
0x16ee   :  { %7418 = vmatprep.mubr.msk.f32.mxu1 %vm1076_vm3, %v9213_v0  ;;  %7947 = vmatpush3.bf16.msra.mxu1 %v7944_v42  ;;  %v9511_v42 = vadd.f32 %v9478_v28, %v9333_v20 }
0x16ef   :  { %7949 = vmatprep.subr.bf16.mxu1 %v7948_v51 }
0x16f0   :  { %v3895_v20 = vsel %vm1076_vm3, %v9511_v42, -inf }
0x16f1   :  { %7419 = vmatmul.mubr.msk.f32.gmra.mrb[58].mxu1 %vm1076_vm3, %v9215_v55 }
0x16f2   :  { %7951 = vmatpush3.bf16.msra.mxu1 %v7948_v51  ;;  %7429 = vmatprep.mubr.msk.f32.mxu1 %vm1076_vm3, %v9199_v54 }
0x16f3   :  { %7965 = vmatprep.subr.bf16.mxu1 %v7964_v58 }
0x16f5   :  { %7430 = vmatmul.mubr.msk.f32.vlgmr.msra.gmra.mrb[60].mxu1 %vm1076_vm3, %v9201_v3 }
0x16f6   :  { %7432 = vmatprep.mubr.msk.f32.mxu1 %vm1076_vm3, %v9213_v0  ;;  %7967 = vmatpush3.bf16.msra.mxu1 %v7964_v58  ;;  %v9526_v58 = vadd.f32 %v9498_v32, %v9337_v24 }
0x16f7   :  { %7969 = vmatprep.subr.bf16.mxu1 %v7968_v8 }
0x16f8   :  { %v3901_v24 = vsel %vm1076_vm3, %v9526_v58, -inf }
0x16f9   :  { %7433 = vmatmul.mubr.msk.f32.gmra.mrb[62].mxu1 %vm1076_vm3, %v9215_v55 }
0x16fa   :  { %7971 = vmatpush3.bf16.msra.mxu1 %v7968_v8  ;;  %7457 = vmatprep.mubr.msk.f32.mxu1 %vm1076_vm3, %v9199_v54 }
0x16fb   :  { %7981 = vmatprep.subr.bf16.mxu1 %v7980_v30 }
0x16fd   :  { %7458 = vmatmul.mubr.msk.f32.vlgmr.msra.gmra.mrb[64].mxu1 %vm1076_vm3, %v9201_v3 }
0x16fe   :  { %7460 = vmatprep.mubr.msk.f32.mxu1 %vm1076_vm3, %v9213_v0  ;;  %7983 = vmatpush3.bf16.msra.mxu1 %v7980_v30 }
0x16ff   :  { %7985 = vmatprep.subr.bf16.mxu1 %v7984_v25 }
0x1701   :  { %7461 = vmatmul.mubr.msk.f32.gmra.mrb[66].mxu1 %vm1076_vm3, %v9215_v55 }
0x1702   :  { %7987 = vmatpush3.bf16.msra.mxu1 %v7984_v25  ;;  %7485 = vmatprep.mubr.msk.f32.mxu1 %vm1076_vm3, %v9199_v54 }
0x1703   :  { %7989 = vmatprep.subr.bf16.mxu1 %v7988_v21 }
0x1705   :  { %7486 = vmatmul.mubr.msk.f32.vlgmr.msra.gmra.mrb[68].mxu1 %vm1076_vm3, %v9201_v3 }
0x1706   :  { %7488 = vmatprep.mubr.msk.f32.mxu1 %vm1076_vm3, %v9213_v0  ;;  %7991 = vmatpush3.bf16.msra.mxu1 %v7988_v21 }
0x1707   :  { %7993 = vmatprep.subr.bf16.mxu1 %v7992_v14 }
0x1709   :  { %7489 = vmatmul.mubr.msk.f32.gmra.mrb[70].mxu1 %vm1076_vm3, %v9215_v55 }
0x170a   :  { %7995 = vmatpush3.bf16.msra.mxu1 %v7992_v14  ;;  %7499 = vmatprep.mubr.msk.f32.mxu1 %vm1076_vm3, %v9199_v54 }
0x170b   :  { %8009 = vmatprep.subr.bf16.mxu1 %v8008_v39 }
0x170d   :  { %7500 = vmatmul.mubr.msk.f32.vlgmr.msra.gmra.mrb[72].mxu1 %vm1076_vm3, %v9201_v3 }
0x170e   :  { %7502 = vmatprep.mubr.msk.f32.mxu1 %vm1076_vm3, %v9213_v0  ;;  %8011 = vmatpush3.bf16.msra.mxu1 %v8008_v39 }
0x170f   :  { %8013 = vmatprep.subr.bf16.mxu1 %v8012_v34 }
0x1711   :  { %7503 = vmatmul.mubr.msk.f32.gmra.mrb[74].mxu1 %vm1076_vm3, %v9215_v55 }
0x1712   :  { %8015 = vmatpush3.bf16.msra.mxu1 %v8012_v34  ;;  %7527 = vmatprep.mubr.msk.f32.mxu1 %vm1076_vm3, %v9199_v54  ;;  %v9486_v54 = vld [vmem:[%s9830_s7] sm:$0xff] }
0x1713   :  { %v9517_v47 = vadd.f32 %v9486_v54, %v9335_v50 }
0x1715   :  { %7528 = vmatmul.mubr.msk.f32.vlgmr.msra.gmra.mrb[76].mxu1 %vm1076_vm3, %v9201_v3  ;;  %v3892_v62 = vsel %vm1076_vm3, %v9517_v47, -inf }
0x1716   :  { %7530 = vmatprep.mubr.msk.f32.mxu1 %vm1076_vm3, %v9213_v0 }
0x1719   :  { %7531 = vmatmul.mubr.msk.f32.gmra.mrb[78].mxu1 %vm1076_vm3, %v9215_v55 }
0x17b8   :  { %v7361_v16 = vpop.f32.mrb[52].mxu1 }
0x17b9   :  { %v9481_v46 = vadd.f32 %v9478_v28, %v7361_v16  ;;  %v4285_v26 = vpop.f32.mrb[53].mxu1 }
0x17ba   :  { %v9489_v3 = vadd.f32 %v9486_v54, %v4285_v26 }
0x17bb   :  { %v4307_v0 = vsel %vm1076_vm3, %v9481_v46, -inf }
0x17bc   :  { %4308 = vmax.xlane.f32.xlu0 %v4307_v0  ;;  %v7364_v55 = vpop.f32.mrb[54].mxu1  ;;  %v4304_v35 = vsel %vm1076_vm3, %v9489_v3, -inf }
0x17bd   :  { %v9501_v5 = vadd.f32 %v9498_v32, %v7364_v55  ;;  %v4295_v43 = vpop.f32.mrb[55].mxu1  ;;  %4305 = vmax.xlane.f32.xlu1 %v4304_v35 }
0x17be   :  { %v4296_v29 = vadd.f32 %v9506_v44, %v4295_v43 }
0x17bf   :  { %v4313_v61 = vsel %vm1076_vm3, %v9501_v5, -inf }
0x17c0   :  { %4314 = vmax.xlane.f32.xlu0 %v4313_v61  ;;  %v9519_v51 = vpop.f32.mrb[56].mxu1  ;;  %v4310_v57 = vsel %vm1076_vm3, %v4296_v29, -inf }
0x17c1   :  { %v9522_v22 = vpop.f32.mrb[57].mxu1  ;;  %4311 = vmax.xlane.f32.xlu1 %v4310_v57 }
0x17c4   :  { %3896 = vmax.xlane.f32.xlu0 %v3895_v20  ;;  %v9534_v50 = vpop.f32.mrb[58].mxu1 }
0x17c5   :  { %v9538_v8 = vpop.f32.mrb[59].mxu1  ;;  %3893 = vmax.xlane.f32.xlu1 %v3892_v62 }
0x17c8   :  { %3902 = vmax.xlane.f32.xlu0 %v3901_v24  ;;  %v7431_v15 = vpop.f32.mrb[60].mxu1 }
0x17c9   :  { %v4782_v30 = vpop.f32.mrb[61].mxu1  ;;  %3899 = vmax.xlane.f32.xlu1 %v3898_v27 }
0x17ca   :  { %v9544_v48 = vpack.c.bf16 %v7431_v15, %v4782_v30 }
0x17cc   :  { %v7434_v2 = vpop.f32.mrb[62].mxu1 }
0x17cd   :  { %v4792_v6 = vpop.f32.mrb[63].mxu1 }
0x17ce   :  { %v9546_v25 = vpack.c.bf16 %v7434_v2, %v4792_v6 }
0x17d0   :  { %v7459_v1 = vpop.f32.mrb[64].mxu1 }
0x17d1   :  { %v5020_v9 = vpop.f32.mrb[65].mxu1 }
0x17d2   :  { %v9548_v21 = vpack.c.bf16 %v7459_v1, %v5020_v9 }
0x17d4   :  { %v7462_v49 = vpop.f32.mrb[66].mxu1 }
0x17d5   :  { %v5030_v38 = vpop.f32.mrb[67].mxu1 }
0x17d6   :  { %v9550_v14 = vpack.c.bf16 %v7462_v49, %v5030_v38 }
0x17d8   :  { %v9552_v18 = vpop.f32.mrb[68].mxu1 }
0x17d9   :  { %v9554_v31 = vpop.f32.mrb[69].mxu1 }
0x17dc   :  { %v9556_v39 = vpop.f32.mrb[70].mxu1 }
0x17dd   :  { %v9558_v11 = vpop.f32.mrb[71].mxu1 }
0x17e0   :  { %v7501_v45 = vpop.f32.mrb[72].mxu1 }
0x17e1   :  { %v5295_v34 = vpop.f32.mrb[73].mxu1 }
0x17e2   :  { %v9560_v16 = vpack.c.bf16 %v7501_v45, %v5295_v34 }
0x17e4   :  { %v7504_v26 = vpop.f32.mrb[74].mxu1 }
0x17e5   :  { %v5305_v0 = vpop.f32.mrb[75].mxu1 }
0x17e6   :  { %v9562_v55 = vpack.c.bf16 %v7504_v26, %v5305_v0 }
0x17e8   :  { %v7529_v35 = vpop.f32.mrb[76].mxu1 }
0x17e9   :  { %v5533_v43 = vpop.f32.mrb[77].mxu1 }
0x17ea   :  { %v9564_v61 = vpack.c.bf16 %v7529_v35, %v5533_v43 }
0x17ec   :  { %v7532_v57 = vpop.f32.mrb[78].mxu1 }
0x17ed   :  { %v5543_v20 = vpop.f32.mrb[79].mxu1 }
0x17ee   :  { %v9566_v62 = vpack.c.bf16 %v7532_v57, %v5543_v20 }
0x1849   :  { %v4309_v24 = vpop.xlane.xlu0 %4308 }
0x184a   :  { %v4317_v15 = vsub.f32 %v9481_v46, %v4309_v24  ;;  %v4306_v27 = vpop.xlane.xlu1 %4305 }
0x184b   :  { %v4316_v30 = vsub.f32 %v9489_v3, %v4306_v27 }
0x184c   :  { %v4322_v2 = vmul.f32 1.442695, %v4317_v15 }
0x184d   :  { %v4320_v6 = vmul.f32 1.442695, %v4316_v30  ;;  %v4315_v1 = vpop.xlane.xlu0 %4314 }
0x184e   :  { %8188 = vpow2.f32 %v4322_v2  ;;  %v4319_v9 = vsub.f32 %v9501_v5, %v4315_v1  ;;  %v4312_v49 = vpop.xlane.xlu1 %4311 }
0x184f   :  { %8190 = vpow2.f32 %v4320_v6  ;;  %v4318_v38 = vsub.f32 %v4296_v29, %v4312_v49 }
0x1850   :  { %v4326_v45 = vmul.f32 1.442695, %v4319_v9 }
0x1851   :  { %v4324_v34 = vmul.f32 1.442695, %v4318_v38  ;;  %v3897_v26 = vpop.xlane.xlu0 %3896 }
0x1852   :  { %8192 = vpow2.f32 %v4326_v45  ;;  %v3905_v0 = vsub.f32 %v9511_v42, %v3897_v26  ;;  %v3894_v35 = vpop.xlane.xlu1 %3893 }
0x1853   :  { %8194 = vpow2.f32 %v4324_v34  ;;  %v3904_v46 = vsub.f32 %v9517_v47, %v3894_v35 }
0x1854   :  { %v3910_v3 = vmul.f32 1.442695, %v3905_v0 }
0x1855   :  { %v3908_v43 = vmul.f32 1.442695, %v3904_v46  ;;  %v3903_v57 = vpop.xlane.xlu0 %3902 }
0x1856   :  { %8196 = vpow2.f32 %v3910_v3  ;;  %v3907_v20 = vsub.f32 %v9526_v58, %v3903_v57  ;;  %v3900_v5 = vpop.xlane.xlu1 %3899 }
0x1857   :  { %8198 = vpow2.f32 %v3908_v43  ;;  %v3906_v29 = vsub.f32 %v9532_v56, %v3900_v5 }
0x1858   :  { %v8189_v24 = vpop.eup %8188  ;;  %v3914_v15 = vmul.f32 1.442695, %v3907_v20 }
0x1859   :  { %v8191_v27 = vpop.eup %8190  ;;  %v3912_v30 = vmul.f32 1.442695, %v3906_v29  ;;  %v4331_v42 = vsel %vm1076_vm3, %v8189_v24, 0.0 }
0x185a   :  { %8200 = vpow2.f32 %v3914_v15  ;;  %4332 = vadd.xlane.f32.xlu0 %v4331_v42  ;;  %v4328_v47 = vsel %vm1076_vm3, %v8191_v27, 0.0 }
0x185b   :  { %8202 = vpow2.f32 %v3912_v30  ;;  %4329 = vadd.xlane.f32.xlu1 %v4328_v47 }
0x185c   :  { %v8193_v2 = vpop.eup %8192 }
0x185d   :  { %v8195_v6 = vpop.eup %8194  ;;  %v4337_v58 = vsel %vm1076_vm3, %v8193_v2, 0.0 }
0x185e   :  { %4338 = vadd.xlane.f32.xlu0 %v4337_v58  ;;  %v4334_v1 = vsel %vm1076_vm3, %v8195_v6, 0.0 }
0x185f   :  { %4335 = vadd.xlane.f32.xlu1 %v4334_v1 }
0x1860   :  { %v8197_v56 = vpop.eup %8196 }
0x1861   :  { %v8199_v9 = vpop.eup %8198  ;;  %v3919_v49 = vsel %vm1076_vm3, %v8197_v56, 0.0 }
0x1862   :  { %3920 = vadd.xlane.f32.xlu0 %v3919_v49  ;;  %v3916_v38 = vsel %vm1076_vm3, %v8199_v9, 0.0 }
0x1863   :  { %3917 = vadd.xlane.f32.xlu1 %v3916_v38 }
0x1864   :  { %v8201_v45 = vpop.eup %8200 }
0x1865   :  { %v8203_v34 = vpop.eup %8202  ;;  %v3925_v26 = vsel %vm1076_vm3, %v8201_v45, 0.0 }
0x1866   :  { %3926 = vadd.xlane.f32.xlu0 %v3925_v26  ;;  %v3922_v0 = vsel %vm1076_vm3, %v8203_v34, 0.0 }
0x1867   :  { %3923 = vadd.xlane.f32.xlu1 %v3922_v0 }
0x18e7   :  { %v4333_v35 = vpop.xlane.xlu0 %4332 }
0x18e8   :  { %8204 = vrcp.f32 %v4333_v35  ;;  %v4330_v46 = vpop.xlane.xlu1 %4329 }
0x18e9   :  { %8206 = vrcp.f32 %v4330_v46 }
0x18eb   :  { %v4339_v3 = vpop.xlane.xlu0 %4338 }
0x18ec   :  { %8208 = vrcp.f32 %v4339_v3  ;;  %v4336_v43 = vpop.xlane.xlu1 %4335 }
0x18ed   :  { %8210 = vrcp.f32 %v4336_v43 }
0x18ef   :  { %v3921_v57 = vpop.xlane.xlu0 %3920 }
0x18f0   :  { %8212 = vrcp.f32 %v3921_v57  ;;  %v3918_v20 = vpop.xlane.xlu1 %3917 }
0x18f1   :  { %8214 = vrcp.f32 %v3918_v20 }
0x18f2   :  { %v8205_v5 = vpop.eup %8204 }
0x18f3   :  { %v8207_v29 = vpop.eup %8206  ;;  %v3927_v15 = vpop.xlane.xlu0 %3926  ;;  %v4345_v47 = vmul.f32 %v8205_v5, %v8189_v24 }
0x18f4   :  { %8216 = vrcp.f32 %v3927_v15  ;;  %v3924_v30 = vpop.xlane.xlu1 %3923  ;;  %v4344_v42 = vmul.f32 %v8207_v29, %v8191_v27 }
0x18f5   :  { %8218 = vrcp.f32 %v3924_v30 }
0x18f6   :  { %v8209_v58 = vpop.eup %8208  ;;  %7387 = vmatprep.mubr.msk.f32.mxu0 %vm1076_vm3, %v4344_v42 }
0x18f7   :  { %v8211_v1 = vpop.eup %8210  ;;  %7388 = vmatmul.mubr.msk.f32.vlgmr.msra.gmra.mrb[74].mxu0 %vm1076_vm3, %v4345_v47  ;;  %v4347_v38 = vmul.f32 %v8209_v58, %v8193_v2 }
0x18f8   :  { %7931 = vmatpush3.bf16.msra.mxu0 %v9283_v37  ;;  %v4346_v49 = vmul.f32 %v8211_v1, %v8195_v6  ;;  %v4630_v37 = vrot.slane %v9266_v19, %v8493_v4 }
0x18f9   :  { %7933 = vmatprep.subr.bf16.mxu0 %v9289_v7 }
0x18fa   :  { %v8213_v26 = vpop.eup %8212  ;;  %7390 = vmatprep.mubr.msk.f32.mxu0 %vm1076_vm3, %v4346_v49  ;;  %v4698_v3 = vadd.f32 %v9522_v22, %v4630_v37  ;;  %v4708_v22 = vadd.f32 %v9538_v8, %v4630_v37 }
0x18fb   :  { %v8215_v0 = vpop.eup %8214  ;;  %7391 = vmatmul.mubr.msk.f32.gmra.mrb[76].mxu0 %vm1076_vm3, %v4347_v38  ;;  %v3933_v27 = vmul.f32 %v8213_v26, %v8197_v56 }
0x18fc   :  { %7935 = vmatpush3.bf16.msra.mxu0 %v9289_v7  ;;  %v3932_v24 = vmul.f32 %v8215_v0, %v8199_v9  ;;  %v4703_v7 = vadd.f32 %v9519_v51, %v4630_v37 }
0x18fd   :  { %7954 = vmatprep.subr.msk.bf16.mxu0 %vm8631_vm5, %v9544_v48 }
0x18fe   :  { %v8217_v35 = vpop.eup %8216  ;;  %7401 = vmatprep.mubr.msk.f32.mxu0 %vm1076_vm3, %v3932_v24 }
0x18ff   :  { %v8219_v2 = vpop.eup %8218  ;;  %7402 = vmatmul.mubr.msk.f32.vlgmr.msra.gmra.mrb[74].mxu0 %vm1076_vm3, %v3933_v27  ;;  %v3935_v46 = vmul.f32 %v8217_v35, %v8201_v45 }
0x1900   :  { %v3934_v6 = vmul.f32 %v8219_v2, %v8203_v34 }
0x1902   :  { %7404 = vmatprep.mubr.msk.f32.mxu0 %vm1076_vm3, %v3934_v6 }
0x1903   :  { %7405 = vmatmul.mubr.msk.f32.gmra.mrb[76].mxu0 %vm1076_vm3, %v3935_v46 }
0x1904   :  { %7443 = vmatprep.mubr.msk.f32.mxu0 %vm294_vm0, %v4698_v3 }
0x1905   :  { %7957 = vmatpush3.bf16.xpose.msk.msra.mxu0 %vm8631_vm5, %v9544_v48  ;;  %v4713_v48 = vadd.f32 %v9534_v50, %v4630_v37 }
0x1906   :  { %7960 = vmatprep.subr.msk.bf16.mxu0 %vm8631_vm5, %v9546_v25 }
0x190d   :  { %7963 = vmatpush3.bf16.xpose.msk.msra.mxu0 %vm8631_vm5, %v9546_v25 }
0x190e   :  { %7973 = vmatprep.subr.bf16.mxu0 %v9548_v21 }
0x1914   :  { %7444 = vmatmul.mubr.msk.f32.vlgmr.msra.gmra.mrb[78].mxu0 %vm294_vm0, %v4703_v7 }
0x1915   :  { %7446 = vmatprep.mubr.msk.f32.mxu0 %vm294_vm0, %v4708_v22  ;;  %7975 = vmatpush3.bf16.msra.mxu0 %v9548_v21 }
0x1916   :  { %7977 = vmatprep.subr.bf16.mxu0 %v9550_v14 }
0x1918   :  { %7447 = vmatmul.mubr.msk.f32.gmra.mrb[80].mxu0 %vm294_vm0, %v4713_v48 }
0x1919   :  { %7979 = vmatpush3.bf16.msra.mxu0 %v9550_v14 }
0x191a   :  { %7998 = vmatprep.subr.msk.bf16.mxu0 %vm8631_vm5, %v9560_v16 }
0x19e7   :  { %v7445_v51 = vpop.f32.mrb[78].mxu0 }
0x19e8   :  { %v4897_v8 = vadd.f32 %v9478_v28, %v7445_v51  ;;  %v4891_v25 = vpop.f32.mrb[79].mxu0 }
0x19e9   :  { %v4892_v56 = vadd.f32 %v9486_v54, %v4891_v25 }
0x19ea   :  { %v4913_v21 = vsel %vm1076_vm3, %v4897_v8, -inf }
0x19eb   :  { %4914 = vmax.xlane.f32.xlu0 %v4913_v21  ;;  %v7448_v50 = vpop.f32.mrb[80].mxu0  ;;  %v4910_v9 = vsel %vm1076_vm3, %v4892_v56, -inf }
0x19ec   :  { %v4907_v45 = vadd.f32 %v9498_v32, %v7448_v50  ;;  %v4901_v34 = vpop.f32.mrb[81].mxu0  ;;  %4911 = vmax.xlane.f32.xlu1 %v4910_v9  ;;  %v5143_v50 = vrot.slane %v9266_v19, %v8538_v59 }
0x19ed   :  { %v4902_v14 = vadd.f32 %v9506_v44, %v4901_v34 }
0x19ee   :  { %v4919_v43 = vsel %vm1076_vm3, %v4907_v45, -inf }
0x19ef   :  { %4920 = vmax.xlane.f32.xlu0 %v4919_v43  ;;  %v4916_v57 = vsel %vm1076_vm3, %v4902_v14, -inf  ;;  %v5221_v43 = vadd.f32 %v9558_v11, %v5143_v50 }
0x19f0   :  { %4917 = vmax.xlane.f32.xlu1 %v4916_v57 }
0x1a78   :  { %v4915_v20 = vpop.xlane.xlu0 %4914 }
0x1a79   :  { %v4923_v5 = vsub.f32 %v4897_v8, %v4915_v20  ;;  %v4912_v29 = vpop.xlane.xlu1 %4911 }
0x1a7a   :  { %v4922_v15 = vsub.f32 %v4892_v56, %v4912_v29 }
0x1a7b   :  { %v4928_v30 = vmul.f32 1.442695, %v4923_v5 }
0x1a7c   :  { %v4926_v42 = vmul.f32 1.442695, %v4922_v15  ;;  %v4921_v47 = vpop.xlane.xlu0 %4920 }
0x1a7d   :  { %8220 = vpow2.f32 %v4928_v30  ;;  %v4925_v58 = vsub.f32 %v4907_v45, %v4921_v47  ;;  %v4918_v1 = vpop.xlane.xlu1 %4917 }
0x1a7e   :  { %8222 = vpow2.f32 %v4926_v42  ;;  %v4924_v49 = vsub.f32 %v4902_v14, %v4918_v1  ;;  %v5211_v14 = vadd.f32 %v9554_v31, %v5143_v50  ;;  %v5226_v31 = vadd.f32 %v9556_v39, %v5143_v50 }
0x1a7f   :  { %v4932_v38 = vmul.f32 1.442695, %v4925_v58 }
0x1a80   :  { %v4930_v26 = vmul.f32 1.442695, %v4924_v49 }
0x1a81   :  { %8224 = vpow2.f32 %v4932_v38 }
0x1a82   :  { %8226 = vpow2.f32 %v4930_v26 }
0x1a87   :  { %v8221_v0 = vpop.eup %8220 }
0x1a88   :  { %v8223_v24 = vpop.eup %8222  ;;  %v4937_v27 = vsel %vm1076_vm3, %v8221_v0, 0.0 }
0x1a89   :  { %4938 = vadd.xlane.f32.xlu0 %v4937_v27  ;;  %v4934_v35 = vsel %vm1076_vm3, %v8223_v24, 0.0 }
0x1a8a   :  { %4935 = vadd.xlane.f32.xlu1 %v4934_v35 }
0x1a8b   :  { %v8225_v37 = vpop.eup %8224 }
0x1a8c   :  { %v8227_v2 = vpop.eup %8226  ;;  %v4943_v6 = vsel %vm1076_vm3, %v8225_v37, 0.0 }
0x1a8d   :  { %4944 = vadd.xlane.f32.xlu0 %v4943_v6  ;;  %v4940_v46 = vsel %vm1076_vm3, %v8227_v2, 0.0 }
0x1a8e   :  { %4941 = vadd.xlane.f32.xlu1 %v4940_v46 }
0x1b16   :  { %v4939_v3 = vpop.xlane.xlu0 %4938 }
0x1b17   :  { %8228 = vrcp.f32 %v4939_v3  ;;  %v4936_v7 = vpop.xlane.xlu1 %4935 }
0x1b18   :  { %8230 = vrcp.f32 %v4936_v7 }
0x1b1a   :  { %v4945_v22 = vpop.xlane.xlu0 %4944 }
0x1b1b   :  { %8232 = vrcp.f32 %v4945_v22  ;;  %v4942_v48 = vpop.xlane.xlu1 %4941 }
0x1b1c   :  { %8234 = vrcp.f32 %v4942_v48 }
0x1b21   :  { %v8229_v51 = vpop.eup %8228 }
0x1b22   :  { %v8231_v8 = vpop.eup %8230  ;;  %v4951_v56 = vmul.f32 %v8229_v51, %v8221_v0 }
0x1b23   :  { %v4950_v25 = vmul.f32 %v8231_v8, %v8223_v24 }
0x1b25   :  { %v8233_v21 = vpop.eup %8232  ;;  %7471 = vmatprep.mubr.msk.f32.mxu0 %vm1076_vm3, %v4950_v25 }
0x1b26   :  { %v8235_v9 = vpop.eup %8234  ;;  %7472 = vmatmul.mubr.msk.f32.vlgmr.msra.gmra.mrb[74].mxu0 %vm1076_vm3, %v4951_v56  ;;  %v4953_v34 = vmul.f32 %v8233_v21, %v8225_v37 }
0x1b27   :  { %8001 = vmatpush3.bf16.xpose.msk.msra.mxu0 %vm8631_vm5, %v9560_v16  ;;  %v4952_v45 = vmul.f32 %v8235_v9, %v8227_v2  ;;  %v5216_v16 = vadd.f32 %v9552_v18, %v5143_v50 }
0x1b28   :  { %8004 = vmatprep.subr.msk.bf16.mxu0 %vm8631_vm5, %v9562_v55 }
0x1b29   :  { %7474 = vmatprep.mubr.msk.f32.mxu0 %vm1076_vm3, %v4952_v45 }
0x1b2a   :  { %7475 = vmatmul.mubr.msk.f32.gmra.mrb[76].mxu0 %vm1076_vm3, %v4953_v34  ;;  %v5660_v34 = vrot.slane %v9266_v19, %v8541_v60 }
0x1b2b   :  { %7513 = vmatprep.mubr.msk.f32.mxu0 %vm294_vm0, %v5211_v14 }
0x1b2f   :  { %8007 = vmatpush3.bf16.xpose.msk.msra.mxu0 %vm8631_vm5, %v9562_v55 }
0x1b30   :  { %8017 = vmatprep.subr.bf16.mxu0 %v9564_v61 }
0x1b36   :  { %7514 = vmatmul.mubr.msk.f32.vlgmr.msra.gmra.mrb[82].mxu0 %vm294_vm0, %v5216_v16 }
0x1b37   :  { %7516 = vmatprep.mubr.msk.f32.mxu0 %vm294_vm0, %v5221_v43  ;;  %8019 = vmatpush3.bf16.msra.mxu0 %v9564_v61 }
0x1b38   :  { %8021 = vmatprep.subr.bf16.mxu0 %v9566_v62 }
0x1b3a   :  { %7517 = vmatmul.mubr.msk.f32.gmra.mrb[84].mxu0 %vm294_vm0, %v5226_v31 }
0x1b3b   :  { %8023 = vmatpush3.bf16.msra.mxu0 %v9566_v62 }
0x1b3c   :  { %8048 = vmatprep.subr.bf16.mxu0 %v8277_v12 }
0x1c09   :  { %v7515_v63 = vpop.f32.mrb[82].mxu0 }
0x1c0a   :  { %v5410_v18 = vadd.f32 %v9478_v28, %v7515_v63  ;;  %v5404_v11 = vpop.f32.mrb[83].mxu0 }
0x1c0b   :  { %v5405_v55 = vadd.f32 %v9486_v54, %v5404_v11 }
0x1c0c   :  { %v5426_v57 = vsel %vm1076_vm3, %v5410_v18, -inf }
0x1c0d   :  { %5427 = vmax.xlane.f32.xlu0 %v5426_v57  ;;  %v7518_v61 = vpop.f32.mrb[84].mxu0  ;;  %v5423_v39 = vsel %vm1076_vm3, %v5405_v55, -inf }
0x1c0e   :  { %v5414_v20 = vpop.f32.mrb[85].mxu0  ;;  %5424 = vmax.xlane.f32.xlu1 %v5423_v39  ;;  %v5420_v54 = vadd.f32 %v9498_v32, %v7518_v61 }
0x1c0f   :  { %v5415_v1 = vadd.f32 %v9506_v44, %v5414_v20 }
0x1c10   :  { %v5432_v38 = vsel %vm1076_vm3, %v5420_v54, -inf }
0x1c11   :  { %v5429_v26 = vsel %vm1076_vm3, %v5415_v1, -inf }
0x1c9a   :  { %v5428_v5 = vpop.xlane.xlu0 %5427 }
0x1c9b   :  { %v5436_v29 = vsub.f32 %v5410_v18, %v5428_v5  ;;  %v5425_v15 = vpop.xlane.xlu1 %5424 }
0x1c9c   :  { %v5435_v62 = vsub.f32 %v5405_v55, %v5425_v15 }
0x1c9d   :  { %v5441_v30 = vmul.f32 1.442695, %v5436_v29 }
0x1c9e   :  { %v5439_v42 = vmul.f32 1.442695, %v5435_v62 }
0x1c9f   :  { %8236 = vpow2.f32 %v5441_v30 }
0x1ca0   :  { %8238 = vpow2.f32 %v5439_v42 }
0x1ca9   :  { %v8237_v28 = vpop.eup %8236 }
0x1caa   :  { %v8239_v47 = vpop.eup %8238  ;;  %v5450_v58 = vsel %vm1076_vm3, %v8237_v28, 0.0 }
0x1cab   :  { %5451 = vadd.xlane.f32.xlu0 %v5450_v58  ;;  %v5447_v49 = vsel %vm1076_vm3, %v8239_v47, 0.0 }
0x1cac   :  { %5448 = vadd.xlane.f32.xlu1 %v5447_v49  ;;  %v186_v49 = vld [vmem:[%s9831_s12 + $0x20] sm:$0xff] }
0x1caf   :  { %5433 = vmax.xlane.f32.xlu0 %v5432_v38  ;;  %v187_v38 = vld [vmem:[%s9831_s12 + $0x28] sm:$0xff] }
0x1cb0   :  { %5430 = vmax.xlane.f32.xlu1 %v5429_v26  ;;  %v189_v26 = vld [vmem:[%s9831_s12 + $0x38] sm:$0xff] }
0x1d38   :  { %v5452_v0 = vpop.xlane.xlu0 %5451 }
0x1d39   :  { %8240 = vrcp.f32 %v5452_v0  ;;  %v5449_v24 = vpop.xlane.xlu1 %5448 }
0x1d3a   :  { %8242 = vrcp.f32 %v5449_v24 }
0x1d3c   :  { %v5434_v27 = vpop.xlane.xlu0 %5433 }
0x1d3d   :  { %v5438_v32 = vsub.f32 %v5420_v54, %v5434_v27  ;;  %v5431_v35 = vpop.xlane.xlu1 %5430 }
0x1d3e   :  { %v5437_v37 = vsub.f32 %v5415_v1, %v5431_v35 }
0x1d3f   :  { %v5445_v2 = vmul.f32 1.442695, %v5438_v32 }
0x1d40   :  { %v5443_v44 = vmul.f32 1.442695, %v5437_v37 }
0x1d41   :  { %8244 = vpow2.f32 %v5445_v2 }
0x1d42   :  { %8246 = vpow2.f32 %v5443_v44 }
0x1d43   :  { %v8241_v6 = vpop.eup %8240 }
0x1d44   :  { %v8243_v46 = vpop.eup %8242  ;;  %v5464_v7 = vmul.f32 %v8241_v6, %v8237_v28  ;;  %v9712_v6 = vld [vmem:[%s9823_s17 + $0x10] sm:$0xff] }
0x1d45   :  { %v5463_v3 = vmul.f32 %v8243_v46, %v8239_v47  ;;  %v5720_v46 = vrot.slane %v9712_v6, %v8624_v52 }
0x1d47   :  { %7541 = vmatprep.mubr.msk.f32.mxu0 %vm1076_vm3, %v5463_v3 }
0x1d48   :  { %7542 = vmatmul.mubr.msk.f32.vlgmr.msra.gmra.mrb[74].mxu0 %vm1076_vm3, %v5464_v7 }
0x1d4b   :  { %v8245_v22 = vpop.eup %8244 }
0x1d4c   :  { %v8247_v48 = vpop.eup %8246  ;;  %v5456_v51 = vsel %vm1076_vm3, %v8245_v22, 0.0 }
0x1d4d   :  { %5457 = vadd.xlane.f32.xlu0 %v5456_v51  ;;  %v5453_v8 = vsel %vm1076_vm3, %v8247_v48, 0.0 }
0x1d4e   :  { %5454 = vadd.xlane.f32.xlu1 %v5453_v8 }
0x1dda   :  { %v5458_v25 = vpop.xlane.xlu0 %5457 }
0x1ddb   :  { %8248 = vrcp.f32 %v5458_v25  ;;  %v5455_v56 = vpop.xlane.xlu1 %5454 }
0x1ddc   :  { %8250 = vrcp.f32 %v5455_v56 }
0x1de5   :  { %v8249_v21 = vpop.eup %8248 }
0x1de6   :  { %v8251_v50 = vpop.eup %8250  ;;  %v5466_v45 = vmul.f32 %v8249_v21, %v8245_v22 }
0x1de7   :  { %v5465_v9 = vmul.f32 %v8251_v50, %v8247_v48  ;;  %v5728_v50 = vrot.slane %v9712_v6, %v8648_v10  ;;  %v198_v10 = vld [vmem:[%s9832_s13 + $0x40] sm:$0xff] }
0x1de9   :  { %7544 = vmatprep.mubr.msk.f32.mxu0 %vm1076_vm3, %v5465_v9 }
0x1dea   :  { %7545 = vmatmul.mubr.msk.f32.gmra.mrb[76].mxu0 %vm1076_vm3, %v5466_v45 }
0x1deb   :  { %7591 = vmatprep.mubr.msk.f32.mxu0 %vm8278_vm2, %v8279_v13 }
0x1e1b   :  { %v7543_v14 = vpop.f32.mrb[74].mxu0 }
0x1e1c   :  { %v5654_v16 = vadd.f32 %v7543_v14, %v9145_v23  ;;  %v5630_v43 = vpop.f32.mrb[75].mxu0 }
0x1e1d   :  { %v5653_v31 = vadd.f32 %v5630_v43, %v9147_v36 }
0x1e1e   :  { %v5662_v63 = vadd.f32 %v5660_v34, %v5654_v16 }
0x1e1f   :  { %v9685_v18 = vadd.f32 %v5660_v34, %v5653_v31 }
0x1e20   :  { %v5668_v11 = vsel %vm1076_vm3, %v5662_v63, 0.0 }
0x1e21   :  { %5669 = vadd.xlane.f32.xlu0 %v5668_v11  ;;  %v5665_v55 = vsel %vm1076_vm3, %v9685_v18, 0.0  ;;  %v199_v11 = vld [vmem:[%s9832_s13 + $0x48] sm:$0xff] }
0x1e22   :  { %5666 = vadd.xlane.f32.xlu1 %v5665_v55  ;;  %v8032_v55 = vpack.c.bf16 %v199_v11, %v198_v10 }
0x1eae   :  { %v5670_v57 = vpop.xlane.xlu0 %5669 }
0x1eaf   :  { %v5678_v61 = vmul.f32 0.03125, %v5670_v57  ;;  %v5667_v39 = vpop.xlane.xlu1 %5666  ;;  %v200_v57 = vld [vmem:[%s9832_s13 + $0x50] sm:$0xff] }
0x1eb0   :  { %v5677_v19 = vmul.f32 0.03125, %v5667_v39 }
0x1eb1   :  { %v5682_v20 = vsub.f32 %v5662_v63, %v5678_v61  ;;  %v201_v61 = vld [vmem:[%s9832_s13 + $0x58] sm:$0xff] }
0x1eb2   :  { %v5681_v23 = vsub.f32 %v9685_v18, %v5677_v19  ;;  %v8036_v39 = vpack.c.bf16 %v201_v61, %v200_v57  ;;  %v202_v19 = vld [vmem:[%s9832_s13 + $0x60] sm:$0xff] }
0x1eb3   :  { %v5686_v5 = vmul.f32 %v5682_v20, %v5682_v20 }
0x1eb4   :  { %v5685_v29 = vmul.f32 %v5681_v23, %v5681_v23 }
0x1eb5   :  { %v5692_v36 = vsel %vm1076_vm3, %v5686_v5, 0.0  ;;  %v204_v5 = vld [vmem:[%s9832_s13 + $0x70] sm:$0xff] }
0x1eb6   :  { %5693 = vadd.xlane.f32.xlu0 %v5692_v36  ;;  %v5689_v15 = vsel %vm1076_vm3, %v5685_v29, 0.0  ;;  %v205_v29 = vld [vmem:[%s9832_s13 + $0x78] sm:$0xff] }
0x1eb7   :  { %5690 = vadd.xlane.f32.xlu1 %v5689_v15  ;;  %v8044_v36 = vpack.c.bf16 %v205_v29, %v204_v5 }
0x1ebd   :  { %v7546_v62 = vpop.f32.mrb[76].mxu0 }
0x1ebe   :  { %v5656_v30 = vadd.f32 %v7546_v62, %v9155_v41  ;;  %v5640_v42 = vpop.f32.mrb[77].mxu0  ;;  %v8024_v41 = vpack.c.bf16 %v187_v38, %v186_v49 }
0x1ebf   :  { %v5655_v28 = vadd.f32 %v5640_v42, %v9157_v53  ;;  %v188_v53 = vld [vmem:[%s9831_s12 + $0x30] sm:$0xff] }
0x1ec0   :  { %v5664_v47 = vadd.f32 %v5660_v34, %v5656_v30  ;;  %8025 = vmatprep.subr.bf16.mxu1 %v8024_v41  ;;  %v8028_v0 = vpack.c.bf16 %v189_v26, %v188_v53 }
0x1ec1   :  { %v5663_v54 = vadd.f32 %v5660_v34, %v5655_v28  ;;  %8027 = vmatpush3.bf16.msra.mxu1 %v8024_v41 }
0x1ec2   :  { %v5674_v58 = vsel %vm1076_vm3, %v5664_v47, 0.0  ;;  %8029 = vmatprep.subr.bf16.mxu1 %v8028_v0 }
0x1ec3   :  { %5675 = vadd.xlane.f32.xlu0 %v5674_v58  ;;  %v5671_v1 = vsel %vm1076_vm3, %v5663_v54, 0.0 }
0x1ec4   :  { %5672 = vadd.xlane.f32.xlu1 %v5671_v1 }
0x1ec5   :  { %8031 = vmatpush3.bf16.msra.mxu1 %v8028_v0  ;;  %v5736_v0 = vrot.slane %v9712_v6, %v8959_v33 }
0x1ec6   :  { %8033 = vmatprep.subr.bf16.mxu1 %v8032_v55 }
0x1f43   :  { %v5694_v24 = vpop.xlane.xlu0 %5693 }
0x1f44   :  { %v5702_v27 = vmul.f32 0.03125, %v5694_v24  ;;  %v5691_v32 = vpop.xlane.xlu1 %5690 }
0x1f45   :  { %v5701_v35 = vmul.f32 0.03125, %v5691_v32 }
0x1f46   :  { %v5706_v37 = vadd.f32 1e-05, %v5702_v27 }
0x1f47   :  { %v5705_v2 = vadd.f32 1e-05, %v5701_v35 }
0x1f48   :  { %8252 = vrsqrt.f32 %v5706_v37 }
0x1f49   :  { %8254 = vrsqrt.f32 %v5705_v2 }
0x1f50   :  { %v5676_v44 = vpop.xlane.xlu0 %5675 }
0x1f51   :  { %v5680_v3 = vmul.f32 0.03125, %v5676_v44  ;;  %v5673_v7 = vpop.xlane.xlu1 %5672 }
0x1f52   :  { %v8253_v22 = vpop.eup %8252  ;;  %v5679_v48 = vmul.f32 0.03125, %v5673_v7 }
0x1f53   :  { %v8255_v51 = vpop.eup %8254  ;;  %v5714_v8 = vmul.f32 %v8253_v22, %v5682_v20  ;;  %v5684_v25 = vsub.f32 %v5664_v47, %v5680_v3  ;;  %v203_v20 = vld [vmem:[%s9832_s13 + $0x68] sm:$0xff] }
0x1f54   :  { %v5683_v56 = vsub.f32 %v5663_v54, %v5679_v48  ;;  %v5713_v21 = vmul.f32 %v8255_v51, %v5681_v23  ;;  %v8040_v23 = vpack.c.bf16 %v203_v20, %v202_v19 }
0x1f55   :  { %v5722_v9 = vmul.f32 %v5720_v46, %v5714_v8  ;;  %v5688_v45 = vmul.f32 %v5684_v25, %v5684_v25 }
0x1f56   :  { %v5687_v34 = vmul.f32 %v5683_v56, %v5683_v56  ;;  %v5721_v14 = vmul.f32 %v5720_v46, %v5713_v21 }
0x1f57   :  { %v5698_v16 = vsel %vm1076_vm3, %v5688_v45, 0.0  ;;  %v5730_v63 = vadd.f32 %v5728_v50, %v5722_v9 }
0x1f58   :  { %5699 = vadd.xlane.f32.xlu0 %v5698_v16  ;;  %v5695_v43 = vsel %vm1076_vm3, %v5687_v34, 0.0  ;;  %v5729_v31 = vadd.f32 %v5728_v50, %v5721_v14 }
0x1f59   :  { %5696 = vadd.xlane.f32.xlu1 %v5695_v43 }
0x1f5a   :  { %7555 = vmatprep.mubr.msk.f32.mxu1 %vm1076_vm3, %v5729_v31 }
0x1f5b   :  { %7556 = vmatmul.mubr.msk.f32.vlgmr.msra.gmra.mrb[80].mxu1 %vm1076_vm3, %v5730_v63 }
0x1f5c   :  { %8035 = vmatpush3.bf16.msra.mxu1 %v8032_v55 }
0x1f5d   :  { %8037 = vmatprep.subr.bf16.mxu1 %v8036_v39 }
0x1f60   :  { %8039 = vmatpush3.bf16.msra.mxu1 %v8036_v39 }
0x1f61   :  { %8041 = vmatprep.subr.bf16.mxu1 %v8040_v23 }
0x1f64   :  { %8043 = vmatpush3.bf16.msra.mxu1 %v8040_v23 }
0x1f65   :  { %8045 = vmatprep.subr.bf16.mxu1 %v8044_v36 }
0x1f68   :  { %8047 = vmatpush3.bf16.msra.mxu1 %v8044_v36 }
0x1f69   :  { %8060 = vmatprep.subr.bf16.mxu1 %v8277_v12 }
0x1fe5   :  { %v5700_v15 = vpop.xlane.xlu0 %5699 }
0x1fe6   :  { %v5704_v62 = vmul.f32 0.03125, %v5700_v15  ;;  %v5697_v30 = vpop.xlane.xlu1 %5696 }
0x1fe7   :  { %v5703_v42 = vmul.f32 0.03125, %v5697_v30 }
0x1fe8   :  { %v5708_v28 = vadd.f32 1e-05, %v5704_v62 }
0x1fe9   :  { %v5707_v47 = vadd.f32 1e-05, %v5703_v42 }
0x1fea   :  { %8256 = vrsqrt.f32 %v5708_v28  ;;  %v9760_v28 = vld [vmem:[%s9823_s17 + $0x18] sm:$0xff] }
0x1feb   :  { %8258 = vrsqrt.f32 %v5707_v47 }
0x1ff4   :  { %v8257_v54 = vpop.eup %8256 }
0x1ff5   :  { %v8259_v58 = vpop.eup %8258  ;;  %v5716_v1 = vmul.f32 %v8257_v54, %v5684_v25  ;;  %v5968_v54 = vrot.slane %v9760_v28, %v8416_v17  ;;  %v206_v17 = vld [vmem:[%s9833_s14] sm:$0xff] }
0x1ff6   :  { %v5715_v49 = vmul.f32 %v8259_v58, %v5683_v56 }
0x1ff7   :  { %v5724_v38 = vmul.f32 %v5720_v46, %v5716_v1 }
0x1ff8   :  { %v5723_v41 = vmul.f32 %v5720_v46, %v5715_v49 }
0x1ff9   :  { %v5732_v26 = vadd.f32 %v5728_v50, %v5724_v38 }
0x1ffa   :  { %v5731_v53 = vadd.f32 %v5728_v50, %v5723_v41 }
0x1ffc   :  { %7558 = vmatprep.mubr.msk.f32.mxu1 %vm1076_vm3, %v5731_v53 }
0x1ffd   :  { %7559 = vmatmul.mubr.msk.f32.gmra.mrb[82].mxu1 %vm1076_vm3, %v5732_v26 }
0x202e   :  { %v7557_v24 = vpop.f32.mrb[80].mxu1 }
0x202f   :  { %v5821_v27 = vadd.f32 %v7557_v24, %v5736_v0  ;;  %v5815_v32 = vpop.f32.mrb[81].mxu1 }
0x2030   :  { %v5816_v35 = vadd.f32 %v5815_v32, %v5736_v0 }
0x2031   :  { %v5835_v37 = vmul.f32 %v5821_v27, %v5821_v27 }
0x2032   :  { %v5834_v2 = vmul.f32 %v5816_v35, %v5816_v35 }
0x2033   :  { %v5839_v44 = vmul.f32 %v5835_v37, %v5821_v27  ;;  %v208_v37 = vld [vmem:[%s9833_s14 + $0x10] sm:$0xff] }
0x2034   :  { %v5838_v3 = vmul.f32 %v5834_v2, %v5816_v35  ;;  %v209_v2 = vld [vmem:[%s9833_s14 + $0x18] sm:$0xff] }
0x2035   :  { %v5843_v7 = vmul.f32 0.044715, %v5839_v44  ;;  %v8052_v44 = vpack.c.bf16 %v209_v2, %v208_v37 }
0x2036   :  { %v5842_v22 = vmul.f32 0.044715, %v5838_v3 }
0x2037   :  { %v5847_v46 = vadd.f32 %v5843_v7, %v5821_v27 }
0x2038   :  { %v5846_v48 = vadd.f32 %v5842_v22, %v5816_v35 }
0x2039   :  { %v5851_v51 = vmul.f32 0.7978846, %v5847_v46  ;;  %v5986_v46 = vrot.slane %v9760_v28, %v8452_v40  ;;  %v212_v40 = vld [vmem:[%s9834_s15 + $0x10] sm:$0xff] }
0x203a   :  { %v5850_v8 = vmul.f32 0.7978846, %v5846_v48 }
0x203b   :  { %8260 = vtanh.f32 %v5851_v51  ;;  %v5991_v51 = vrot.slane %v9760_v28, %v8493_v4  ;;  %v213_v4 = vld [vmem:[%s9834_s15 + $0x18] sm:$0xff] }
0x203c   :  { %8262 = vtanh.f32 %v5850_v8 }
0x2045   :  { %v8261_v25 = vpop.eup %8260 }
0x2046   :  { %v8263_v56 = vpop.eup %8262  ;;  %v5859_v21 = vadd.f32 1.0, %v8261_v25  ;;  %v210_v25 = vld [vmem:[%s9834_s15] sm:$0xff] }
0x2047   :  { %v5858_v33 = vadd.f32 1.0, %v8263_v56  ;;  %v211_v56 = vld [vmem:[%s9834_s15 + $0x8] sm:$0xff] }
0x2048   :  { %v5863_v6 = vmul.f32 0.5, %v5859_v21 }
0x2049   :  { %v5862_v50 = vmul.f32 0.5, %v5858_v33  ;;  %v8055_v33 = vpack.c.bf16 %v211_v56, %v210_v25 }
0x204a   :  { %v5867_v45 = vmul.f32 %v5863_v6, %v5821_v27 }
0x204b   :  { %v5866_v9 = vmul.f32 %v5862_v50, %v5816_v35  ;;  %v8058_v50 = vpack.c.bf16 %v213_v4, %v212_v40 }
0x204d   :  { %7577 = vmatprep.mubr.msk.f32.mxu1 %vm3419_vm6, %v5866_v9  ;;  %v214_v9 = vld [vmem:[%s9835_s16] sm:$0xff] }
0x204e   :  { %7578 = vmatmul.mubr.msk.f32.vlgmr.msra.gmra.mrb[84].mxu1 %vm3419_vm6, %v5867_v45 }
0x20d0   :  { %v7560_v34 = vpop.f32.mrb[82].mxu1 }
0x20d1   :  { %v5831_v14 = vadd.f32 %v7560_v34, %v5736_v0  ;;  %v5825_v16 = vpop.f32.mrb[83].mxu1 }
0x20d2   :  { %v5826_v43 = vadd.f32 %v5825_v16, %v5736_v0 }
0x20d3   :  { %v5837_v31 = vmul.f32 %v5831_v14, %v5831_v14 }
0x20d4   :  { %v5836_v63 = vmul.f32 %v5826_v43, %v5826_v43 }
0x20d5   :  { %v5841_v10 = vmul.f32 %v5837_v31, %v5831_v14  ;;  %v6074_v31 = vrot.slane %v9760_v28, %v8541_v60 }
0x20d6   :  { %v5840_v11 = vmul.f32 %v5836_v63, %v5826_v43 }
0x20d7   :  { %v5845_v55 = vmul.f32 0.044715, %v5841_v10 }
0x20d8   :  { %v5844_v57 = vmul.f32 0.044715, %v5840_v11 }
0x20d9   :  { %v5849_v61 = vadd.f32 %v5845_v55, %v5831_v14 }
0x20da   :  { %v5848_v39 = vadd.f32 %v5844_v57, %v5826_v43  ;;  %v6152_v57 = vrot.slane %v9760_v28, %v8624_v52 }
0x20db   :  { %v5853_v19 = vmul.f32 0.7978846, %v5849_v61 }
0x20dc   :  { %v5852_v20 = vmul.f32 0.7978846, %v5848_v39 }
0x20dd   :  { %8264 = vtanh.f32 %v5853_v19 }
0x20de   :  { %8266 = vtanh.f32 %v5852_v20 }
0x20e7   :  { %v8265_v23 = vpop.eup %8264 }
0x20e8   :  { %v8267_v5 = vpop.eup %8266  ;;  %v5861_v29 = vadd.f32 1.0, %v8265_v23 }
0x20e9   :  { %v5860_v36 = vadd.f32 1.0, %v8267_v5 }
0x20ea   :  { %v5865_v15 = vmul.f32 0.5, %v5861_v29 }
0x20eb   :  { %v5864_v62 = vmul.f32 0.5, %v5860_v36 }
0x20ec   :  { %v5869_v42 = vmul.f32 %v5865_v15, %v5831_v14 }
0x20ed   :  { %v5868_v30 = vmul.f32 %v5864_v62, %v5826_v43 }
0x20ef   :  { %7580 = vmatprep.mubr.msk.f32.mxu1 %vm3419_vm6, %v5868_v30 }
0x20f0   :  { %7581 = vmatmul.mubr.msk.f32.gmra.mrb[86].mxu1 %vm3419_vm6, %v5869_v42 }
0x20f1   :  { %7609 = vmatprep.mubr.msk.f32.mxu1 %vm8278_vm2, %v8279_v13 }
0x2121   :  { %v7579_v47 = vpop.f32.mrb[84].mxu1 }
0x2122   :  { %v5948_v58 = vpop.f32.mrb[85].mxu1 }
0x2123   :  { %v5964_v1 = vadd.f32 %v5948_v58, %v9685_v18  ;;  %v207_v18 = vld [vmem:[%s9833_s14 + $0x8] sm:$0xff] }
0x2124   :  { %v8049_v35 = vpack.c.bf16 %v207_v18, %v206_v17 }
0x2125   :  { %v5969_v49 = vadd.f32 %v5968_v54, %v5964_v1 }
0x2126   :  { %8050 = vmatpush3.bf16.msra.mxu0 %v8049_v35 }
0x2127   :  { %v5970_v38 = vsel %vm1076_vm3, %v5969_v49, 0.0  ;;  %8051 = vmatprep.subr.bf16.mxu0 %v8277_v12 }
0x2128   :  { %5971 = vadd.xlane.f32.xlu1 %v5970_v38 }
0x212a   :  { %8053 = vmatpush3.bf16.msra.mxu0 %v8052_v44 }
0x212b   :  { %8054 = vmatprep.subr.bf16.mxu0 %v8277_v12 }
0x21b5   :  { %v5972_v41 = vpop.xlane.xlu1 %5971 }
0x21b6   :  { %v5973_v53 = vmul.f32 0.03125, %v5972_v41 }
0x21b8   :  { %v5974_v26 = vsub.f32 %v5969_v49, %v5973_v53 }
0x21ba   :  { %v5975_v0 = vmul.f32 %v5974_v26, %v5974_v26 }
0x21bc   :  { %v5976_v24 = vsel %vm1076_vm3, %v5975_v0, 0.0 }
0x21bd   :  { %5977 = vadd.xlane.f32.xlu0 %v5976_v24 }
0x21c3   :  { %v7582_v27 = vpop.f32.mrb[86].mxu1 }
0x21c4   :  { %v5957_v32 = vpop.f32.mrb[87].mxu1 }
0x224a   :  { %v5978_v3 = vpop.xlane.xlu0 %5977 }
0x224b   :  { %v5979_v7 = vmul.f32 0.03125, %v5978_v3 }
0x224d   :  { %v5980_v22 = vadd.f32 1e-05, %v5979_v7 }
0x224f   :  { %8268 = vrsqrt.f32 %v5980_v22 }
0x2259   :  { %v8269_v48 = vpop.eup %8268 }
0x225a   :  { %v5982_v8 = vmul.f32 %v8269_v48, %v5974_v26 }
0x225c   :  { %v5987_v21 = vmul.f32 %v5986_v46, %v5982_v8 }
0x225e   :  { %v5992_v6 = vadd.f32 %v5991_v51, %v5987_v21 }
0x2260   :  { %7592 = vmatmul.mubr.msk.f32.vlgmr.msra.gmra.mrb[86].mxu0 %vm1076_vm3, %v5992_v6 }
0x2261   :  { %8056 = vmatpush3.bf16.msra.mxu0 %v8055_v33  ;;  %7602 = vmatprep.mubr.msk.f32.mxu0 %vm8278_vm2, %v8279_v13  ;;  %v215_v13 = vld [vmem:[%s9835_s16 + $0x8] sm:$0xff] }
0x2262   :  { %8057 = vmatprep.subr.bf16.mxu0 %v8277_v12  ;;  %v8061_v45 = vpack.c.bf16 %v215_v13, %v214_v9  ;;  %v5996_v12 = vrot.slane %v9760_v28, %v8538_v59 }
0x2264   :  { %8062 = vmatpush3.bf16.msra.mxu1 %v8061_v45 }
0x2265   :  { %8059 = vmatpush3.bf16.msra.mxu0 %v8058_v50 }
0x2333   :  { %v6066_v34 = vpop.f32.mrb[86].mxu0 }
0x2334   :  { %v6067_v14 = vadd.f32 %v6066_v34, %v5996_v12  ;;  %v7593_v16 = vpop.f32.mrb[87].mxu0 }
0x2336   :  { %v6070_v43 = vmax.f32 %v6067_v14, 0.0 }
0x2338   :  { %7603 = vmatmul.mubr.msk.f32.vlgmr.msra.gmra.mrb[88].mxu0 %vm1076_vm3, %v6070_v43 }
0x240b   :  { %v6144_v63 = vpop.f32.mrb[88].mxu0 }
0x240c   :  { %v6145_v10 = vadd.f32 %v6144_v63, %v6074_v31  ;;  %v7604_v11 = vpop.f32.mrb[89].mxu0 }
0x240e   :  { %v6148_v55 = vmax.f32 %v6145_v10, 0.0 }
0x2410   :  { %7610 = vmatmul.mubr.msk.f32.vlgmr.msra.gmra.mrb[88].mxu1 %vm220_vm1, %v6148_v55 }
0x24e3   :  { %v6222_v61 = vpop.f32.mrb[88].mxu1 }
0x24e4   :  { %v6223_v59 = vadd.f32 %v6222_v61, %v6152_v57  ;;  %v7611_v39 = vpop.f32.mrb[89].mxu1 }
0x24e6   :  { %6227 = vst.msk [vmem:[%s9836_s18] sm:$0xff] %vm6226_vm7, %v6223_v59 }

</bundles_post_ra>
